<compile_context>
chip_gen: v5e
topology: v5e:2x2
jax: 0.10.0
libtpu: 0.0.40
codegen_flags: <defaults>
</compile_context>

<pallas_src>
import functools
import math

import jax
import jax.numpy as jnp
from jax.experimental import pallas as pl
from jax.experimental.pallas import tpu as pltpu


# ---------------------------------------------------------------------------
# helpers
# ---------------------------------------------------------------------------
def _round_up(x, m):
    return ((x + m - 1) // m) * m


def _layernorm(h, gamma, beta, eps=1e-5):
    # LayerNorm over the last (lane) axis, f32 math.
    mu = jnp.mean(h, axis=-1, keepdims=True)
    d = h - mu
    var = jnp.mean(d * d, axis=-1, keepdims=True)
    return d * jax.lax.rsqrt(var + eps) * gamma + beta


# ---------------------------------------------------------------------------
# fused Pallas kernel: both heads in one pass over a batch-row tile
# ---------------------------------------------------------------------------
def _classifier_kernel(x_ref,
                       w1c_ref, b1c_ref, g1_ref, be1_ref,
                       w2c_ref, b2c_ref, g2_ref, be2_ref,
                       w3c_ref, b3c_ref,
                       w1u_ref, b1u_ref,
                       w2u_ref, b2u_ref,
                       w3u_ref, b3u_ref,
                       logits_ref, unc_ref):
    x = x_ref[...]                                   # (tm, 1024) f32
    xb = x.astype(jnp.bfloat16)                      # MXU-native operand

    # ----- classifier head -----
    h = jnp.dot(xb, w1c_ref[...],
                preferred_element_type=jnp.float32) + b1c_ref[...]
    h = jnp.maximum(_layernorm(h, g1_ref[...], be1_ref[...]), 0.0)
    # TODO(synk): nn.Dropout(0.4) is the identity in eval/inference mode;
    # training-mode RNG dropout is not implemented here.
    h = jnp.dot(h.astype(jnp.bfloat16), w2c_ref[...],
                preferred_element_type=jnp.float32) + b2c_ref[...]
    h = jnp.maximum(_layernorm(h, g2_ref[...], be2_ref[...]), 0.0)
    logits = jnp.dot(h.astype(jnp.bfloat16), w3c_ref[...],
                     preferred_element_type=jnp.float32) + b3c_ref[...]
    logits_ref[...] = logits.astype(logits_ref.dtype)

    # ----- uncertainty head -----
    u = jnp.dot(xb, w1u_ref[...],
                preferred_element_type=jnp.float32) + b1u_ref[...]
    u = jnp.maximum(u, 0.0)
    u = jnp.dot(u.astype(jnp.bfloat16), w2u_ref[...],
                preferred_element_type=jnp.float32) + b2u_ref[...]
    u = jnp.maximum(u, 0.0)
    u = jnp.dot(u.astype(jnp.bfloat16), w3u_ref[...],
                preferred_element_type=jnp.float32) + b3u_ref[...]
    unc_ref[...] = jax.nn.sigmoid(u).astype(unc_ref.dtype)


def uncertainty_classifier_forward(params, x):
    """x: (B, in_features) f32 -> (logits (B, C), uncertainty (B, C))."""
    B, F = x.shape
    NC = params["w3c"].shape[1]

    # Batch-row tiling: one big tile when B is tiny, otherwise >=2 parallel
    # grid steps (keeps v7x's second TensorCore busy; harmless on v5e/v6e).
    if B <= 8:
        tm = _round_up(max(B, 1), 8)
    else:
        tm = min(_round_up(B, 16) // 2, 512)
    B_pad = _round_up(B, tm)
    if B_pad != B:
        x = jnp.pad(x, ((0, B_pad - B), (0, 0)))

    bf16 = jnp.bfloat16
    wcast = lambda name: params[name].astype(bf16)   # one-time cast per call

    def full(shape):
        return pl.BlockSpec(shape, lambda i: (0, 0))

    grid = (B_pad // tm,)
    logits, unc = pl.pallas_call(
        _classifier_kernel,
        out_shape=(jax.ShapeDtypeStruct((B_pad, NC), jnp.float32),
                   jax.ShapeDtypeStruct((B_pad, NC), jnp.float32)),
        grid=grid,
        in_specs=[
            pl.BlockSpec((tm, F), lambda i: (i, 0)),
            full(params["w1c"].shape), full(params["b1c"].shape),
            full(params["g1"].shape), full(params["be1"].shape),
            full(params["w2c"].shape), full(params["b2c"].shape),
            full(params["g2"].shape), full(params["be2"].shape),
            full(params["w3c"].shape), full(params["b3c"].shape),
            full(params["w1u"].shape), full(params["b1u"].shape),
            full(params["w2u"].shape), full(params["b2u"].shape),
            full(params["w3u"].shape), full(params["b3u"].shape),
        ],
        out_specs=(pl.BlockSpec((tm, NC), lambda i: (i, 0)),
                   pl.BlockSpec((tm, NC), lambda i: (i, 0))),
        compiler_params=pltpu.CompilerParams(
            dimension_semantics=("parallel",)),
    )(x,
      wcast("w1c"), params["b1c"], params["g1"], params["be1"],
      wcast("w2c"), params["b2c"], params["g2"], params["be2"],
      wcast("w3c"), params["b3c"],
      wcast("w1u"), params["b1u"],
      wcast("w2u"), params["b2u"],
      wcast("w3u"), params["b3u"])
    return logits[:B], unc[:B]


# ---------------------------------------------------------------------------
# parameters (deterministic synthetic init, PyTorch-Linear-like uniform)
# ---------------------------------------------------------------------------
def init_params(key, in_features=1024, num_classes=5):
    ks = jax.random.split(key, 6)

    def linear(k, fi, fo):
        kw, kb = jax.random.split(k)
        bound = 1.0 / math.sqrt(fi)
        w = jax.random.uniform(kw, (fi, fo), jnp.float32, -bound, bound)
        b = jax.random.uniform(kb, (1, fo), jnp.float32, -bound, bound)
        return w, b

    w1c, b1c = linear(ks[0], in_features, 512)
    w2c, b2c = linear(ks[1], 512, 256)
    w3c, b3c = linear(ks[2], 256, num_classes)
    w1u, b1u = linear(ks[3], in_features, 256)
    w2u, b2u = linear(ks[4], 256, 128)
    w3u, b3u = linear(ks[5], 128, num_classes)
    return {
        "w1c": w1c, "b1c": b1c,
        "g1": jnp.ones((1, 512), jnp.float32),
        "be1": jnp.zeros((1, 512), jnp.float32),
        "w2c": w2c, "b2c": b2c,
        "g2": jnp.ones((1, 256), jnp.float32),
        "be2": jnp.zeros((1, 256), jnp.float32),
        "w3c": w3c, "b3c": b3c,
        "w1u": w1u, "b1u": b1u,
        "w2u": w2u, "b2u": b2u,
        "w3u": w3u, "b3u": b3u,
    }


# ---------------------------------------------------------------------------
# pure-JAX f32 reference (correctness check)
# ---------------------------------------------------------------------------
def reference_forward(params, x):
    def ln(h, g, b, eps=1e-5):
        mu = h.mean(-1, keepdims=True)
        var = ((h - mu) ** 2).mean(-1, keepdims=True)
        return (h - mu) / jnp.sqrt(var + eps) * g + b

    h = x @ params["w1c"] + params["b1c"]
    h = jax.nn.relu(ln(h, params["g1"], params["be1"]))
    h = h @ params["w2c"] + params["b2c"]
    h = jax.nn.relu(ln(h, params["g2"], params["be2"]))
    logits = h @ params["w3c"] + params["b3c"]

    u = jax.nn.relu(x @ params["w1u"] + params["b1u"])
    u = jax.nn.relu(u @ params["w2u"] + params["b2u"])
    unc = jax.nn.sigmoid(u @ params["w3u"] + params["b3u"])
    return logits, unc


# ---------------------------------------------------------------------------
# main
# ---------------------------------------------------------------------------
if __name__ == "__main__":
    B, IN_FEATURES, NUM_CLASSES = 16, 1024, 5

    k_par, k_x = jax.random.split(jax.random.PRNGKey(0))
    params = init_params(k_par, IN_FEATURES, NUM_CLASSES)
    x = jax.random.normal(k_x, (B, IN_FEATURES), jnp.float32)

    fwd = jax.jit(uncertainty_classifier_forward)
    logits, unc = fwd(params, x)
    logits, unc = jax.block_until_ready((logits, unc))

    assert logits.shape == (B, NUM_CLASSES), logits.shape
    assert unc.shape == (B, NUM_CLASSES), unc.shape
    assert bool(jnp.all(jnp.isfinite(logits)))
    assert bool(jnp.all(jnp.isfinite(unc)))

    ref_logits, ref_unc = reference_forward(params, x)
    assert bool(jnp.allclose(logits, ref_logits, atol=5e-2, rtol=5e-2)), (
        float(jnp.max(jnp.abs(logits - ref_logits))))
    assert bool(jnp.allclose(unc, ref_unc, atol=5e-2, rtol=5e-2)), (
        float(jnp.max(jnp.abs(unc - ref_unc))))

    print("KERNEL_OK")
</pallas_src>

<mosaic_0001>
module attributes {stable_mosaic.version = 11 : i64} {
  func.func @_classifier_kernel(%arg0: i32, %arg1: memref<8x1024xf32, #tpu.memory_space<vmem>>, %arg2: memref<1024x512xbf16, #tpu.memory_space<vmem>>, %arg3: memref<1x512xf32, #tpu.memory_space<vmem>>, %arg4: memref<1x512xf32, #tpu.memory_space<vmem>>, %arg5: memref<1x512xf32, #tpu.memory_space<vmem>>, %arg6: memref<512x256xbf16, #tpu.memory_space<vmem>>, %arg7: memref<1x256xf32, #tpu.memory_space<vmem>>, %arg8: memref<1x256xf32, #tpu.memory_space<vmem>>, %arg9: memref<1x256xf32, #tpu.memory_space<vmem>>, %arg10: memref<256x5xbf16, #tpu.memory_space<vmem>>, %arg11: memref<1x5xf32, #tpu.memory_space<vmem>>, %arg12: memref<1024x256xbf16, #tpu.memory_space<vmem>>, %arg13: memref<1x256xf32, #tpu.memory_space<vmem>>, %arg14: memref<256x128xbf16, #tpu.memory_space<vmem>>, %arg15: memref<1x128xf32, #tpu.memory_space<vmem>>, %arg16: memref<128x5xbf16, #tpu.memory_space<vmem>>, %arg17: memref<1x5xf32, #tpu.memory_space<vmem>>, %arg18: memref<8x5xf32, #tpu.memory_space<vmem>>, %arg19: memref<8x5xf32, #tpu.memory_space<vmem>>) attributes {dimension_semantics = [#tpu.dimension_semantics<parallel>], iteration_bounds = array<i64: 2>, scalar_prefetch = 0 : i64, scratch_operands = 0 : i64, tpu.core_type = #tpu.core_type<tc>, window_params = [{transform_indices = @transform_0, window_bounds = array<i64: 8, 1024>}, {pipeline_mode = #tpu.pipeline_mode<synchronous>, transform_indices = @transform_1, window_bounds = array<i64: 1024, 512>}, {pipeline_mode = #tpu.pipeline_mode<synchronous>, transform_indices = @transform_2, window_bounds = array<i64: 1, 512>}, {pipeline_mode = #tpu.pipeline_mode<synchronous>, transform_indices = @transform_3, window_bounds = array<i64: 1, 512>}, {pipeline_mode = #tpu.pipeline_mode<synchronous>, transform_indices = @transform_4, window_bounds = array<i64: 1, 512>}, {pipeline_mode = #tpu.pipeline_mode<synchronous>, transform_indices = @transform_5, window_bounds = array<i64: 512, 256>}, {pipeline_mode = #tpu.pipeline_mode<synchronous>, transform_indices = @transform_6, window_bounds = array<i64: 1, 256>}, {pipeline_mode = #tpu.pipeline_mode<synchronous>, transform_indices = @transform_7, window_bounds = array<i64: 1, 256>}, {pipeline_mode = #tpu.pipeline_mode<synchronous>, transform_indices = @transform_8, window_bounds = array<i64: 1, 256>}, {pipeline_mode = #tpu.pipeline_mode<synchronous>, transform_indices = @transform_9, window_bounds = array<i64: 256, 5>}, {pipeline_mode = #tpu.pipeline_mode<synchronous>, transform_indices = @transform_10, window_bounds = array<i64: 1, 5>}, {pipeline_mode = #tpu.pipeline_mode<synchronous>, transform_indices = @transform_11, window_bounds = array<i64: 1024, 256>}, {pipeline_mode = #tpu.pipeline_mode<synchronous>, transform_indices = @transform_12, window_bounds = array<i64: 1, 256>}, {pipeline_mode = #tpu.pipeline_mode<synchronous>, transform_indices = @transform_13, window_bounds = array<i64: 256, 128>}, {pipeline_mode = #tpu.pipeline_mode<synchronous>, transform_indices = @transform_14, window_bounds = array<i64: 1, 128>}, {pipeline_mode = #tpu.pipeline_mode<synchronous>, transform_indices = @transform_15, window_bounds = array<i64: 128, 5>}, {pipeline_mode = #tpu.pipeline_mode<synchronous>, transform_indices = @transform_16, window_bounds = array<i64: 1, 5>}, {transform_indices = @transform_17, window_bounds = array<i64: 8, 5>}, {transform_indices = @transform_18, window_bounds = array<i64: 8, 5>}]} {
    %c0 = arith.constant 0 : index
    %c0_0 = arith.constant 0 : index
    %0 = vector.load %arg1[%c0, %c0_0] : memref<8x1024xf32, #tpu.memory_space<vmem>>, vector<8x1024xf32>
    %1 = arith.truncf %0 : vector<8x1024xf32> to vector<8x1024xbf16>
    %c0_1 = arith.constant 0 : index
    %c0_2 = arith.constant 0 : index
    %2 = vector.load %arg2[%c0_1, %c0_2] : memref<1024x512xbf16, #tpu.memory_space<vmem>>, vector<1024x512xbf16>
    %cst = arith.constant dense<0.000000e+00> : vector<8x512xf32>
    %3 = tpu.matmul %1, %2, %cst {dimension_numbers = #tpu.dot_dimension_numbers<[1], [0], [0], [1], [0, 0, 1, 1], [], []>} : vector<8x1024xbf16>, vector<1024x512xbf16>, vector<8x512xf32> -> vector<8x512xf32>
    %c0_3 = arith.constant 0 : index
    %c0_4 = arith.constant 0 : index
    %4 = vector.load %arg3[%c0_3, %c0_4] : memref<1x512xf32, #tpu.memory_space<vmem>>, vector<1x512xf32>
    %5 = vector.broadcast %4 : vector<1x512xf32> to vector<8x512xf32>
    %6 = arith.addf %3, %5 : vector<8x512xf32>
    %c0_5 = arith.constant 0 : index
    %c0_6 = arith.constant 0 : index
    %7 = vector.load %arg4[%c0_5, %c0_6] : memref<1x512xf32, #tpu.memory_space<vmem>>, vector<1x512xf32>
    %c0_7 = arith.constant 0 : index
    %c0_8 = arith.constant 0 : index
    %8 = vector.load %arg5[%c0_7, %c0_8] : memref<1x512xf32, #tpu.memory_space<vmem>>, vector<1x512xf32>
    %cst_9 = arith.constant dense<0.000000e+00> : vector<8xf32>
    %9 = vector.multi_reduction <add>, %6, %cst_9 [1] : vector<8x512xf32> to vector<8xf32>
    %10 = vector.shape_cast %9 : vector<8xf32> to vector<8x1xf32>
    %cst_10 = arith.constant 5.120000e+02 : f32
    %11 = vector.broadcast %cst_10 : f32 to vector<8x1xf32>
    %12 = arith.divf %10, %11 : vector<8x1xf32>
    %13 = vector.broadcast %12 : vector<8x1xf32> to vector<8x512xf32>
    %14 = arith.subf %6, %13 : vector<8x512xf32>
    %15 = arith.mulf %14, %14 : vector<8x512xf32>
    %cst_11 = arith.constant dense<0.000000e+00> : vector<8xf32>
    %16 = vector.multi_reduction <add>, %15, %cst_11 [1] : vector<8x512xf32> to vector<8xf32>
    %17 = vector.shape_cast %16 : vector<8xf32> to vector<8x1xf32>
    %cst_12 = arith.constant 5.120000e+02 : f32
    %18 = vector.broadcast %cst_12 : f32 to vector<8x1xf32>
    %19 = arith.divf %17, %18 : vector<8x1xf32>
    %cst_13 = arith.constant 9.99999974E-6 : f32
    %20 = vector.broadcast %cst_13 : f32 to vector<8x1xf32>
    %21 = arith.addf %19, %20 : vector<8x1xf32>
    %22 = math.rsqrt %21 : vector<8x1xf32>
    %23 = vector.broadcast %22 : vector<8x1xf32> to vector<8x512xf32>
    %24 = arith.mulf %14, %23 : vector<8x512xf32>
    %25 = vector.broadcast %7 : vector<1x512xf32> to vector<8x512xf32>
    %26 = arith.mulf %24, %25 : vector<8x512xf32>
    %27 = vector.broadcast %8 : vector<1x512xf32> to vector<8x512xf32>
    %28 = arith.addf %26, %27 : vector<8x512xf32>
    %cst_14 = arith.constant 0.000000e+00 : f32
    %29 = vector.broadcast %cst_14 : f32 to vector<8x512xf32>
    %30 = arith.maximumf %28, %29 : vector<8x512xf32>
    %31 = arith.truncf %30 : vector<8x512xf32> to vector<8x512xbf16>
    %c0_15 = arith.constant 0 : index
    %c0_16 = arith.constant 0 : index
    %32 = vector.load %arg6[%c0_15, %c0_16] : memref<512x256xbf16, #tpu.memory_space<vmem>>, vector<512x256xbf16>
    %cst_17 = arith.constant dense<0.000000e+00> : vector<8x256xf32>
    %33 = tpu.matmul %31, %32, %cst_17 {dimension_numbers = #tpu.dot_dimension_numbers<[1], [0], [0], [1], [0, 0, 1, 1], [], []>} : vector<8x512xbf16>, vector<512x256xbf16>, vector<8x256xf32> -> vector<8x256xf32>
    %c0_18 = arith.constant 0 : index
    %c0_19 = arith.constant 0 : index
    %34 = vector.load %arg7[%c0_18, %c0_19] : memref<1x256xf32, #tpu.memory_space<vmem>>, vector<1x256xf32>
    %35 = vector.broadcast %34 : vector<1x256xf32> to vector<8x256xf32>
    %36 = arith.addf %33, %35 : vector<8x256xf32>
    %c0_20 = arith.constant 0 : index
    %c0_21 = arith.constant 0 : index
    %37 = vector.load %arg8[%c0_20, %c0_21] : memref<1x256xf32, #tpu.memory_space<vmem>>, vector<1x256xf32>
    %c0_22 = arith.constant 0 : index
    %c0_23 = arith.constant 0 : index
    %38 = vector.load %arg9[%c0_22, %c0_23] : memref<1x256xf32, #tpu.memory_space<vmem>>, vector<1x256xf32>
    %cst_24 = arith.constant dense<0.000000e+00> : vector<8xf32>
    %39 = vector.multi_reduction <add>, %36, %cst_24 [1] : vector<8x256xf32> to vector<8xf32>
    %40 = vector.shape_cast %39 : vector<8xf32> to vector<8x1xf32>
    %cst_25 = arith.constant 2.560000e+02 : f32
    %41 = vector.broadcast %cst_25 : f32 to vector<8x1xf32>
    %42 = arith.divf %40, %41 : vector<8x1xf32>
    %43 = vector.broadcast %42 : vector<8x1xf32> to vector<8x256xf32>
    %44 = arith.subf %36, %43 : vector<8x256xf32>
    %45 = arith.mulf %44, %44 : vector<8x256xf32>
    %cst_26 = arith.constant dense<0.000000e+00> : vector<8xf32>
    %46 = vector.multi_reduction <add>, %45, %cst_26 [1] : vector<8x256xf32> to vector<8xf32>
    %47 = vector.shape_cast %46 : vector<8xf32> to vector<8x1xf32>
    %cst_27 = arith.constant 2.560000e+02 : f32
    %48 = vector.broadcast %cst_27 : f32 to vector<8x1xf32>
    %49 = arith.divf %47, %48 : vector<8x1xf32>
    %cst_28 = arith.constant 9.99999974E-6 : f32
    %50 = vector.broadcast %cst_28 : f32 to vector<8x1xf32>
    %51 = arith.addf %49, %50 : vector<8x1xf32>
    %52 = math.rsqrt %51 : vector<8x1xf32>
    %53 = vector.broadcast %52 : vector<8x1xf32> to vector<8x256xf32>
    %54 = arith.mulf %44, %53 : vector<8x256xf32>
    %55 = vector.broadcast %37 : vector<1x256xf32> to vector<8x256xf32>
    %56 = arith.mulf %54, %55 : vector<8x256xf32>
    %57 = vector.broadcast %38 : vector<1x256xf32> to vector<8x256xf32>
    %58 = arith.addf %56, %57 : vector<8x256xf32>
    %cst_29 = arith.constant 0.000000e+00 : f32
    %59 = vector.broadcast %cst_29 : f32 to vector<8x256xf32>
    %60 = arith.maximumf %58, %59 : vector<8x256xf32>
    %61 = arith.truncf %60 : vector<8x256xf32> to vector<8x256xbf16>
    %c0_30 = arith.constant 0 : index
    %c0_31 = arith.constant 0 : index
    %62 = vector.load %arg10[%c0_30, %c0_31] : memref<256x5xbf16, #tpu.memory_space<vmem>>, vector<256x5xbf16>
    %cst_32 = arith.constant dense<0.000000e+00> : vector<8x5xf32>
    %63 = tpu.matmul %61, %62, %cst_32 {dimension_numbers = #tpu.dot_dimension_numbers<[1], [0], [0], [1], [0, 0, 1, 1], [], []>} : vector<8x256xbf16>, vector<256x5xbf16>, vector<8x5xf32> -> vector<8x5xf32>
    %c0_33 = arith.constant 0 : index
    %c0_34 = arith.constant 0 : index
    %64 = vector.load %arg11[%c0_33, %c0_34] : memref<1x5xf32, #tpu.memory_space<vmem>>, vector<1x5xf32>
    %65 = vector.broadcast %64 : vector<1x5xf32> to vector<8x5xf32>
    %66 = arith.addf %63, %65 : vector<8x5xf32>
    %c0_35 = arith.constant 0 : index
    %c0_36 = arith.constant 0 : index
    %67 = vector.load %arg18[%c0_35, %c0_36] : memref<8x5xf32, #tpu.memory_space<vmem>>, vector<8x5xf32>
    tpu.vector_store %arg18[%c0_35, %c0_36], %66 {strides = array<i32>} : memref<8x5xf32, #tpu.memory_space<vmem>>, vector<8x5xf32>,
    %c0_37 = arith.constant 0 : index
    %c0_38 = arith.constant 0 : index
    %68 = vector.load %arg12[%c0_37, %c0_38] : memref<1024x256xbf16, #tpu.memory_space<vmem>>, vector<1024x256xbf16>
    %cst_39 = arith.constant dense<0.000000e+00> : vector<8x256xf32>
    %69 = tpu.matmul %1, %68, %cst_39 {dimension_numbers = #tpu.dot_dimension_numbers<[1], [0], [0], [1], [0, 0, 1, 1], [], []>} : vector<8x1024xbf16>, vector<1024x256xbf16>, vector<8x256xf32> -> vector<8x256xf32>
    %c0_40 = arith.constant 0 : index
    %c0_41 = arith.constant 0 : index
    %70 = vector.load %arg13[%c0_40, %c0_41] : memref<1x256xf32, #tpu.memory_space<vmem>>, vector<1x256xf32>
    %71 = vector.broadcast %70 : vector<1x256xf32> to vector<8x256xf32>
    %72 = arith.addf %69, %71 : vector<8x256xf32>
    %cst_42 = arith.constant 0.000000e+00 : f32
    %73 = vector.broadcast %cst_42 : f32 to vector<8x256xf32>
    %74 = arith.maximumf %72, %73 : vector<8x256xf32>
    %75 = arith.truncf %74 : vector<8x256xf32> to vector<8x256xbf16>
    %c0_43 = arith.constant 0 : index
    %c0_44 = arith.constant 0 : index
    %76 = vector.load %arg14[%c0_43, %c0_44] : memref<256x128xbf16, #tpu.memory_space<vmem>>, vector<256x128xbf16>
    %cst_45 = arith.constant dense<0.000000e+00> : vector<8x128xf32>
    %77 = tpu.matmul %75, %76, %cst_45 {dimension_numbers = #tpu.dot_dimension_numbers<[1], [0], [0], [1], [0, 0, 1, 1], [], []>} : vector<8x256xbf16>, vector<256x128xbf16>, vector<8x128xf32> -> vector<8x128xf32>
    %c0_46 = arith.constant 0 : index
    %c0_47 = arith.constant 0 : index
    %78 = vector.load %arg15[%c0_46, %c0_47] : memref<1x128xf32, #tpu.memory_space<vmem>>, vector<1x128xf32>
    %79 = vector.broadcast %78 : vector<1x128xf32> to vector<8x128xf32>
    %80 = arith.addf %77, %79 : vector<8x128xf32>
    %cst_48 = arith.constant 0.000000e+00 : f32
    %81 = vector.broadcast %cst_48 : f32 to vector<8x128xf32>
    %82 = arith.maximumf %80, %81 : vector<8x128xf32>
    %83 = arith.truncf %82 : vector<8x128xf32> to vector<8x128xbf16>
    %c0_49 = arith.constant 0 : index
    %c0_50 = arith.constant 0 : index
    %84 = vector.load %arg16[%c0_49, %c0_50] : memref<128x5xbf16, #tpu.memory_space<vmem>>, vector<128x5xbf16>
    %cst_51 = arith.constant dense<0.000000e+00> : vector<8x5xf32>
    %85 = tpu.matmul %83, %84, %cst_51 {dimension_numbers = #tpu.dot_dimension_numbers<[1], [0], [0], [1], [0, 0, 1, 1], [], []>} : vector<8x128xbf16>, vector<128x5xbf16>, vector<8x5xf32> -> vector<8x5xf32>
    %c0_52 = arith.constant 0 : index
    %c0_53 = arith.constant 0 : index
    %86 = vector.load %arg17[%c0_52, %c0_53] : memref<1x5xf32, #tpu.memory_space<vmem>>, vector<1x5xf32>
    %87 = vector.broadcast %86 : vector<1x5xf32> to vector<8x5xf32>
    %88 = arith.addf %85, %87 : vector<8x5xf32>
    %89 = arith.negf %88 : vector<8x5xf32>
    %90 = math.exp %89 : vector<8x5xf32>
    %cst_54 = arith.constant 1.000000e+00 : f32
    %91 = vector.broadcast %cst_54 : f32 to vector<8x5xf32>
    %92 = arith.addf %91, %90 : vector<8x5xf32>
    %93 = arith.divf %91, %92 : vector<8x5xf32>
    %c0_55 = arith.constant 0 : index
    %c0_56 = arith.constant 0 : index
    %94 = vector.load %arg19[%c0_55, %c0_56] : memref<8x5xf32, #tpu.memory_space<vmem>>, vector<8x5xf32>
    tpu.vector_store %arg19[%c0_55, %c0_56], %93 {strides = array<i32>} : memref<8x5xf32, #tpu.memory_space<vmem>>, vector<8x5xf32>,
    return
  }
  func.func @transform_0(%arg0: i32) -> (i32, i32) {
    %c0_i32 = arith.constant 0 : i32
    %c0_i32_0 = arith.constant 0 : i32
    return %arg0, %c0_i32 : i32, i32
  }
  func.func @transform_1(%arg0: i32) -> (i32, i32) {
    %c0_i32 = arith.constant 0 : i32
    %c0_i32_0 = arith.constant 0 : i32
    %c0_i32_1 = arith.constant 0 : i32
    return %c0_i32, %c0_i32_0 : i32, i32
  }
  func.func @transform_2(%arg0: i32) -> (i32, i32) {
    %c0_i32 = arith.constant 0 : i32
    %c0_i32_0 = arith.constant 0 : i32
    %c0_i32_1 = arith.constant 0 : i32
    return %c0_i32, %c0_i32_0 : i32, i32
  }
  func.func @transform_3(%arg0: i32) -> (i32, i32) {
    %c0_i32 = arith.constant 0 : i32
    %c0_i32_0 = arith.constant 0 : i32
    %c0_i32_1 = arith.constant 0 : i32
    return %c0_i32, %c0_i32_0 : i32, i32
  }
  func.func @transform_4(%arg0: i32) -> (i32, i32) {
    %c0_i32 = arith.constant 0 : i32
    %c0_i32_0 = arith.constant 0 : i32
    %c0_i32_1 = arith.constant 0 : i32
    return %c0_i32, %c0_i32_0 : i32, i32
  }
  func.func @transform_5(%arg0: i32) -> (i32, i32) {
    %c0_i32 = arith.constant 0 : i32
    %c0_i32_0 = arith.constant 0 : i32
    %c0_i32_1 = arith.constant 0 : i32
    return %c0_i32, %c0_i32_0 : i32, i32
  }
  func.func @transform_6(%arg0: i32) -> (i32, i32) {
    %c0_i32 = arith.constant 0 : i32
    %c0_i32_0 = arith.constant 0 : i32
    %c0_i32_1 = arith.constant 0 : i32
    return %c0_i32, %c0_i32_0 : i32, i32
  }
  func.func @transform_7(%arg0: i32) -> (i32, i32) {
    %c0_i32 = arith.constant 0 : i32
    %c0_i32_0 = arith.constant 0 : i32
    %c0_i32_1 = arith.constant 0 : i32
    return %c0_i32, %c0_i32_0 : i32, i32
  }
  func.func @transform_8(%arg0: i32) -> (i32, i32) {
    %c0_i32 = arith.constant 0 : i32
    %c0_i32_0 = arith.constant 0 : i32
    %c0_i32_1 = arith.constant 0 : i32
    return %c0_i32, %c0_i32_0 : i32, i32
  }
  func.func @transform_9(%arg0: i32) -> (i32, i32) {
    %c0_i32 = arith.constant 0 : i32
    %c0_i32_0 = arith.constant 0 : i32
    %c0_i32_1 = arith.constant 0 : i32
    return %c0_i32, %c0_i32_0 : i32, i32
  }
  func.func @transform_10(%arg0: i32) -> (i32, i32) {
    %c0_i32 = arith.constant 0 : i32
    %c0_i32_0 = arith.constant 0 : i32
    %c0_i32_1 = arith.constant 0 : i32
    return %c0_i32, %c0_i32_0 : i32, i32
  }
  func.func @transform_11(%arg0: i32) -> (i32, i32) {
    %c0_i32 = arith.constant 0 : i32
    %c0_i32_0 = arith.constant 0 : i32
    %c0_i32_1 = arith.constant 0 : i32
    return %c0_i32, %c0_i32_0 : i32, i32
  }
  func.func @transform_12(%arg0: i32) -> (i32, i32) {
    %c0_i32 = arith.constant 0 : i32
    %c0_i32_0 = arith.constant 0 : i32
    %c0_i32_1 = arith.constant 0 : i32
    return %c0_i32, %c0_i32_0 : i32, i32
  }
  func.func @transform_13(%arg0: i32) -> (i32, i32) {
    %c0_i32 = arith.constant 0 : i32
    %c0_i32_0 = arith.constant 0 : i32
    %c0_i32_1 = arith.constant 0 : i32
    return %c0_i32, %c0_i32_0 : i32, i32
  }
  func.func @transform_14(%arg0: i32) -> (i32, i32) {
    %c0_i32 = arith.constant 0 : i32
    %c0_i32_0 = arith.constant 0 : i32
    %c0_i32_1 = arith.constant 0 : i32
    return %c0_i32, %c0_i32_0 : i32, i32
  }
  func.func @transform_15(%arg0: i32) -> (i32, i32) {
    %c0_i32 = arith.constant 0 : i32
    %c0_i32_0 = arith.constant 0 : i32
    %c0_i32_1 = arith.constant 0 : i32
    return %c0_i32, %c0_i32_0 : i32, i32
  }
  func.func @transform_16(%arg0: i32) -> (i32, i32) {
    %c0_i32 = arith.constant 0 : i32
    %c0_i32_0 = arith.constant 0 : i32
    %c0_i32_1 = arith.constant 0 : i32
    return %c0_i32, %c0_i32_0 : i32, i32
  }
  func.func @transform_17(%arg0: i32) -> (i32, i32) {
    %c0_i32 = arith.constant 0 : i32
    %c0_i32_0 = arith.constant 0 : i32
    return %arg0, %c0_i32 : i32, i32
  }
  func.func @transform_18(%arg0: i32) -> (i32, i32) {
    %c0_i32 = arith.constant 0 : i32
    %c0_i32_0 = arith.constant 0 : i32
    return %arg0, %c0_i32 : i32, i32
  }
}

</mosaic_0001>

<bundles_post_ra>
// kernel: uncertainty_classifier_forward.1
= control target key start
LH: loop header
LB: loop body
LE: loop exit
PB: predicated region body
PF: predicated region fallthrough
CT: control target
= control target key end

     0   :  { %s7261_s27 = smov 0   ;;  %s10280_s0 = inlined_call_operand.vmem [shape: f32[16,1024], index: 0, kind: input, shape index: {}]   ;;  %s10281_s1 = inlined_call_operand.vmem [shape: bf16[1024,512], index: 1, kind: input, shape index: {}]   ;;  %s10282_s2 = inlined_call_operand.vmem [shape: f32[1,512], index: 2, kind: input, shape index: {}]   ;;  %s10283_s3 = inlined_call_operand.vmem [shape: f32[1,512], index: 3, kind: input, shape index: {}]   ;;  %s10284_s4 = inlined_call_operand.vmem [shape: f32[1,512], index: 4, kind: input, shape index: {}]   ;;  %s10285_s5 = inlined_call_operand.vmem [shape: bf16[512,256], index: 5, kind: input, shape index: {}]   ;;  %s10286_s6 = inlined_call_operand.vmem [shape: f32[1,256], index: 6, kind: input, shape index: {}]   ;;  %s10287_s7 = inlined_call_operand.vmem [shape: f32[1,256], index: 7, kind: input, shape index: {}]   ;;  %s10288_s8 = inlined_call_operand.vmem [shape: f32[1,256], index: 8, kind: input, shape index: {}]   ;;  %s10289_s9 = inlined_call_operand.vmem [shape: bf16[256,5], index: 9, kind: input, shape index: {}]   ;;  %s10290_s10 = inlined_call_operand.vmem [shape: f32[1,5], index: 10, kind: input, shape index: {}]   ;;  %s10291_s11 = inlined_call_operand.vmem [shape: bf16[1024,256], index: 11, kind: input, shape index: {}]   ;;  %s10292_s12 = inlined_call_operand.vmem [shape: f32[1,256], index: 12, kind: input, shape index: {}]   ;;  %s10293_s13 = inlined_call_operand.vmem [shape: bf16[256,128], index: 13, kind: input, shape index: {}]   ;;  %s10294_s14 = inlined_call_operand.vmem [shape: f32[1,128], index: 14, kind: input, shape index: {}]   ;;  %s10295_s15 = inlined_call_operand.vmem [shape: bf16[128,5], index: 15, kind: input, shape index: {}]   ;;  %s10296_s16 = inlined_call_operand.vmem [shape: f32[1,5], index: 16, kind: input, shape index: {}]   ;;  %s10297_s17 = inlined_call_operand.vmem [shape: f32[16,5], index: 17, kind: output, shape index: {0}]   ;;  %s10298_s18 = inlined_call_operand.vmem [shape: f32[16,5], index: 18, kind: output, shape index: {1}]  }
   0x1   :  { %10300 = sst [smem:[#allocation2_spill]] %s10280_s0 }
   0x2   :  { %10301 = sst [smem:[#allocation3_spill]] %s10281_s1 }
   0x3   :  { %10302 = sst [smem:[#allocation4_spill]] %s10282_s2 }
   0x4 LB: > { %s4678_s28 = sadd.s32 4294967295, %s7162_s27   ;;  %p4682_p0 = scmp.ge.s32.totalorder %s7162_s27, 1  ;;  %s7162_s27 = sphi %s7261_s27, %s29_s27  }
   0x5   : > { %p515_p1 = scmp.lt.s32.totalorder %s7162_s27, 3 }
   0x7   : > { %p516_p2 = pnand %p4682_p0, %p515_p1 }
   0x8   : > { %s10303_s0 = sld [smem:[#allocation3_spill]] (!%p516_p2)  ;;  %p572_p3 = scmp.lt.s32.totalorder (!%p516_p2), %s4678_s28, 1 }
   0x9   : > { %519 = sbr.rel (%p516_p2) target bundleno = 1641 (0x669), region = 88  ;;  %s10304_s1 = sld [smem:[#allocation2_spill]] (!%p516_p2) }
   0xa   : > { %s10305_s30 = sld [smem:[#allocation4_spill]] (!%p516_p2) }
   0xe   : > { %v4801_v0 = vld [vmem:[%s10303_s0 + $0xe0] sm:$0xf]  ;;  %v6673_v1 = vld [vmem:[%s10303_s0 + $0xec] sm:$0xf0]  ;;  %s10307_s28 = smov (!%p572_p3, %s4678_s28), 1  ;;  %vm3345_vm8 = vcmask 39936  }
   0xf   : > { %v4929_v2 = vld [vmem:[%s10303_s0 + $0x1e0] sm:$0xf]  ;;  %v4802_v3 = vor.u32 %v6673_v1, %v4801_v0  ;;  %v6705_v4 = vld [vmem:[%s10303_s0 + $0x1ec] sm:$0xf0]  ;;  %s6642_s22 = sshll.u32 %s10307_s28, 6  ;;  %s4685_s19 = sshll.u32 %s10307_s28, 3 }
  0x10   : > { %v5057_v5 = vld [vmem:[%s10303_s0 + $0x2e0] sm:$0xf]  ;;  %v6737_v6 = vld [vmem:[%s10303_s0 + $0x2ec] sm:$0xf0]  ;;  %v4930_v7 = vor.u32 %v6705_v4, %v4929_v2  ;;  %s7585_s20 = scalar_lea.vmem %s10304_s1, %s6642_s22  ;;  %s580_s24 = scalar_lea.vmem %s10297_s17, %s4685_s19 }
  0x11   : > { %v5058_v8 = vor.u32 %v6737_v6, %v5057_v5  ;;  %v5185_v9 = vld [vmem:[%s10303_s0 + $0x3e0] sm:$0xf]  ;;  %v6769_v10 = vld [vmem:[%s10303_s0 + $0x3ec] sm:$0xf0]  ;;  %2147 = vmatpush.bf16.msra.mxu0 %v4802_v3  ;;  %s584_s23 = scalar_lea.vmem %s10298_s18, %s4685_s19 }
  0x12   : > { %v4785_v11 = vld [vmem:[%s10303_s0 + $0xc0] sm:$0xf]  ;;  %v5186_v12 = vor.u32 %v6769_v10, %v5185_v9  ;;  %v6669_v13 = vld [vmem:[%s10303_s0 + $0xcc] sm:$0xf0]  ;;  %2160 = vmatpush.bf16.msra.mxu1 %v4930_v7 }
  0x13   : > { %v4913_v14 = vld [vmem:[%s10303_s0 + $0x1c0] sm:$0xf]  ;;  %v6701_v15 = vld [vmem:[%s10303_s0 + $0x1cc] sm:$0xf0]  ;;  %2173 = vmatpush.bf16.msra.mxu2 %v5058_v8  ;;  %v4786_v16 = vor.u32 %v6669_v13, %v4785_v11 }
  0x14   : > { %v4914_v17 = vor.u32 %v6701_v15, %v4913_v14  ;;  %v5041_v18 = vld [vmem:[%s10303_s0 + $0x2c0] sm:$0xf]  ;;  %v6733_v19 = vld [vmem:[%s10303_s0 + $0x2cc] sm:$0xf0]  ;;  %2186 = vmatpush.bf16.msra.mxu3 %v5186_v12 }
  0x15   : > { %v5169_v20 = vld [vmem:[%s10303_s0 + $0x3c0] sm:$0xf]  ;;  %v5042_v21 = vor.u32 %v6733_v19, %v5041_v18  ;;  %v6765_v22 = vld [vmem:[%s10303_s0 + $0x3cc] sm:$0xf0]  ;;  %2148 = vmatpush.bf16.msra.mxu0 %v4786_v16 }
  0x16   : > { %v4769_v23 = vld [vmem:[%s10303_s0 + $0xa0] sm:$0xf]  ;;  %v6665_v24 = vld [vmem:[%s10303_s0 + $0xac] sm:$0xf0]  ;;  %v5170_v25 = vor.u32 %v6765_v22, %v5169_v20  ;;  %2161 = vmatpush.bf16.msra.mxu1 %v4914_v17 }
  0x17   : > { %v4897_v26 = vld [vmem:[%s10303_s0 + $0x1a0] sm:$0xf]  ;;  %v6697_v27 = vld [vmem:[%s10303_s0 + $0x1ac] sm:$0xf0]  ;;  %v4770_v29 = vor.u32 %v6665_v24, %v4769_v23  ;;  %2174 = vmatpush.bf16.msra.mxu2 %v5042_v21 }
  0x18   : > { %v5025_v28 = vld [vmem:[%s10303_s0 + $0x2a0] sm:$0xf]  ;;  %v6729_v30 = vld [vmem:[%s10303_s0 + $0x2ac] sm:$0xf0]  ;;  %v4898_v33 = vor.u32 %v6697_v27, %v4897_v26  ;;  %2187 = vmatpush.bf16.msra.mxu3 %v5170_v25 }
  0x19   : > { %v5153_v31 = vld [vmem:[%s10303_s0 + $0x3a0] sm:$0xf]  ;;  %v6761_v32 = vld [vmem:[%s10303_s0 + $0x3ac] sm:$0xf0]  ;;  %v5026_v34 = vor.u32 %v6729_v30, %v5025_v28  ;;  %2149 = vmatpush.bf16.msra.mxu0 %v4770_v29 }
  0x1a   : > { %v4753_v35 = vld [vmem:[%s10303_s0 + $0x80] sm:$0xf]  ;;  %v6661_v36 = vld [vmem:[%s10303_s0 + $0x8c] sm:$0xf0]  ;;  %v5154_v38 = vor.u32 %v6761_v32, %v5153_v31  ;;  %2162 = vmatpush.bf16.msra.mxu1 %v4898_v33 }
  0x1b   : > { %v4881_v37 = vld [vmem:[%s10303_s0 + $0x180] sm:$0xf]  ;;  %v6693_v39 = vld [vmem:[%s10303_s0 + $0x18c] sm:$0xf0]  ;;  %v4754_v44 = vor.u32 %v6661_v36, %v4753_v35  ;;  %2175 = vmatpush.bf16.msra.mxu2 %v5026_v34 }
  0x1c   : > { %v5009_v40 = vld [vmem:[%s10303_s0 + $0x280] sm:$0xf]  ;;  %v6725_v41 = vld [vmem:[%s10303_s0 + $0x28c] sm:$0xf0]  ;;  %v4882_v45 = vor.u32 %v6693_v39, %v4881_v37  ;;  %2188 = vmatpush.bf16.msra.mxu3 %v5154_v38 }
  0x1d   : > { %v5137_v42 = vld [vmem:[%s10303_s0 + $0x380] sm:$0xf]  ;;  %v6757_v43 = vld [vmem:[%s10303_s0 + $0x38c] sm:$0xf0]  ;;  %v5010_v46 = vor.u32 %v6725_v41, %v5009_v40  ;;  %2150 = vmatpush.bf16.msra.mxu0 %v4754_v44 }
  0x1e   : > { %v4737_v47 = vld [vmem:[%s10303_s0 + $0x60] sm:$0xf]  ;;  %v6657_v48 = vld [vmem:[%s10303_s0 + $0x6c] sm:$0xf0]  ;;  %v5138_v50 = vor.u32 %v6757_v43, %v5137_v42  ;;  %2163 = vmatpush.bf16.msra.mxu1 %v4882_v45 }
  0x1f   : > { %v4865_v49 = vld [vmem:[%s10303_s0 + $0x160] sm:$0xf]  ;;  %v6689_v51 = vld [vmem:[%s10303_s0 + $0x16c] sm:$0xf0]  ;;  %v4738_v56 = vor.u32 %v6657_v48, %v4737_v47  ;;  %2176 = vmatpush.bf16.msra.mxu2 %v5010_v46 }
  0x20   : > { %v4993_v52 = vld [vmem:[%s10303_s0 + $0x260] sm:$0xf]  ;;  %v6721_v53 = vld [vmem:[%s10303_s0 + $0x26c] sm:$0xf0]  ;;  %v4866_v57 = vor.u32 %v6689_v51, %v4865_v49  ;;  %2189 = vmatpush.bf16.msra.mxu3 %v5138_v50 }
  0x21   : > { %v5121_v54 = vld [vmem:[%s10303_s0 + $0x360] sm:$0xf]  ;;  %v6753_v55 = vld [vmem:[%s10303_s0 + $0x36c] sm:$0xf0]  ;;  %v4994_v58 = vor.u32 %v6721_v53, %v4993_v52  ;;  %2151 = vmatpush.bf16.msra.mxu0 %v4738_v56 }
  0x22   : > { %v4721_v59 = vld [vmem:[%s10303_s0 + $0x40] sm:$0xf]  ;;  %v6653_v60 = vld [vmem:[%s10303_s0 + $0x4c] sm:$0xf0]  ;;  %v5122_v62 = vor.u32 %v6753_v55, %v5121_v54  ;;  %2164 = vmatpush.bf16.msra.mxu1 %v4866_v57 }
  0x23   : > { %v4849_v61 = vld [vmem:[%s10303_s0 + $0x140] sm:$0xf]  ;;  %v6685_v63 = vld [vmem:[%s10303_s0 + $0x14c] sm:$0xf0]  ;;  %v4722_v4 = vor.u32 %v6653_v60, %v4721_v59  ;;  %2177 = vmatpush.bf16.msra.mxu2 %v4994_v58 }
  0x24   : > { %v4977_v0 = vld [vmem:[%s10303_s0 + $0x240] sm:$0xf]  ;;  %v6717_v1 = vld [vmem:[%s10303_s0 + $0x24c] sm:$0xf0]  ;;  %v4850_v5 = vor.u32 %v6685_v63, %v4849_v61  ;;  %2190 = vmatpush.bf16.msra.mxu3 %v5122_v62 }
  0x25   : > { %v5105_v2 = vld [vmem:[%s10303_s0 + $0x340] sm:$0xf]  ;;  %v6749_v3 = vld [vmem:[%s10303_s0 + $0x34c] sm:$0xf0]  ;;  %v4978_v6 = vor.u32 %v6717_v1, %v4977_v0  ;;  %2152 = vmatpush.bf16.msra.mxu0 %v4722_v4 }
  0x26   : > { %v4705_v7 = vld [vmem:[%s10303_s0 + $0x20] sm:$0xf]  ;;  %v6649_v8 = vld [vmem:[%s10303_s0 + $0x2c] sm:$0xf0]  ;;  %v5106_v10 = vor.u32 %v6749_v3, %v5105_v2  ;;  %2165 = vmatpush.bf16.msra.mxu1 %v4850_v5 }
  0x27   : > { %v4833_v9 = vld [vmem:[%s10303_s0 + $0x120] sm:$0xf]  ;;  %v6681_v11 = vld [vmem:[%s10303_s0 + $0x12c] sm:$0xf0]  ;;  %v4706_v16 = vor.u32 %v6649_v8, %v4705_v7  ;;  %2178 = vmatpush.bf16.msra.mxu2 %v4978_v6 }
  0x28   : > { %v4961_v12 = vld [vmem:[%s10303_s0 + $0x220] sm:$0xf]  ;;  %v6713_v13 = vld [vmem:[%s10303_s0 + $0x22c] sm:$0xf0]  ;;  %v4834_v19 = vor.u32 %v6681_v11, %v4833_v9  ;;  %2191 = vmatpush.bf16.msra.mxu3 %v5106_v10 }
  0x29   : > { %v5089_v14 = vld [vmem:[%s10303_s0 + $0x320] sm:$0xf]  ;;  %v6745_v15 = vld [vmem:[%s10303_s0 + $0x32c] sm:$0xf0]  ;;  %v4962_v20 = vor.u32 %v6713_v13, %v4961_v12  ;;  %2153 = vmatpush.bf16.msra.mxu0 %v4706_v16 }
  0x2a   : > { %v4689_v17 = vld [vmem:[%s10303_s0] sm:$0xf]  ;;  %v6645_v18 = vld [vmem:[%s10303_s0 + $0xc] sm:$0xf0]  ;;  %v5090_v24 = vor.u32 %v6745_v15, %v5089_v14  ;;  %2166 = vmatpush.bf16.msra.mxu1 %v4834_v19 }
  0x2b   : > { %v4817_v21 = vld [vmem:[%s10303_s0 + $0x100] sm:$0xf]  ;;  %v6677_v22 = vld [vmem:[%s10303_s0 + $0x10c] sm:$0xf0]  ;;  %v4690_v31 = vor.u32 %v6645_v18, %v4689_v17  ;;  %2179 = vmatpush.bf16.msra.mxu2 %v4962_v20 }
  0x2c   : > { %v4945_v23 = vld [vmem:[%s10303_s0 + $0x200] sm:$0xf]  ;;  %v6709_v25 = vld [vmem:[%s10303_s0 + $0x20c] sm:$0xf0]  ;;  %v4818_v35 = vor.u32 %v6677_v22, %v4817_v21  ;;  %2192 = vmatpush.bf16.msra.mxu3 %v5090_v24  ;;  %v588_v24 = vld [vmem:[%s7585_s20 + $0x18] sm:$0xff] }
  0x2d   : > { %v5073_v26 = vld [vmem:[%s10303_s0 + $0x300] sm:$0xf]  ;;  %v6741_v27 = vld [vmem:[%s10303_s0 + $0x30c] sm:$0xf0]  ;;  %v4946_v36 = vor.u32 %v6709_v25, %v4945_v23  ;;  %2154 = vmatpush.bf16.msra.mxu0 %v4690_v31 }
  0x2e   : > { %v5313_v28 = vld [vmem:[%s10303_s0 + $0x4e0] sm:$0xf]  ;;  %v6801_v29 = vld [vmem:[%s10303_s0 + $0x4ec] sm:$0xf0]  ;;  %v5074_v39 = vor.u32 %v6741_v27, %v5073_v26  ;;  %2167 = vmatpush.bf16.msra.mxu1 %v4818_v35 }
  0x2f   : > { %v5441_v30 = vld [vmem:[%s10303_s0 + $0x5e0] sm:$0xf]  ;;  %v6833_v32 = vld [vmem:[%s10303_s0 + $0x5ec] sm:$0xf0]  ;;  %v5314_v40 = vor.u32 %v6801_v29, %v5313_v28  ;;  %2180 = vmatpush.bf16.msra.mxu2 %v4946_v36  ;;  %v7600_v29 = vpack.c.bf16 %v588_v24, %v588_v24  ;;  %v6699_v24 = vld [vmem:[%s10303_s0 + $0x1c4] sm:$0xf] }
  0x30   : > { %v5569_v33 = vld [vmem:[%s10303_s0 + $0x6e0] sm:$0xf]  ;;  %v6865_v34 = vld [vmem:[%s10303_s0 + $0x6ec] sm:$0xf0]  ;;  %v5442_v41 = vor.u32 %v6833_v32, %v5441_v30  ;;  %2193 = vmatpush.bf16.msra.mxu3 %v5074_v39  ;;  %v586_v30 = vld [vmem:[%s7585_s20 + $0x8] sm:$0xff] }
  0x31   : > { %v5697_v37 = vld [vmem:[%s10303_s0 + $0x7e0] sm:$0xf]  ;;  %v6897_v38 = vld [vmem:[%s10303_s0 + $0x7ec] sm:$0xf0]  ;;  %v5570_v42 = vor.u32 %v6865_v34, %v5569_v33  ;;  %2199 = vmatpush.bf16.msrb.mxu0 %v5314_v40  ;;  %v7603_v32 = vpack.c.bf16 %v586_v30, %v586_v30  ;;  %v4915_v30 = vld [vmem:[%s10303_s0 + $0x1d0] sm:$0xf0] }
  0x32   : > { %v5297_v43 = vld [vmem:[%s10303_s0 + $0x4c0] sm:$0xf]  ;;  %v6797_v44 = vld [vmem:[%s10303_s0 + $0x4cc] sm:$0xf0]  ;;  %v5698_v46 = vor.u32 %v6897_v38, %v5697_v37  ;;  %2212 = vmatpush.bf16.msrb.mxu1 %v5442_v41 }
  0x33   : > { %v5425_v45 = vld [vmem:[%s10303_s0 + $0x5c0] sm:$0xf]  ;;  %v6829_v47 = vld [vmem:[%s10303_s0 + $0x5cc] sm:$0xf0]  ;;  %v5298_v52 = vor.u32 %v6797_v44, %v5297_v43  ;;  %2225 = vmatpush.bf16.msrb.mxu2 %v5570_v42  ;;  %2194 = vmatmul.bf16.vlgmr.msra.gmra.mxu3 %v7600_v29 }
  0x34   : > { %v5553_v48 = vld [vmem:[%s10303_s0 + $0x6c0] sm:$0xf]  ;;  %v6861_v49 = vld [vmem:[%s10303_s0 + $0x6cc] sm:$0xf0]  ;;  %v5426_v53 = vor.u32 %v6829_v47, %v5425_v45  ;;  %2238 = vmatpush.bf16.msrb.mxu3 %v5698_v46  ;;  %2168 = vmatmul.bf16.vlgmr.msra.gmra.mxu1 %v7603_v32 }
  0x35   : > { %v5681_v50 = vld [vmem:[%s10303_s0 + $0x7c0] sm:$0xf]  ;;  %v6893_v51 = vld [vmem:[%s10303_s0 + $0x7cc] sm:$0xf0]  ;;  %v5554_v54 = vor.u32 %v6861_v49, %v5553_v48  ;;  %2200 = vmatpush.bf16.msrb.mxu0 %v5298_v52 }
  0x36   : > { %v5281_v55 = vld [vmem:[%s10303_s0 + $0x4a0] sm:$0xf]  ;;  %v6793_v56 = vld [vmem:[%s10303_s0 + $0x4ac] sm:$0xf0]  ;;  %v5682_v58 = vor.u32 %v6893_v51, %v5681_v50  ;;  %2213 = vmatpush.bf16.msrb.mxu1 %v5426_v53 }
  0x37   : > { %v5409_v57 = vld [vmem:[%s10303_s0 + $0x5a0] sm:$0xf]  ;;  %v6825_v59 = vld [vmem:[%s10303_s0 + $0x5ac] sm:$0xf0]  ;;  %v5282_v0 = vor.u32 %v6793_v56, %v5281_v55  ;;  %2226 = vmatpush.bf16.msrb.mxu2 %v5554_v54 }
  0x38   : > { %v5537_v60 = vld [vmem:[%s10303_s0 + $0x6a0] sm:$0xf]  ;;  %v6857_v61 = vld [vmem:[%s10303_s0 + $0x6ac] sm:$0xf0]  ;;  %v5410_v2 = vor.u32 %v6825_v59, %v5409_v57  ;;  %2239 = vmatpush.bf16.msrb.mxu3 %v5682_v58 }
  0x39   : > { %v5665_v62 = vld [vmem:[%s10303_s0 + $0x7a0] sm:$0xf]  ;;  %v6889_v63 = vld [vmem:[%s10303_s0 + $0x7ac] sm:$0xf0]  ;;  %v5538_v3 = vor.u32 %v6857_v61, %v5537_v60  ;;  %2201 = vmatpush.bf16.msrb.mxu0 %v5282_v0 }
  0x3a   : > { %v5265_v1 = vld [vmem:[%s10303_s0 + $0x480] sm:$0xf]  ;;  %v6789_v4 = vld [vmem:[%s10303_s0 + $0x48c] sm:$0xf0]  ;;  %v5666_v7 = vor.u32 %v6889_v63, %v5665_v62  ;;  %2214 = vmatpush.bf16.msrb.mxu1 %v5410_v2 }
  0x3b   : > { %v5393_v5 = vld [vmem:[%s10303_s0 + $0x580] sm:$0xf]  ;;  %v6821_v6 = vld [vmem:[%s10303_s0 + $0x58c] sm:$0xf0]  ;;  %v5266_v13 = vor.u32 %v6789_v4, %v5265_v1  ;;  %2227 = vmatpush.bf16.msrb.mxu2 %v5538_v3  ;;  %v6671_v4 = vld [vmem:[%s10303_s0 + $0xe4] sm:$0xf] }
  0x3c   : > { %v5521_v8 = vld [vmem:[%s10303_s0 + $0x680] sm:$0xf]  ;;  %v6853_v9 = vld [vmem:[%s10303_s0 + $0x68c] sm:$0xf0]  ;;  %v5394_v16 = vor.u32 %v6821_v6, %v5393_v5  ;;  %2240 = vmatpush.bf16.msrb.mxu3 %v5666_v7  ;;  %v4803_v5 = vld [vmem:[%s10303_s0 + $0xf0] sm:$0xf0] }
  0x3d   : > { %v5649_v10 = vld [vmem:[%s10303_s0 + $0x780] sm:$0xf]  ;;  %v6885_v11 = vld [vmem:[%s10303_s0 + $0x78c] sm:$0xf0]  ;;  %v5522_v17 = vor.u32 %v6853_v9, %v5521_v8  ;;  %2202 = vmatpush.bf16.msrb.mxu0 %v5266_v13  ;;  %v6703_v6 = vld [vmem:[%s10303_s0 + $0x1e4] sm:$0xf] }
  0x3e   : > { %v5249_v12 = vld [vmem:[%s10303_s0 + $0x460] sm:$0xf]  ;;  %v6785_v14 = vld [vmem:[%s10303_s0 + $0x46c] sm:$0xf0]  ;;  %v5650_v21 = vor.u32 %v6885_v11, %v5649_v10  ;;  %2215 = vmatpush.bf16.msrb.mxu1 %v5394_v16  ;;  %v4931_v8 = vld [vmem:[%s10303_s0 + $0x1f0] sm:$0xf0] }
  0x3f   : > { %v5377_v15 = vld [vmem:[%s10303_s0 + $0x560] sm:$0xf]  ;;  %v6817_v18 = vld [vmem:[%s10303_s0 + $0x56c] sm:$0xf0]  ;;  %v5250_v31 = vor.u32 %v6785_v14, %v5249_v12  ;;  %2228 = vmatpush.bf16.msrb.mxu2 %v5522_v17  ;;  %v6735_v9 = vld [vmem:[%s10303_s0 + $0x2e4] sm:$0xf]  ;;  %v4806_v17 = vor.u32 %v6671_v4, %v4803_v5 }
  0x40   : > { %v5505_v19 = vld [vmem:[%s10303_s0 + $0x660] sm:$0xf]  ;;  %v6849_v20 = vld [vmem:[%s10303_s0 + $0x66c] sm:$0xf0]  ;;  %v5378_v33 = vor.u32 %v6817_v18, %v5377_v15  ;;  %2241 = vmatpush.bf16.msrb.mxu3 %v5650_v21  ;;  %v5059_v10 = vld [vmem:[%s10303_s0 + $0x2f0] sm:$0xf0]  ;;  %v4934_v21 = vor.u32 %v6703_v6, %v4931_v8 }
  0x41   : > { %v587_v22 = vld [vmem:[%s7585_s20 + $0x10] sm:$0xff]  ;;  %v585_v23 = vld [vmem:[%s7585_s20] sm:$0xff]  ;;  %v5506_v34 = vor.u32 %v6849_v20, %v5505_v19  ;;  %2203 = vmatpush.bf16.msrb.mxu0 %v5250_v31  ;;  %v592_v20 = vld [vmem:[%s7585_s20 + $0x38] sm:$0xff] }
  0x42   : > { %v5633_v25 = vld [vmem:[%s10303_s0 + $0x760] sm:$0xf]  ;;  %v6881_v26 = vld [vmem:[%s10303_s0 + $0x76c] sm:$0xf0]  ;;  %v7596_v27 = vpack.c.bf16 %v587_v22, %v587_v22  ;;  %v7598_v28 = vpack.c.bf16 %v585_v23, %v585_v23  ;;  %2216 = vmatpush.bf16.msrb.mxu1 %v5378_v33  ;;  %v6767_v13 = vld [vmem:[%s10303_s0 + $0x3e4] sm:$0xf]  ;;  %v5062_v22 = vor.u32 %v6735_v9, %v5059_v10 }
  0x43   : > { %v5233_v35 = vld [vmem:[%s10303_s0 + $0x440] sm:$0xf]  ;;  %v6781_v36 = vld [vmem:[%s10303_s0 + $0x44c] sm:$0xf0]  ;;  %v5634_v38 = vor.u32 %v6881_v26, %v5633_v25  ;;  %2229 = vmatpush.bf16.msrb.mxu2 %v5506_v34  ;;  %v5187_v14 = vld [vmem:[%s10303_s0 + $0x3f0] sm:$0xf0] }
  0x44   : > { %v5361_v37 = vld [vmem:[%s10303_s0 + $0x540] sm:$0xf]  ;;  %v6813_v39 = vld [vmem:[%s10303_s0 + $0x54c] sm:$0xf0]  ;;  %2181 = vmatmul.bf16.vlgmr.msra.gmra.mxu2 %v7596_v27  ;;  %2155 = vmatmul.bf16.vlgmr.msra.gmra.mxu0 %v7598_v28  ;;  %v5234_v44 = vor.u32 %v6781_v36, %v5233_v35  ;;  %v6667_v18 = vld [vmem:[%s10303_s0 + $0xc4] sm:$0xf]  ;;  %v5190_v26 = vor.u32 %v6767_v13, %v5187_v14 }
  0x45   : > { %v5489_v40 = vld [vmem:[%s10303_s0 + $0x640] sm:$0xf]  ;;  %v6845_v41 = vld [vmem:[%s10303_s0 + $0x64c] sm:$0xf0]  ;;  %v5362_v45 = vor.u32 %v6813_v39, %v5361_v37  ;;  %2242 = vmatpush.bf16.msrb.mxu3 %v5634_v38  ;;  %v4787_v23 = vld [vmem:[%s10303_s0 + $0xd0] sm:$0xf0]  ;;  %v7737_v38 = vpack.c.bf16 %v592_v20, %v592_v20 }
  0x46   : > { %v5617_v42 = vld [vmem:[%s10303_s0 + $0x740] sm:$0xf]  ;;  %v6877_v43 = vld [vmem:[%s10303_s0 + $0x74c] sm:$0xf0]  ;;  %v5490_v46 = vor.u32 %v6845_v41, %v5489_v40  ;;  %2204 = vmatpush.bf16.msrb.mxu0 %v5234_v44  ;;  %v590_v25 = vld [vmem:[%s7585_s20 + $0x28] sm:$0xff]  ;;  %v4790_v39 = vor.u32 %v6667_v18, %v4787_v23  ;;  %v4918_v41 = vor.u32 %v6699_v24, %v4915_v30 }
  0x47   : > { %v5217_v47 = vld [vmem:[%s10303_s0 + $0x420] sm:$0xf]  ;;  %v6777_v48 = vld [vmem:[%s10303_s0 + $0x42c] sm:$0xf0]  ;;  %v5618_v50 = vor.u32 %v6877_v43, %v5617_v42  ;;  %2217 = vmatpush.bf16.msrb.mxu1 %v5362_v45  ;;  %v6731_v31 = vld [vmem:[%s10303_s0 + $0x2c4] sm:$0xf]  ;;  %v7739_v40 = vpack.c.bf16 %v590_v25, %v590_v25 }
  0x48   : > { %v5345_v49 = vld [vmem:[%s10303_s0 + $0x520] sm:$0xf]  ;;  %v6809_v51 = vld [vmem:[%s10303_s0 + $0x52c] sm:$0xf0]  ;;  %v5218_v56 = vor.u32 %v6777_v48, %v5217_v47  ;;  %2230 = vmatpush.bf16.msrb.mxu2 %v5490_v46  ;;  %v5043_v33 = vld [vmem:[%s10303_s0 + $0x2d0] sm:$0xf0] }
  0x49   : > { %v5473_v52 = vld [vmem:[%s10303_s0 + $0x620] sm:$0xf]  ;;  %v6841_v53 = vld [vmem:[%s10303_s0 + $0x62c] sm:$0xf0]  ;;  %v5346_v59 = vor.u32 %v6809_v51, %v5345_v49  ;;  %2243 = vmatpush.bf16.msrb.mxu3 %v5618_v50  ;;  %v6763_v35 = vld [vmem:[%s10303_s0 + $0x3c4] sm:$0xf]  ;;  %v5046_v42 = vor.u32 %v6731_v31, %v5043_v33 }
  0x4a   : > { %v5601_v54 = vld [vmem:[%s10303_s0 + $0x720] sm:$0xf]  ;;  %v6873_v55 = vld [vmem:[%s10303_s0 + $0x72c] sm:$0xf0]  ;;  %v5474_v60 = vor.u32 %v6841_v53, %v5473_v52  ;;  %2205 = vmatpush.bf16.msrb.mxu0 %v5218_v56  ;;  %v5171_v36 = vld [vmem:[%s10303_s0 + $0x3d0] sm:$0xf0] }
  0x4b   : > { %v5201_v57 = vld [vmem:[%s10303_s0 + $0x400] sm:$0xf]  ;;  %v6773_v58 = vld [vmem:[%s10303_s0 + $0x40c] sm:$0xf0]  ;;  %v5602_v0 = vor.u32 %v6873_v55, %v5601_v54  ;;  %2218 = vmatpush.bf16.msrb.mxu1 %v5346_v59  ;;  %v6663_v43 = vld [vmem:[%s10303_s0 + $0xa4] sm:$0xf]  ;;  %v5174_v46 = vor.u32 %v6763_v35, %v5171_v36 }
  0x4c   : > { %v5329_v61 = vld [vmem:[%s10303_s0 + $0x500] sm:$0xf]  ;;  %v6805_v62 = vld [vmem:[%s10303_s0 + $0x50c] sm:$0xf0]  ;;  %v5202_v7 = vor.u32 %v6773_v58, %v5201_v57  ;;  %2231 = vmatpush.bf16.msrb.mxu2 %v5474_v60  ;;  %v4771_v44 = vld [vmem:[%s10303_s0 + $0xb0] sm:$0xf0] }
  0x4d   : > { %v5457_v63 = vld [vmem:[%s10303_s0 + $0x600] sm:$0xf]  ;;  %v6837_v1 = vld [vmem:[%s10303_s0 + $0x60c] sm:$0xf0]  ;;  %v5330_v11 = vor.u32 %v6805_v62, %v5329_v61  ;;  %2244 = vmatpush.bf16.msrb.mxu3 %v5602_v0  ;;  %v6695_v45 = vld [vmem:[%s10303_s0 + $0x1a4] sm:$0xf]  ;;  %v4774_v52 = vor.u32 %v6663_v43, %v4771_v44 }
  0x4e   : > { %v5585_v2 = vld [vmem:[%s10303_s0 + $0x700] sm:$0xf]  ;;  %v6869_v3 = vld [vmem:[%s10303_s0 + $0x70c] sm:$0xf0]  ;;  %v5458_v12 = vor.u32 %v6837_v1, %v5457_v63  ;;  %2206 = vmatpush.bf16.msrb.mxu0 %v5202_v7  ;;  %v4899_v47 = vld [vmem:[%s10303_s0 + $0x1b0] sm:$0xf0] }
  0x4f   : > { %v591_v15 = vld [vmem:[%s7585_s20 + $0x30] sm:$0xff]  ;;  %v5586_v16 = vor.u32 %v6869_v3, %v5585_v2  ;;  %v589_v19 = vld [vmem:[%s7585_s20 + $0x20] sm:$0xff]  ;;  %2219 = vmatpush.bf16.msrb.mxu1 %v5330_v11  ;;  %v4902_v53 = vor.u32 %v6695_v45, %v4899_v47 }
  0x50   : > { %v7727_v34 = vpack.c.bf16 %v591_v15, %v591_v15  ;;  %2232 = vmatpush.bf16.msrb.mxu2 %v5458_v12  ;;  %v7735_v37 = vpack.c.bf16 %v589_v19, %v589_v19  ;;  %v6727_v48 = vld [vmem:[%s10303_s0 + $0x2a4] sm:$0xf]  ;;  %v5027_v49 = vld [vmem:[%s10303_s0 + $0x2b0] sm:$0xf0] }
  0x51   : > { %2245 = vmatpush.bf16.msrb.mxu3 %v5586_v16  ;;  %v6759_v50 = vld [vmem:[%s10303_s0 + $0x3a4] sm:$0xf]  ;;  %v5155_v51 = vld [vmem:[%s10303_s0 + $0x3b0] sm:$0xf0]  ;;  %v5030_v54 = vor.u32 %v6727_v48, %v5027_v49 }
  0x52   : > { %2251 = vmatpush.bf16.msra.mxu0 %v4806_v17  ;;  %2220 = vmatmul.bf16.vlgmr.msrb.gmra.mxu1 %v7739_v40  ;;  %v6659_v55 = vld [vmem:[%s10303_s0 + $0x84] sm:$0xf]  ;;  %v4755_v56 = vld [vmem:[%s10303_s0 + $0x90] sm:$0xf0]  ;;  %v5158_v58 = vor.u32 %v6759_v50, %v5155_v51 }
  0x53   : > { %2264 = vmatpush.bf16.msra.mxu1 %v4934_v21  ;;  %v6691_v57 = vld [vmem:[%s10303_s0 + $0x184] sm:$0xf]  ;;  %v4883_v59 = vld [vmem:[%s10303_s0 + $0x190] sm:$0xf0]  ;;  %v4758_v0 = vor.u32 %v6659_v55, %v4755_v56 }
  0x54   : > { %2277 = vmatpush.bf16.msra.mxu2 %v5062_v22  ;;  %2207 = vmatmul.bf16.vlgmr.msrb.gmra.mxu0 %v7735_v37  ;;  %v6723_v60 = vld [vmem:[%s10303_s0 + $0x284] sm:$0xf]  ;;  %v5011_v61 = vld [vmem:[%s10303_s0 + $0x290] sm:$0xf0]  ;;  %v4886_v1 = vor.u32 %v6691_v57, %v4883_v59 }
  0x55   : > { %2290 = vmatpush.bf16.msra.mxu3 %v5190_v26  ;;  %2233 = vmatmul.bf16.vlgmr.msrb.gmra.mxu2 %v7727_v34  ;;  %v6755_v62 = vld [vmem:[%s10303_s0 + $0x384] sm:$0xf]  ;;  %v5139_v63 = vld [vmem:[%s10303_s0 + $0x390] sm:$0xf0]  ;;  %v5014_v2 = vor.u32 %v6723_v60, %v5011_v61 }
  0x56   : > { %2246 = vmatmul.bf16.vlgmr.msrb.gmra.mxu3 %v7737_v38  ;;  %2252 = vmatpush.bf16.msra.mxu0 %v4790_v39  ;;  %v6655_v3 = vld [vmem:[%s10303_s0 + $0x64] sm:$0xf]  ;;  %v4739_v4 = vld [vmem:[%s10303_s0 + $0x70] sm:$0xf0]  ;;  %v5142_v6 = vor.u32 %v6755_v62, %v5139_v63 }
  0x57   : > { %2265 = vmatpush.bf16.msra.mxu1 %v4918_v41  ;;  %v6687_v5 = vld [vmem:[%s10303_s0 + $0x164] sm:$0xf]  ;;  %v4867_v7 = vld [vmem:[%s10303_s0 + $0x170] sm:$0xf0]  ;;  %v4742_v12 = vor.u32 %v6655_v3, %v4739_v4 }
  0x58   : > { %2278 = vmatpush.bf16.msra.mxu2 %v5046_v42  ;;  %v6719_v8 = vld [vmem:[%s10303_s0 + $0x264] sm:$0xf]  ;;  %v4995_v9 = vld [vmem:[%s10303_s0 + $0x270] sm:$0xf0]  ;;  %v4870_v13 = vor.u32 %v6687_v5, %v4867_v7 }
  0x59   : > { %2291 = vmatpush.bf16.msra.mxu3 %v5174_v46  ;;  %v6751_v10 = vld [vmem:[%s10303_s0 + $0x364] sm:$0xf]  ;;  %v5123_v11 = vld [vmem:[%s10303_s0 + $0x370] sm:$0xf0]  ;;  %v4998_v14 = vor.u32 %v6719_v8, %v4995_v9 }
  0x5a   : > { %2253 = vmatpush.bf16.msra.mxu0 %v4774_v52  ;;  %v6651_v15 = vld [vmem:[%s10303_s0 + $0x44] sm:$0xf]  ;;  %v4723_v16 = vld [vmem:[%s10303_s0 + $0x50] sm:$0xf0]  ;;  %v5126_v18 = vor.u32 %v6751_v10, %v5123_v11 }
  0x5b   : > { %2266 = vmatpush.bf16.msra.mxu1 %v4902_v53  ;;  %v6683_v17 = vld [vmem:[%s10303_s0 + $0x144] sm:$0xf]  ;;  %v4851_v19 = vld [vmem:[%s10303_s0 + $0x150] sm:$0xf0]  ;;  %v4726_v24 = vor.u32 %v6651_v15, %v4723_v16 }
  0x5c   : > { %2279 = vmatpush.bf16.msra.mxu2 %v5030_v54  ;;  %v6715_v20 = vld [vmem:[%s10303_s0 + $0x244] sm:$0xf]  ;;  %v4979_v21 = vld [vmem:[%s10303_s0 + $0x250] sm:$0xf0]  ;;  %v4854_v26 = vor.u32 %v6683_v17, %v4851_v19 }
  0x5d   : > { %2292 = vmatpush.bf16.msra.mxu3 %v5158_v58  ;;  %v6747_v22 = vld [vmem:[%s10303_s0 + $0x344] sm:$0xf]  ;;  %v5107_v23 = vld [vmem:[%s10303_s0 + $0x350] sm:$0xf0]  ;;  %v4982_v30 = vor.u32 %v6715_v20, %v4979_v21 }
  0x5e   : > { %2254 = vmatpush.bf16.msra.mxu0 %v4758_v0  ;;  %v6647_v25 = vld [vmem:[%s10303_s0 + $0x24] sm:$0xf]  ;;  %v4707_v31 = vld [vmem:[%s10303_s0 + $0x30] sm:$0xf0]  ;;  %v5110_v36 = vor.u32 %v6747_v22, %v5107_v23 }
  0x5f   : > { %2267 = vmatpush.bf16.msra.mxu1 %v4886_v1  ;;  %v6679_v33 = vld [vmem:[%s10303_s0 + $0x124] sm:$0xf]  ;;  %v4835_v35 = vld [vmem:[%s10303_s0 + $0x130] sm:$0xf0]  ;;  %v4710_v46 = vor.u32 %v6647_v25, %v4707_v31 }
  0x60   : > { %2280 = vmatpush.bf16.msra.mxu2 %v5014_v2  ;;  %v6711_v39 = vld [vmem:[%s10303_s0 + $0x224] sm:$0xf]  ;;  %v4963_v41 = vld [vmem:[%s10303_s0 + $0x230] sm:$0xf0]  ;;  %v4838_v50 = vor.u32 %v6679_v33, %v4835_v35 }
  0x61   : > { %2293 = vmatpush.bf16.msra.mxu3 %v5142_v6  ;;  %v6743_v42 = vld [vmem:[%s10303_s0 + $0x324] sm:$0xf]  ;;  %v5091_v43 = vld [vmem:[%s10303_s0 + $0x330] sm:$0xf0]  ;;  %v4966_v51 = vor.u32 %v6711_v39, %v4963_v41 }
  0x62   : > { %2255 = vmatpush.bf16.msra.mxu0 %v4742_v12  ;;  %v6643_v44 = vld [vmem:[%s10303_s0 + $0x4] sm:$0xf]  ;;  %v4691_v45 = vld [vmem:[%s10303_s0 + $0x10] sm:$0xf0]  ;;  %v5094_v55 = vor.u32 %v6743_v42, %v5091_v43 }
  0x63   : > { %2268 = vmatpush.bf16.msra.mxu1 %v4870_v13  ;;  %v6675_v47 = vld [vmem:[%s10303_s0 + $0x104] sm:$0xf]  ;;  %v4819_v48 = vld [vmem:[%s10303_s0 + $0x110] sm:$0xf0]  ;;  %v4694_v60 = vor.u32 %v6643_v44, %v4691_v45 }
  0x64   : > { %2281 = vmatpush.bf16.msra.mxu2 %v4998_v14  ;;  %v6707_v49 = vld [vmem:[%s10303_s0 + $0x204] sm:$0xf]  ;;  %v4947_v52 = vld [vmem:[%s10303_s0 + $0x210] sm:$0xf0]  ;;  %v4822_v63 = vor.u32 %v6675_v47, %v4819_v48 }
  0x65   : > { %2294 = vmatpush.bf16.msra.mxu3 %v5126_v18  ;;  %v6739_v53 = vld [vmem:[%s10303_s0 + $0x304] sm:$0xf]  ;;  %v5075_v54 = vld [vmem:[%s10303_s0 + $0x310] sm:$0xf0]  ;;  %v4950_v0 = vor.u32 %v6707_v49, %v4947_v52 }
  0x66   : > { %2256 = vmatpush.bf16.msra.mxu0 %v4726_v24  ;;  %v6799_v56 = vld [vmem:[%s10303_s0 + $0x4e4] sm:$0xf]  ;;  %v5315_v57 = vld [vmem:[%s10303_s0 + $0x4f0] sm:$0xf0]  ;;  %v5078_v3 = vor.u32 %v6739_v53, %v5075_v54 }
  0x67   : > { %2269 = vmatpush.bf16.msra.mxu1 %v4854_v26  ;;  %v6831_v58 = vld [vmem:[%s10303_s0 + $0x5e4] sm:$0xf]  ;;  %v5443_v59 = vld [vmem:[%s10303_s0 + $0x5f0] sm:$0xf0]  ;;  %v5318_v4 = vor.u32 %v6799_v56, %v5315_v57 }
  0x68   : > { %2282 = vmatpush.bf16.msra.mxu2 %v4982_v30  ;;  %v6863_v61 = vld [vmem:[%s10303_s0 + $0x6e4] sm:$0xf]  ;;  %v5571_v62 = vld [vmem:[%s10303_s0 + $0x6f0] sm:$0xf0]  ;;  %v5446_v5 = vor.u32 %v6831_v58, %v5443_v59 }
  0x69   : > { %2295 = vmatpush.bf16.msra.mxu3 %v5110_v36  ;;  %v6895_v1 = vld [vmem:[%s10303_s0 + $0x7e4] sm:$0xf]  ;;  %v5699_v2 = vld [vmem:[%s10303_s0 + $0x7f0] sm:$0xf0]  ;;  %v5574_v6 = vor.u32 %v6863_v61, %v5571_v62 }
  0x6a   : > { %2257 = vmatpush.bf16.msra.mxu0 %v4710_v46  ;;  %v6795_v7 = vld [vmem:[%s10303_s0 + $0x4c4] sm:$0xf]  ;;  %v5299_v8 = vld [vmem:[%s10303_s0 + $0x4d0] sm:$0xf0]  ;;  %v5702_v10 = vor.u32 %v6895_v1, %v5699_v2 }
  0x6b   : > { %2270 = vmatpush.bf16.msra.mxu1 %v4838_v50  ;;  %v6827_v9 = vld [vmem:[%s10303_s0 + $0x5c4] sm:$0xf]  ;;  %v5427_v11 = vld [vmem:[%s10303_s0 + $0x5d0] sm:$0xf0]  ;;  %v5302_v16 = vor.u32 %v6795_v7, %v5299_v8 }
  0x6c   : > { %2283 = vmatpush.bf16.msra.mxu2 %v4966_v51  ;;  %v6859_v12 = vld [vmem:[%s10303_s0 + $0x6c4] sm:$0xf]  ;;  %v5555_v13 = vld [vmem:[%s10303_s0 + $0x6d0] sm:$0xf0]  ;;  %v5430_v17 = vor.u32 %v6827_v9, %v5427_v11 }
  0x6d   : > { %2296 = vmatpush.bf16.msra.mxu3 %v5094_v55  ;;  %v6891_v14 = vld [vmem:[%s10303_s0 + $0x7c4] sm:$0xf]  ;;  %v5683_v15 = vld [vmem:[%s10303_s0 + $0x7d0] sm:$0xf0]  ;;  %v5558_v18 = vor.u32 %v6859_v12, %v5555_v13 }
  0x6e   : > { %2258 = vmatpush.bf16.msra.mxu0 %v4694_v60  ;;  %v6791_v19 = vld [vmem:[%s10303_s0 + $0x4a4] sm:$0xf]  ;;  %v5283_v20 = vld [vmem:[%s10303_s0 + $0x4b0] sm:$0xf0]  ;;  %v5686_v22 = vor.u32 %v6891_v14, %v5683_v15 }
  0x6f   : > { %2271 = vmatpush.bf16.msra.mxu1 %v4822_v63  ;;  %v6823_v21 = vld [vmem:[%s10303_s0 + $0x5a4] sm:$0xf]  ;;  %v5411_v23 = vld [vmem:[%s10303_s0 + $0x5b0] sm:$0xf0]  ;;  %v5286_v31 = vor.u32 %v6791_v19, %v5283_v20 }
  0x70   : > { %2284 = vmatpush.bf16.msra.mxu2 %v4950_v0  ;;  %v6855_v24 = vld [vmem:[%s10303_s0 + $0x6a4] sm:$0xf]  ;;  %v5539_v25 = vld [vmem:[%s10303_s0 + $0x6b0] sm:$0xf0]  ;;  %v5414_v33 = vor.u32 %v6823_v21, %v5411_v23 }
  0x71   : > { %2297 = vmatpush.bf16.msra.mxu3 %v5078_v3  ;;  %v6887_v26 = vld [vmem:[%s10303_s0 + $0x7a4] sm:$0xf]  ;;  %v5667_v30 = vld [vmem:[%s10303_s0 + $0x7b0] sm:$0xf0]  ;;  %2259 = vmatmul.bf16.vlgmr.msra.gmra.mxu0 %v7598_v28  ;;  %v5542_v35 = vor.u32 %v6855_v24, %v5539_v25 }
  0x72   : > { %2303 = vmatpush.bf16.msrb.mxu0 %v5318_v4  ;;  %2272 = vmatmul.bf16.vlgmr.msra.gmra.mxu1 %v7603_v32  ;;  %v6787_v36 = vld [vmem:[%s10303_s0 + $0x484] sm:$0xf]  ;;  %v5267_v39 = vld [vmem:[%s10303_s0 + $0x490] sm:$0xf0]  ;;  %v5670_v42 = vor.u32 %v6887_v26, %v5667_v30 }
  0x73   : > { %2316 = vmatpush.bf16.msrb.mxu1 %v5446_v5  ;;  %2285 = vmatmul.bf16.vlgmr.msra.gmra.mxu2 %v7596_v27  ;;  %v6819_v41 = vld [vmem:[%s10303_s0 + $0x584] sm:$0xf]  ;;  %v5395_v43 = vld [vmem:[%s10303_s0 + $0x590] sm:$0xf0]  ;;  %v5270_v48 = vor.u32 %v6787_v36, %v5267_v39  ;;  %v4809_v39 = vld [vmem:[%s10303_s0 + $0xe8] sm:$0xf] }
  0x74   : > { %2329 = vmatpush.bf16.msrb.mxu2 %v5574_v6  ;;  %2298 = vmatmul.bf16.vlgmr.msra.gmra.mxu3 %v7600_v29  ;;  %v6851_v44 = vld [vmem:[%s10303_s0 + $0x684] sm:$0xf]  ;;  %v5523_v45 = vld [vmem:[%s10303_s0 + $0x690] sm:$0xf0]  ;;  %v5398_v49 = vor.u32 %v6819_v41, %v5395_v43  ;;  %v6674_v41 = vld [vmem:[%s10303_s0 + $0xf4] sm:$0xf0] }
  0x75   : > { %2342 = vmatpush.bf16.msrb.mxu3 %v5702_v10  ;;  %v6883_v46 = vld [vmem:[%s10303_s0 + $0x784] sm:$0xf]  ;;  %v5651_v47 = vld [vmem:[%s10303_s0 + $0x790] sm:$0xf0]  ;;  %v5526_v50 = vor.u32 %v6851_v44, %v5523_v45  ;;  %v6706_v44 = vld [vmem:[%s10303_s0 + $0x1f4] sm:$0xf0] }
  0x76   : > { %2304 = vmatpush.bf16.msrb.mxu0 %v5302_v16  ;;  %v6783_v51 = vld [vmem:[%s10303_s0 + $0x464] sm:$0xf]  ;;  %v5251_v52 = vld [vmem:[%s10303_s0 + $0x470] sm:$0xf0]  ;;  %v5654_v54 = vor.u32 %v6883_v46, %v5651_v47  ;;  %v5065_v45 = vld [vmem:[%s10303_s0 + $0x2e8] sm:$0xf] }
  0x77   : > { %2317 = vmatpush.bf16.msrb.mxu1 %v5430_v17  ;;  %v6815_v53 = vld [vmem:[%s10303_s0 + $0x564] sm:$0xf]  ;;  %v5379_v55 = vld [vmem:[%s10303_s0 + $0x570] sm:$0xf0]  ;;  %v5254_v60 = vor.u32 %v6783_v51, %v5251_v52  ;;  %v6738_v46 = vld [vmem:[%s10303_s0 + $0x2f4] sm:$0xf0]  ;;  %v4810_v52 = vor.u32 %v6674_v41, %v4809_v39 }
  0x78   : > { %2330 = vmatpush.bf16.msrb.mxu2 %v5558_v18  ;;  %v6847_v56 = vld [vmem:[%s10303_s0 + $0x664] sm:$0xf]  ;;  %v5507_v57 = vld [vmem:[%s10303_s0 + $0x670] sm:$0xf0]  ;;  %v5382_v61 = vor.u32 %v6815_v53, %v5379_v55  ;;  %v4793_v55 = vld [vmem:[%s10303_s0 + $0xc8] sm:$0xf] }
  0x79   : > { %2343 = vmatpush.bf16.msrb.mxu3 %v5686_v22  ;;  %v6879_v58 = vld [vmem:[%s10303_s0 + $0x764] sm:$0xf]  ;;  %v5635_v59 = vld [vmem:[%s10303_s0 + $0x770] sm:$0xf0]  ;;  %v5510_v62 = vor.u32 %v6847_v56, %v5507_v57  ;;  %v6670_v56 = vld [vmem:[%s10303_s0 + $0xd4] sm:$0xf0] }
  0x7a   : > { %2305 = vmatpush.bf16.msrb.mxu0 %v5286_v31  ;;  %v6779_v63 = vld [vmem:[%s10303_s0 + $0x444] sm:$0xf]  ;;  %v5235_v0 = vld [vmem:[%s10303_s0 + $0x450] sm:$0xf0]  ;;  %v5638_v2 = vor.u32 %v6879_v58, %v5635_v59  ;;  %v4921_v57 = vld [vmem:[%s10303_s0 + $0x1c8] sm:$0xf] }
  0x7b   : > { %2318 = vmatpush.bf16.msrb.mxu1 %v5414_v33  ;;  %v6811_v1 = vld [vmem:[%s10303_s0 + $0x544] sm:$0xf]  ;;  %v5363_v3 = vld [vmem:[%s10303_s0 + $0x550] sm:$0xf0]  ;;  %v5238_v8 = vor.u32 %v6779_v63, %v5235_v0  ;;  %v6702_v59 = vld [vmem:[%s10303_s0 + $0x1d4] sm:$0xf0]  ;;  %v4794_v0 = vor.u32 %v6670_v56, %v4793_v55 }
  0x7c   : > { %2331 = vmatpush.bf16.msrb.mxu2 %v5542_v35  ;;  %v6843_v4 = vld [vmem:[%s10303_s0 + $0x644] sm:$0xf]  ;;  %v5491_v5 = vld [vmem:[%s10303_s0 + $0x650] sm:$0xf0]  ;;  %v5366_v9 = vor.u32 %v6811_v1, %v5363_v3  ;;  %v6766_v63 = vld [vmem:[%s10303_s0 + $0x3d4] sm:$0xf0]  ;;  %v4922_v1 = vor.u32 %v6702_v59, %v4921_v57 }
  0x7d   : > { %2344 = vmatpush.bf16.msrb.mxu3 %v5670_v42  ;;  %v6875_v6 = vld [vmem:[%s10303_s0 + $0x744] sm:$0xf]  ;;  %v5619_v7 = vld [vmem:[%s10303_s0 + $0x750] sm:$0xf0]  ;;  %v5494_v10 = vor.u32 %v6843_v4, %v5491_v5  ;;  %v4937_v42 = vld [vmem:[%s10303_s0 + $0x1e8] sm:$0xf] }
  0x7e   : > { %2306 = vmatpush.bf16.msrb.mxu0 %v5270_v48  ;;  %v6775_v11 = vld [vmem:[%s10303_s0 + $0x424] sm:$0xf]  ;;  %v5219_v12 = vld [vmem:[%s10303_s0 + $0x430] sm:$0xf0]  ;;  %v5622_v14 = vor.u32 %v6875_v6, %v5619_v7  ;;  %v4938_v53 = vor.u32 %v6706_v44, %v4937_v42  ;;  %v4777_v3 = vld [vmem:[%s10303_s0 + $0xa8] sm:$0xf] }
  0x7f   : > { %2319 = vmatpush.bf16.msrb.mxu1 %v5398_v49  ;;  %v6807_v13 = vld [vmem:[%s10303_s0 + $0x524] sm:$0xf]  ;;  %v5347_v15 = vld [vmem:[%s10303_s0 + $0x530] sm:$0xf0]  ;;  %v5222_v20 = vor.u32 %v6775_v11, %v5219_v12  ;;  %v5193_v49 = vld [vmem:[%s10303_s0 + $0x3e8] sm:$0xf] }
  0x80   : > { %2332 = vmatpush.bf16.msrb.mxu2 %v5526_v50  ;;  %v6839_v16 = vld [vmem:[%s10303_s0 + $0x624] sm:$0xf]  ;;  %v5475_v17 = vld [vmem:[%s10303_s0 + $0x630] sm:$0xf0]  ;;  %v5350_v23 = vor.u32 %v6807_v13, %v5347_v15  ;;  %v6770_v50 = vld [vmem:[%s10303_s0 + $0x3f4] sm:$0xf0] }
  0x81   : > { %2345 = vmatpush.bf16.msrb.mxu3 %v5654_v54  ;;  %v6871_v18 = vld [vmem:[%s10303_s0 + $0x724] sm:$0xf]  ;;  %v5603_v19 = vld [vmem:[%s10303_s0 + $0x730] sm:$0xf0]  ;;  %v5478_v24 = vor.u32 %v6839_v16, %v5475_v17  ;;  %v5066_v54 = vor.u32 %v6738_v46, %v5065_v45  ;;  %v5194_v58 = vor.u32 %v6770_v50, %v5193_v49  ;;  %v6666_v4 = vld [vmem:[%s10303_s0 + $0xb4] sm:$0xf0] }
  0x82   : > { %2307 = vmatpush.bf16.msrb.mxu0 %v5254_v60  ;;  %v6771_v21 = vld [vmem:[%s10303_s0 + $0x404] sm:$0xf]  ;;  %v5203_v22 = vld [vmem:[%s10303_s0 + $0x410] sm:$0xf0]  ;;  %v5606_v31 = vor.u32 %v6871_v18, %v5603_v19  ;;  %v5049_v60 = vld [vmem:[%s10303_s0 + $0x2c8] sm:$0xf]  ;;  %v4778_v12 = vor.u32 %v6666_v4, %v4777_v3 }
  0x83   : > { %2320 = vmatpush.bf16.msrb.mxu1 %v5382_v61  ;;  %v6803_v25 = vld [vmem:[%s10303_s0 + $0x504] sm:$0xf]  ;;  %v5331_v26 = vld [vmem:[%s10303_s0 + $0x510] sm:$0xf0]  ;;  %v5206_v43 = vor.u32 %v6771_v21, %v5203_v22  ;;  %v6734_v61 = vld [vmem:[%s10303_s0 + $0x2d4] sm:$0xf0] }
  0x84   : > { %2333 = vmatpush.bf16.msrb.mxu2 %v5510_v62  ;;  %v6835_v30 = vld [vmem:[%s10303_s0 + $0x604] sm:$0xf]  ;;  %v5459_v33 = vld [vmem:[%s10303_s0 + $0x610] sm:$0xf0]  ;;  %v5334_v47 = vor.u32 %v6803_v25, %v5331_v26  ;;  %v5177_v62 = vld [vmem:[%s10303_s0 + $0x3c8] sm:$0xf] }
  0x85   : > { %2346 = vmatpush.bf16.msrb.mxu3 %v5638_v2  ;;  %v6867_v35 = vld [vmem:[%s10303_s0 + $0x704] sm:$0xf]  ;;  %v5587_v36 = vld [vmem:[%s10303_s0 + $0x710] sm:$0xf0]  ;;  %v5462_v48 = vor.u32 %v6835_v30, %v5459_v33  ;;  %v5050_v2 = vor.u32 %v6734_v61, %v5049_v60  ;;  %v4905_v5 = vld [vmem:[%s10303_s0 + $0x1a8] sm:$0xf]  ;;  %v5178_v6 = vor.u32 %v6766_v63, %v5177_v62 }
  0x86   : > { %2308 = vmatpush.bf16.msrb.mxu0 %v5238_v8  ;;  %v5590_v51 = vor.u32 %v6867_v35, %v5587_v36  ;;  %v6698_v7 = vld [vmem:[%s10303_s0 + $0x1b4] sm:$0xf0]  ;;  %v5033_v8 = vld [vmem:[%s10303_s0 + $0x2a8] sm:$0xf] }
  0x87   : > { %2321 = vmatpush.bf16.msrb.mxu1 %v5366_v9  ;;  %v6730_v9 = vld [vmem:[%s10303_s0 + $0x2b4] sm:$0xf0]  ;;  %v4906_v13 = vor.u32 %v6698_v7, %v4905_v5  ;;  %v4761_v15 = vld [vmem:[%s10303_s0 + $0x88] sm:$0xf] }
  0x88   : > { %2334 = vmatpush.bf16.msrb.mxu2 %v5494_v10  ;;  %v5161_v10 = vld [vmem:[%s10303_s0 + $0x3a8] sm:$0xf]  ;;  %v6762_v11 = vld [vmem:[%s10303_s0 + $0x3b4] sm:$0xf0] }
  0x89   : > { %2347 = vmatpush.bf16.msrb.mxu3 %v5622_v14  ;;  %v5034_v14 = vor.u32 %v6730_v9, %v5033_v8  ;;  %v6662_v16 = vld [vmem:[%s10303_s0 + $0x94] sm:$0xf0]  ;;  %v4889_v17 = vld [vmem:[%s10303_s0 + $0x188] sm:$0xf]  ;;  %v5162_v18 = vor.u32 %v6762_v11, %v5161_v10 }
  0x8a   : > { %2309 = vmatpush.bf16.msrb.mxu0 %v5222_v20  ;;  %v6694_v19 = vld [vmem:[%s10303_s0 + $0x194] sm:$0xf0]  ;;  %v5017_v20 = vld [vmem:[%s10303_s0 + $0x288] sm:$0xf] }
  0x8b   : > { %2322 = vmatpush.bf16.msrb.mxu1 %v5350_v23  ;;  %v6726_v21 = vld [vmem:[%s10303_s0 + $0x294] sm:$0xf0]  ;;  %v5145_v22 = vld [vmem:[%s10303_s0 + $0x388] sm:$0xf]  ;;  %v4890_v25 = vor.u32 %v6694_v19, %v4889_v17 }
  0x8c   : > { %2335 = vmatpush.bf16.msrb.mxu2 %v5478_v24  ;;  %v6758_v23 = vld [vmem:[%s10303_s0 + $0x394] sm:$0xf0]  ;;  %v4762_v24 = vor.u32 %v6662_v16, %v4761_v15  ;;  %v5018_v26 = vor.u32 %v6726_v21, %v5017_v20  ;;  %v4745_v30 = vld [vmem:[%s10303_s0 + $0x68] sm:$0xf] }
  0x8d   : > { %2348 = vmatpush.bf16.msrb.mxu3 %v5606_v31  ;;  %v6658_v31 = vld [vmem:[%s10303_s0 + $0x74] sm:$0xf0]  ;;  %v4873_v33 = vld [vmem:[%s10303_s0 + $0x168] sm:$0xf]  ;;  %v5146_v35 = vor.u32 %v6758_v23, %v5145_v22 }
  0x8e   : > { %2310 = vmatpush.bf16.msrb.mxu0 %v5206_v43  ;;  %v6690_v36 = vld [vmem:[%s10303_s0 + $0x174] sm:$0xf0]  ;;  %v5001_v39 = vld [vmem:[%s10303_s0 + $0x268] sm:$0xf]  ;;  %v4746_v44 = vor.u32 %v6658_v31, %v4745_v30 }
  0x8f   : > { %2323 = vmatpush.bf16.msrb.mxu1 %v5334_v47  ;;  %v6722_v41 = vld [vmem:[%s10303_s0 + $0x274] sm:$0xf0]  ;;  %v5129_v42 = vld [vmem:[%s10303_s0 + $0x368] sm:$0xf]  ;;  %v4874_v45 = vor.u32 %v6690_v36, %v4873_v33 }
  0x90   : > { %2336 = vmatpush.bf16.msrb.mxu2 %v5462_v48  ;;  %v6754_v43 = vld [vmem:[%s10303_s0 + $0x374] sm:$0xf0]  ;;  %v5002_v46 = vor.u32 %v6722_v41, %v5001_v39  ;;  %v4729_v47 = vld [vmem:[%s10303_s0 + $0x48] sm:$0xf] }
  0x91   : > { %2349 = vmatpush.bf16.msrb.mxu3 %v5590_v51  ;;  %2311 = vmatmul.bf16.vlgmr.msrb.gmra.mxu0 %v7735_v37  ;;  %v6654_v48 = vld [vmem:[%s10303_s0 + $0x54] sm:$0xf0]  ;;  %v4857_v49 = vld [vmem:[%s10303_s0 + $0x148] sm:$0xf]  ;;  %v5130_v50 = vor.u32 %v6754_v43, %v5129_v42 }
  0x92   : > { %2355 = vmatpush.bf16.msra.mxu0 %v4810_v52  ;;  %2324 = vmatmul.bf16.vlgmr.msrb.gmra.mxu1 %v7739_v40  ;;  %v6686_v51 = vld [vmem:[%s10303_s0 + $0x154] sm:$0xf0]  ;;  %v4985_v52 = vld [vmem:[%s10303_s0 + $0x248] sm:$0xf]  ;;  %v4730_v56 = vor.u32 %v6654_v48, %v4729_v47 }
  0x93   : > { %2368 = vmatpush.bf16.msra.mxu1 %v4938_v53  ;;  %2337 = vmatmul.bf16.vlgmr.msrb.gmra.mxu2 %v7727_v34  ;;  %v6718_v53 = vld [vmem:[%s10303_s0 + $0x254] sm:$0xf0]  ;;  %v4858_v57 = vor.u32 %v6686_v51, %v4857_v49  ;;  %v4713_v59 = vld [vmem:[%s10303_s0 + $0x28] sm:$0xf] }
  0x94   : > { %2381 = vmatpush.bf16.msra.mxu2 %v5066_v54  ;;  %2350 = vmatmul.bf16.vlgmr.msrb.gmra.mxu3 %v7737_v38  ;;  %v5113_v54 = vld [vmem:[%s10303_s0 + $0x348] sm:$0xf]  ;;  %v6750_v55 = vld [vmem:[%s10303_s0 + $0x354] sm:$0xf0] }
  0x95   : > { %2394 = vmatpush.bf16.msra.mxu3 %v5194_v58  ;;  %v4986_v58 = vor.u32 %v6718_v53, %v4985_v52  ;;  %v6650_v60 = vld [vmem:[%s10303_s0 + $0x34] sm:$0xf0]  ;;  %v4841_v61 = vld [vmem:[%s10303_s0 + $0x128] sm:$0xf]  ;;  %v5114_v62 = vor.u32 %v6750_v55, %v5113_v54 }
  0x96   : > { %2356 = vmatpush.bf16.msra.mxu0 %v4794_v0  ;;  %v6682_v63 = vld [vmem:[%s10303_s0 + $0x134] sm:$0xf0]  ;;  %v4969_v0 = vld [vmem:[%s10303_s0 + $0x228] sm:$0xf]  ;;  %v4714_v4 = vor.u32 %v6650_v60, %v4713_v59 }
  0x97   : > { %2369 = vmatpush.bf16.msra.mxu1 %v4922_v1  ;;  %v6714_v1 = vld [vmem:[%s10303_s0 + $0x234] sm:$0xf0]  ;;  %v4697_v5 = vld [vmem:[%s10303_s0 + $0x8] sm:$0xf]  ;;  %v4842_v7 = vor.u32 %v6682_v63, %v4841_v61 }
  0x98   : > { %2382 = vmatpush.bf16.msra.mxu2 %v5050_v2  ;;  %v5097_v2 = vld [vmem:[%s10303_s0 + $0x328] sm:$0xf]  ;;  %v6746_v3 = vld [vmem:[%s10303_s0 + $0x334] sm:$0xf0]  ;;  %v4970_v8 = vor.u32 %v6714_v1, %v4969_v0 }
  0x99   : > { %2395 = vmatpush.bf16.msra.mxu3 %v5178_v6  ;;  %v6646_v6 = vld [vmem:[%s10303_s0 + $0x14] sm:$0xf0]  ;;  %v4825_v9 = vld [vmem:[%s10303_s0 + $0x108] sm:$0xf] }
  0x9a   : > { %2357 = vmatpush.bf16.msra.mxu0 %v4778_v12  ;;  %v6678_v10 = vld [vmem:[%s10303_s0 + $0x114] sm:$0xf0]  ;;  %v4953_v11 = vld [vmem:[%s10303_s0 + $0x208] sm:$0xf]  ;;  %v5098_v12 = vor.u32 %v6746_v3, %v5097_v2  ;;  %v4698_v19 = vor.u32 %v6646_v6, %v4697_v5 }
  0x9b   : > { %2370 = vmatpush.bf16.msra.mxu1 %v4906_v13  ;;  %v6710_v13 = vld [vmem:[%s10303_s0 + $0x214] sm:$0xf0]  ;;  %v5321_v16 = vld [vmem:[%s10303_s0 + $0x4e8] sm:$0xf]  ;;  %v4826_v23 = vor.u32 %v6678_v10, %v4825_v9 }
  0x9c   : > { %2383 = vmatpush.bf16.msra.mxu2 %v5034_v14  ;;  %v5081_v14 = vld [vmem:[%s10303_s0 + $0x308] sm:$0xf]  ;;  %v6742_v15 = vld [vmem:[%s10303_s0 + $0x314] sm:$0xf0] }
  0x9d   : > { %2396 = vmatpush.bf16.msra.mxu3 %v5162_v18  ;;  %v6802_v17 = vld [vmem:[%s10303_s0 + $0x4f4] sm:$0xf0]  ;;  %v5449_v18 = vld [vmem:[%s10303_s0 + $0x5e8] sm:$0xf]  ;;  %v5082_v30 = vor.u32 %v6742_v15, %v5081_v14 }
  0x9e   : > { %2358 = vmatpush.bf16.msra.mxu0 %v4762_v24  ;;  %v6834_v20 = vld [vmem:[%s10303_s0 + $0x5f4] sm:$0xf0]  ;;  %v5577_v21 = vld [vmem:[%s10303_s0 + $0x6e8] sm:$0xf]  ;;  %v4954_v24 = vor.u32 %v6710_v13, %v4953_v11  ;;  %v5322_v31 = vor.u32 %v6802_v17, %v5321_v16 }
  0x9f   : > { %2371 = vmatpush.bf16.msra.mxu1 %v4890_v25  ;;  %v6866_v22 = vld [vmem:[%s10303_s0 + $0x6f4] sm:$0xf0]  ;;  %v5705_v25 = vld [vmem:[%s10303_s0 + $0x7e8] sm:$0xf]  ;;  %v5450_v33 = vor.u32 %v6834_v20, %v5449_v18 }
  0xa0   : > { %2384 = vmatpush.bf16.msra.mxu2 %v5018_v26  ;;  %v6898_v26 = vld [vmem:[%s10303_s0 + $0x7f4] sm:$0xf0]  ;;  %v5305_v36 = vld [vmem:[%s10303_s0 + $0x4c8] sm:$0xf] }
  0xa1   : > { %2397 = vmatpush.bf16.msra.mxu3 %v5146_v35  ;;  %v5578_v35 = vor.u32 %v6866_v22, %v5577_v21  ;;  %v6798_v39 = vld [vmem:[%s10303_s0 + $0x4d4] sm:$0xf0]  ;;  %v5433_v41 = vld [vmem:[%s10303_s0 + $0x5c8] sm:$0xf]  ;;  %v5706_v42 = vor.u32 %v6898_v26, %v5705_v25 }
  0xa2   : > { %2359 = vmatpush.bf16.msra.mxu0 %v4746_v44  ;;  %v6830_v43 = vld [vmem:[%s10303_s0 + $0x5d4] sm:$0xf0]  ;;  %v5561_v44 = vld [vmem:[%s10303_s0 + $0x6c8] sm:$0xf]  ;;  %v5306_v48 = vor.u32 %v6798_v39, %v5305_v36 }
  0xa3   : > { %2372 = vmatpush.bf16.msra.mxu1 %v4874_v45  ;;  %v6862_v45 = vld [vmem:[%s10303_s0 + $0x6d4] sm:$0xf0]  ;;  %v5434_v49 = vor.u32 %v6830_v43, %v5433_v41  ;;  %v5289_v51 = vld [vmem:[%s10303_s0 + $0x4a8] sm:$0xf] }
  0xa4   : > { %2385 = vmatpush.bf16.msra.mxu2 %v5002_v46  ;;  %v5689_v46 = vld [vmem:[%s10303_s0 + $0x7c8] sm:$0xf]  ;;  %v6894_v47 = vld [vmem:[%s10303_s0 + $0x7d4] sm:$0xf0] }
  0xa5   : > { %2398 = vmatpush.bf16.msra.mxu3 %v5130_v50  ;;  %v5562_v50 = vor.u32 %v6862_v45, %v5561_v44  ;;  %v6794_v52 = vld [vmem:[%s10303_s0 + $0x4b4] sm:$0xf0]  ;;  %v5417_v53 = vld [vmem:[%s10303_s0 + $0x5a8] sm:$0xf]  ;;  %v5690_v54 = vor.u32 %v6894_v47, %v5689_v46 }
  0xa6   : > { %2360 = vmatpush.bf16.msra.mxu0 %v4730_v56  ;;  %v6826_v55 = vld [vmem:[%s10303_s0 + $0x5b4] sm:$0xf0]  ;;  %v5545_v56 = vld [vmem:[%s10303_s0 + $0x6a8] sm:$0xf]  ;;  %v5290_v60 = vor.u32 %v6794_v52, %v5289_v51 }
  0xa7   : > { %2373 = vmatpush.bf16.msra.mxu1 %v4858_v57  ;;  %v6858_v57 = vld [vmem:[%s10303_s0 + $0x6b4] sm:$0xf0]  ;;  %v5418_v61 = vor.u32 %v6826_v55, %v5417_v53  ;;  %v5273_v63 = vld [vmem:[%s10303_s0 + $0x488] sm:$0xf] }
  0xa8   : > { %2386 = vmatpush.bf16.msra.mxu2 %v4986_v58  ;;  %v5673_v58 = vld [vmem:[%s10303_s0 + $0x7a8] sm:$0xf]  ;;  %v6890_v59 = vld [vmem:[%s10303_s0 + $0x7b4] sm:$0xf0] }
  0xa9   : > { %2399 = vmatpush.bf16.msra.mxu3 %v5114_v62  ;;  %v5546_v62 = vor.u32 %v6858_v57, %v5545_v56  ;;  %v6790_v0 = vld [vmem:[%s10303_s0 + $0x494] sm:$0xf0]  ;;  %v5401_v1 = vld [vmem:[%s10303_s0 + $0x588] sm:$0xf]  ;;  %v5674_v2 = vor.u32 %v6890_v59, %v5673_v58 }
  0xaa   : > { %2361 = vmatpush.bf16.msra.mxu0 %v4714_v4  ;;  %v6822_v3 = vld [vmem:[%s10303_s0 + $0x594] sm:$0xf0]  ;;  %v5529_v4 = vld [vmem:[%s10303_s0 + $0x688] sm:$0xf] }
  0xab   : > { %2374 = vmatpush.bf16.msra.mxu1 %v4842_v7  ;;  %v6854_v5 = vld [vmem:[%s10303_s0 + $0x694] sm:$0xf0]  ;;  %v5657_v6 = vld [vmem:[%s10303_s0 + $0x788] sm:$0xf]  ;;  %v5402_v9 = vor.u32 %v6822_v3, %v5401_v1 }
  0xac   : > { %2387 = vmatpush.bf16.msra.mxu2 %v4970_v8  ;;  %v6886_v7 = vld [vmem:[%s10303_s0 + $0x794] sm:$0xf0]  ;;  %v5274_v8 = vor.u32 %v6790_v0, %v5273_v63  ;;  %v5530_v10 = vor.u32 %v6854_v5, %v5529_v4  ;;  %v5257_v11 = vld [vmem:[%s10303_s0 + $0x468] sm:$0xf]  ;;  %v6672_v5 = vld [vmem:[%s10303_s0 + $0xec] sm:$0xf] }
  0xad   : > { %2400 = vmatpush.bf16.msra.mxu3 %v5098_v12  ;;  %v6786_v12 = vld [vmem:[%s10303_s0 + $0x474] sm:$0xf0]  ;;  %v5385_v13 = vld [vmem:[%s10303_s0 + $0x568] sm:$0xf]  ;;  %v5658_v14 = vor.u32 %v6886_v7, %v5657_v6  ;;  %v4811_v6 = vld [vmem:[%s10303_s0 + $0xf8] sm:$0xf0] }
  0xae   : > { %2362 = vmatpush.bf16.msra.mxu0 %v4698_v19  ;;  %v6818_v15 = vld [vmem:[%s10303_s0 + $0x574] sm:$0xf0]  ;;  %v5513_v16 = vld [vmem:[%s10303_s0 + $0x668] sm:$0xf]  ;;  %v5258_v20 = vor.u32 %v6786_v12, %v5257_v11  ;;  %v6704_v7 = vld [vmem:[%s10303_s0 + $0x1ec] sm:$0xf] }
  0xaf   : > { %2375 = vmatpush.bf16.msra.mxu1 %v4826_v23  ;;  %v6850_v17 = vld [vmem:[%s10303_s0 + $0x674] sm:$0xf0]  ;;  %v5641_v18 = vld [vmem:[%s10303_s0 + $0x768] sm:$0xf]  ;;  %v5386_v22 = vor.u32 %v6818_v15, %v5385_v13  ;;  %v6736_v11 = vld [vmem:[%s10303_s0 + $0x2ec] sm:$0xf] }
  0xb0   : > { %2388 = vmatpush.bf16.msra.mxu2 %v4954_v24  ;;  %v6882_v19 = vld [vmem:[%s10303_s0 + $0x774] sm:$0xf0]  ;;  %v5241_v21 = vld [vmem:[%s10303_s0 + $0x448] sm:$0xf]  ;;  %v5514_v23 = vor.u32 %v6850_v17, %v5513_v16  ;;  %v5067_v12 = vld [vmem:[%s10303_s0 + $0x2f8] sm:$0xf0] }
  0xb1   : > { %2401 = vmatpush.bf16.msra.mxu3 %v5082_v30  ;;  %2363 = vmatmul.bf16.vlgmr.msra.gmra.mxu0 %v7598_v28  ;;  %v6782_v24 = vld [vmem:[%s10303_s0 + $0x454] sm:$0xf0]  ;;  %v5369_v25 = vld [vmem:[%s10303_s0 + $0x548] sm:$0xf]  ;;  %v5642_v30 = vor.u32 %v6882_v19, %v5641_v18  ;;  %v2169_v0 = vpop.f32.mrf.mxu1  ;;  %v6768_v15 = vld [vmem:[%s10303_s0 + $0x3ec] sm:$0xf]  ;;  %v4814_v19 = vor.u32 %v6672_v5, %v4811_v6 }
  0xb2   : > { %2407 = vmatpush.bf16.msrb.mxu0 %v5322_v31  ;;  %2376 = vmatmul.bf16.vlgmr.msra.gmra.mxu1 %v7603_v32  ;;  %v6814_v26 = vld [vmem:[%s10303_s0 + $0x554] sm:$0xf0]  ;;  %v5497_v31 = vld [vmem:[%s10303_s0 + $0x648] sm:$0xf]  ;;  %v5242_v41 = vor.u32 %v6782_v24, %v5241_v21  ;;  %v5195_v16 = vld [vmem:[%s10303_s0 + $0x3f8] sm:$0xf0] }
  0xb3   : > { %2420 = vmatpush.bf16.msrb.mxu1 %v5450_v33  ;;  %2389 = vmatmul.bf16.vlgmr.msra.gmra.mxu2 %v7596_v27  ;;  %v6846_v33 = vld [vmem:[%s10303_s0 + $0x654] sm:$0xf0]  ;;  %v5625_v36 = vld [vmem:[%s10303_s0 + $0x748] sm:$0xf]  ;;  %v5370_v43 = vor.u32 %v6814_v26, %v5369_v25  ;;  %v6668_v24 = vld [vmem:[%s10303_s0 + $0xcc] sm:$0xf] }
  0xb4   : > { %2433 = vmatpush.bf16.msrb.mxu2 %v5578_v35  ;;  %2402 = vmatmul.bf16.vlgmr.msra.gmra.mxu3 %v7600_v29  ;;  %v8426_v35 = vld [vmem:[%s10305_s30] sm:$0xf]  ;;  %v6878_v39 = vld [vmem:[%s10303_s0 + $0x754] sm:$0xf0]  ;;  %v5498_v44 = vor.u32 %v6846_v33, %v5497_v31  ;;  %v5353_v46 = vld [vmem:[%s10303_s0 + $0x528] sm:$0xf] }
  0xb5   : > { %2446 = vmatpush.bf16.msrb.mxu3 %v5706_v42  ;;  %v5225_v42 = vld [vmem:[%s10303_s0 + $0x428] sm:$0xf]  ;;  %v6778_v45 = vld [vmem:[%s10303_s0 + $0x434] sm:$0xf0]  ;;  %v859_v47 = vperm.slane %v8426_v35, 0 }
  0xb6   : > { %2408 = vmatpush.bf16.msrb.mxu0 %v5306_v48  ;;  %v5626_v48 = vor.u32 %v6878_v39, %v5625_v36  ;;  %v6842_v51 = vld [vmem:[%s10303_s0 + $0x634] sm:$0xf0]  ;;  %v5609_v52 = vld [vmem:[%s10303_s0 + $0x728] sm:$0xf]  ;;  %v2195_v21 = vpop.f32.mrf.mxu3  ;;  %v4795_v25 = vld [vmem:[%s10303_s0 + $0xd8] sm:$0xf0] }
  0xb7   : > { %2421 = vmatpush.bf16.msrb.mxu1 %v5434_v49  ;;  %v6810_v49 = vld [vmem:[%s10303_s0 + $0x534] sm:$0xf0]  ;;  %v5209_v55 = vld [vmem:[%s10303_s0 + $0x408] sm:$0xf]  ;;  %v6700_v26 = vld [vmem:[%s10303_s0 + $0x1cc] sm:$0xf] }
  0xb8   : > { %2434 = vmatpush.bf16.msrb.mxu2 %v5562_v50  ;;  %v5481_v50 = vld [vmem:[%s10303_s0 + $0x628] sm:$0xf]  ;;  %v6874_v53 = vld [vmem:[%s10303_s0 + $0x734] sm:$0xf0]  ;;  %v5354_v58 = vor.u32 %v6810_v49, %v5353_v46  ;;  %v4923_v31 = vld [vmem:[%s10303_s0 + $0x1d8] sm:$0xf0] }
  0xb9   : > { %2447 = vmatpush.bf16.msrb.mxu3 %v5690_v54  ;;  %v5226_v54 = vor.u32 %v6778_v45, %v5225_v42  ;;  %v6774_v56 = vld [vmem:[%s10303_s0 + $0x414] sm:$0xf0]  ;;  %v5482_v59 = vor.u32 %v6842_v51, %v5481_v50  ;;  %v5610_v1 = vor.u32 %v6874_v53, %v5609_v52  ;;  %v5593_v3 = vld [vmem:[%s10303_s0 + $0x708] sm:$0xf]  ;;  %v6732_v33 = vld [vmem:[%s10303_s0 + $0x2cc] sm:$0xf]  ;;  %v4798_v45 = vor.u32 %v6668_v24, %v4795_v25 }
  0xba   : > { %2409 = vmatpush.bf16.msrb.mxu0 %v5290_v60  ;;  %v5337_v60 = vld [vmem:[%s10303_s0 + $0x508] sm:$0xf]  ;;  %v6870_v4 = vld [vmem:[%s10303_s0 + $0x714] sm:$0xf0]  ;;  %v5051_v36 = vld [vmem:[%s10303_s0 + $0x2d8] sm:$0xf0]  ;;  %v4926_v46 = vor.u32 %v6700_v26, %v4923_v31 }
  0xbb   : > { %2422 = vmatpush.bf16.msrb.mxu1 %v5418_v61  ;;  %v6806_v61 = vld [vmem:[%s10303_s0 + $0x514] sm:$0xf0]  ;;  %v5594_v18 = vor.u32 %v6870_v4, %v5593_v3  ;;  %v6764_v42 = vld [vmem:[%s10303_s0 + $0x3cc] sm:$0xf]  ;;  %v4779_v49 = vld [vmem:[%s10303_s0 + $0xb8] sm:$0xf0] }
  0xbc   : > { %2435 = vmatpush.bf16.msrb.mxu2 %v5546_v62  ;;  %v5465_v62 = vld [vmem:[%s10303_s0 + $0x608] sm:$0xf]  ;;  %v5338_v13 = vor.u32 %v6806_v61, %v5337_v60  ;;  %v6696_v50 = vld [vmem:[%s10303_s0 + $0x1ac] sm:$0xf]  ;;  %v4907_v52 = vld [vmem:[%s10303_s0 + $0x1b8] sm:$0xf0] }
  0xbd   : > { %2448 = vmatpush.bf16.msrb.mxu3 %v5674_v2  ;;  %v6838_v2 = vld [vmem:[%s10303_s0 + $0x614] sm:$0xf0]  ;;  %v6728_v53 = vld [vmem:[%s10303_s0 + $0x2ac] sm:$0xf]  ;;  %v4910_v60 = vor.u32 %v6696_v50, %v4907_v52  ;;  %v5019_v4 = vld [vmem:[%s10303_s0 + $0x298] sm:$0xf0] }
  0xbe   : > { %2410 = vmatpush.bf16.msrb.mxu0 %v5274_v8  ;;  %v6724_v3 = vld [vmem:[%s10303_s0 + $0x28c] sm:$0xf]  ;;  %v5147_v6 = vld [vmem:[%s10303_s0 + $0x398] sm:$0xf0] }
  0xbf   : > { %2423 = vmatpush.bf16.msrb.mxu1 %v5402_v9  ;;  %v5210_v9 = vor.u32 %v6774_v56, %v5209_v55  ;;  %v6760_v55 = vld [vmem:[%s10303_s0 + $0x3ac] sm:$0xf]  ;;  %v5163_v56 = vld [vmem:[%s10303_s0 + $0x3b8] sm:$0xf0] }
  0xc0   : > { %2436 = vmatpush.bf16.msrb.mxu2 %v5530_v10  ;;  %v4939_v10 = vld [vmem:[%s10303_s0 + $0x1f8] sm:$0xf0]  ;;  %v6756_v5 = vld [vmem:[%s10303_s0 + $0x38c] sm:$0xf] }
  0xc1   : > { %2449 = vmatpush.bf16.msrb.mxu3 %v5658_v14  ;;  %v2156_v57 = vpop.f32.mrf.mxu0  ;;  %v5466_v14 = vor.u32 %v6838_v2, %v5465_v62  ;;  %v6660_v62 = vld [vmem:[%s10303_s0 + $0x8c] sm:$0xf]  ;;  %v4891_v2 = vld [vmem:[%s10303_s0 + $0x198] sm:$0xf0] }
  0xc2   : > { %2411 = vmatpush.bf16.msrb.mxu0 %v5258_v20  ;;  %v2157_v63 = vadd.f32 %v2156_v57, %v859_v47  ;;  %v5054_v47 = vor.u32 %v6732_v33, %v5051_v36  ;;  %v6652_v26 = vld [vmem:[%s10303_s0 + $0x4c] sm:$0xf] }
  0xc3   : > { %2424 = vmatpush.bf16.msrb.mxu1 %v5386_v22  ;;  %v4942_v22 = vor.u32 %v6704_v7, %v4939_v10  ;;  %v5022_v10 = vor.u32 %v6724_v3, %v5019_v4  ;;  %v6684_v31 = vld [vmem:[%s10303_s0 + $0x14c] sm:$0xf]  ;;  %v4827_v4 = vld [vmem:[%s10303_s0 + $0x118] sm:$0xf0] }
  0xc4   : > { %2437 = vmatpush.bf16.msrb.mxu2 %v5514_v23  ;;  %v2170_v8 = vadd.f32 %v2169_v0, %v2157_v63  ;;  %v5070_v23 = vor.u32 %v6736_v11, %v5067_v12  ;;  %v4763_v63 = vld [vmem:[%s10303_s0 + $0x98] sm:$0xf0]  ;;  %v6692_v0 = vld [vmem:[%s10303_s0 + $0x18c] sm:$0xf] }
  0xc5   : > { %2450 = vmatpush.bf16.msrb.mxu3 %v5642_v30  ;;  %v5198_v30 = vor.u32 %v6768_v15, %v5195_v16  ;;  %v4766_v7 = vor.u32 %v6660_v62, %v4763_v63  ;;  %v6656_v11 = vld [vmem:[%s10303_s0 + $0x6c] sm:$0xf]  ;;  %v4747_v12 = vld [vmem:[%s10303_s0 + $0x78] sm:$0xf0]  ;;  %v5150_v16 = vor.u32 %v6756_v5, %v5147_v6 }
  0xc6   : > { %2412 = vmatpush.bf16.msrb.mxu0 %v5242_v41  ;;  %v6648_v52 = vld [vmem:[%s10303_s0 + $0x2c] sm:$0xf] }
  0xc7   : > { %2425 = vmatpush.bf16.msrb.mxu1 %v5370_v43  ;;  %v2182_v17 = vpop.f32.mrf.mxu2  ;;  %v5179_v43 = vld [vmem:[%s10303_s0 + $0x3d8] sm:$0xf0]  ;;  %v6644_v63 = vld [vmem:[%s10303_s0 + $0xc] sm:$0xf] }
  0xc8   : > { %2438 = vmatpush.bf16.msrb.mxu2 %v5498_v44  ;;  %v2183_v20 = vadd.f32 %v2182_v17, %v2170_v8  ;;  %v2171_v44 = vpop.f32.mrf.mxu1  ;;  %v5182_v51 = vor.u32 %v6764_v42, %v5179_v43  ;;  %v4875_v17 = vld [vmem:[%s10303_s0 + $0x178] sm:$0xf0]  ;;  %v6676_v3 = vld [vmem:[%s10303_s0 + $0x10c] sm:$0xf] }
  0xc9   : > { %2451 = vmatpush.bf16.msrb.mxu3 %v5626_v48  ;;  %v2158_v41 = vpop.f32.mrf.mxu0  ;;  %v6664_v48 = vld [vmem:[%s10303_s0 + $0xac] sm:$0xf]  ;;  %v4987_v42 = vld [vmem:[%s10303_s0 + $0x258] sm:$0xf0] }
  0xca   : > { %2413 = vmatpush.bf16.msrb.mxu0 %v5226_v54  ;;  %v2196_v39 = vadd.f32 %v2195_v21, %v2183_v20  ;;  %v5035_v54 = vld [vmem:[%s10303_s0 + $0x2b8] sm:$0xf0]  ;;  %v6752_v20 = vld [vmem:[%s10303_s0 + $0x36c] sm:$0xf] }
  0xcb   : > { %2426 = vmatpush.bf16.msrb.mxu1 %v5354_v58  ;;  %v4782_v58 = vor.u32 %v6664_v48, %v4779_v49  ;;  %v5038_v61 = vor.u32 %v6728_v53, %v5035_v54  ;;  %v5131_v21 = vld [vmem:[%s10303_s0 + $0x378] sm:$0xf0]  ;;  %v6716_v41 = vld [vmem:[%s10303_s0 + $0x24c] sm:$0xf] }
  0xcc   : > { %2439 = vmatpush.bf16.msrb.mxu2 %v5482_v59  ;;  %v2197_v59 = vpop.f32.mrf.mxu3  ;;  %v5134_v36 = vor.u32 %v6752_v20, %v5131_v21  ;;  %v4715_v53 = vld [vmem:[%s10303_s0 + $0x38] sm:$0xf0]  ;;  %v6680_v54 = vld [vmem:[%s10303_s0 + $0x12c] sm:$0xf] }
  0xcd   : > { %2452 = vmatpush.bf16.msrb.mxu3 %v5610_v1  ;;  %v5166_v1 = vor.u32 %v6760_v55, %v5163_v56  ;;  %v4971_v59 = vld [vmem:[%s10303_s0 + $0x238] sm:$0xf0]  ;;  %v4718_v62 = vor.u32 %v6648_v52, %v4715_v53  ;;  %v6708_v5 = vld [vmem:[%s10303_s0 + $0x20c] sm:$0xf] }
  0xce   : > { %2414 = vmatpush.bf16.msrb.mxu0 %v5210_v9  ;;  %v4894_v9 = vor.u32 %v6692_v0, %v4891_v2  ;;  %v4699_v0 = vld [vmem:[%s10303_s0 + $0x18] sm:$0xf0]  ;;  %v6896_v21 = vld [vmem:[%s10303_s0 + $0x7ec] sm:$0xf] }
  0xcf   : > { %2427 = vmatpush.bf16.msrb.mxu1 %v5338_v13  ;;  %v2184_v57 = vpop.f32.mrf.mxu2  ;;  %v6688_v13 = vld [vmem:[%s10303_s0 + $0x16c] sm:$0xf]  ;;  %v5419_v53 = vld [vmem:[%s10303_s0 + $0x5b8] sm:$0xf0] }
  0xd0   : > { %2440 = vmatpush.bf16.msrb.mxu2 %v5466_v14  ;;  %v2221_v15 = vpop.f32.mrf.mxu1  ;;  %v4878_v24 = vor.u32 %v6688_v13, %v4875_v17  ;;  %v4843_v57 = vld [vmem:[%s10303_s0 + $0x138] sm:$0xf0]  ;;  %v6864_v17 = vld [vmem:[%s10303_s0 + $0x6ec] sm:$0xf] }
  0xd1   : > { %2453 = vmatpush.bf16.msrb.mxu3 %v5594_v18  ;;  %2415 = vmatmul.bf16.vlgmr.msrb.gmra.mxu0 %v7735_v37  ;;  %v2208_v8 = vpop.f32.mrf.mxu0  ;;  %v6720_v18 = vld [vmem:[%s10303_s0 + $0x26c] sm:$0xf]  ;;  %v5323_v13 = vld [vmem:[%s10303_s0 + $0x4f8] sm:$0xf0] }
  0xd2   : > { %2459 = vmatpush.bf16.msra.mxu0 %v4814_v19  ;;  %2428 = vmatmul.bf16.vlgmr.msrb.gmra.mxu1 %v7739_v40  ;;  %v2209_v14 = vadd.f32 %v2208_v8, %v2196_v39  ;;  %v5003_v19 = vld [vmem:[%s10303_s0 + $0x278] sm:$0xf0] }
  0xd3   : > { %2472 = vmatpush.bf16.msra.mxu1 %v4942_v22  ;;  %2441 = vmatmul.bf16.vlgmr.msrb.gmra.mxu2 %v7727_v34  ;;  %v5006_v25 = vor.u32 %v6720_v18, %v5003_v19  ;;  %v4859_v39 = vld [vmem:[%s10303_s0 + $0x158] sm:$0xf0]  ;;  %v4830_v19 = vor.u32 %v6676_v3, %v4827_v4  ;;  %v6852_v3 = vld [vmem:[%s10303_s0 + $0x68c] sm:$0xf] }
  0xd4   : > { %2485 = vmatpush.bf16.msra.mxu2 %v5070_v23  ;;  %2454 = vmatmul.bf16.vlgmr.msrb.gmra.mxu3 %v7737_v38  ;;  %v2222_v22 = vadd.f32 %v2221_v15, %v2209_v14  ;;  %v4750_v23 = vor.u32 %v6656_v11, %v4747_v12  ;;  %v4862_v50 = vor.u32 %v6684_v31, %v4859_v39  ;;  %v4955_v8 = vld [vmem:[%s10303_s0 + $0x218] sm:$0xf0]  ;;  %v6800_v12 = vld [vmem:[%s10303_s0 + $0x4ec] sm:$0xf] }
  0xd5   : > { %2498 = vmatpush.bf16.msra.mxu3 %v5198_v30  ;;  %v4731_v30 = vld [vmem:[%s10303_s0 + $0x58] sm:$0xf0]  ;;  %v6832_v14 = vld [vmem:[%s10303_s0 + $0x5ec] sm:$0xf]  ;;  %v4702_v15 = vor.u32 %v6644_v63, %v4699_v0  ;;  %v4958_v20 = vor.u32 %v6708_v5, %v4955_v8  ;;  %v860_v0 = vperm.slane %v8426_v35, 1 }
  0xd6   : > { %2460 = vmatpush.bf16.msra.mxu0 %v4798_v45  ;;  %v6748_v45 = vld [vmem:[%s10303_s0 + $0x34c] sm:$0xf]  ;;  %v5579_v18 = vld [vmem:[%s10303_s0 + $0x6f8] sm:$0xf0] }
  0xd7   : > { %2473 = vmatpush.bf16.msra.mxu1 %v4926_v46  ;;  %v5115_v46 = vld [vmem:[%s10303_s0 + $0x358] sm:$0xf0]  ;;  %v6820_v63 = vld [vmem:[%s10303_s0 + $0x58c] sm:$0xf] }
  0xd8   : > { %2486 = vmatpush.bf16.msra.mxu2 %v5054_v47  ;;  %v2234_v33 = vpop.f32.mrf.mxu2  ;;  %v4734_v47 = vor.u32 %v6652_v26, %v4731_v30  ;;  %v2223_v55 = vpop.f32.mrf.mxu1  ;;  %v5118_v56 = vor.u32 %v6748_v45, %v5115_v46  ;;  %v5582_v26 = vor.u32 %v6864_v17, %v5579_v18  ;;  %v6796_v30 = vld [vmem:[%s10303_s0 + $0x4cc] sm:$0xf]  ;;  %v5307_v31 = vld [vmem:[%s10303_s0 + $0x4d8] sm:$0xf0] }
  0xd9   : > { %2499 = vmatpush.bf16.msra.mxu3 %v5182_v51  ;;  %v2235_v43 = vadd.f32 %v2234_v33, %v2222_v22  ;;  %v2247_v44 = vpop.f32.mrf.mxu3  ;;  %v2210_v49 = vpop.f32.mrf.mxu0  ;;  %v4990_v51 = vor.u32 %v6716_v41, %v4987_v42  ;;  %v5707_v22 = vld [vmem:[%s10303_s0 + $0x7f8] sm:$0xf0]  ;;  %v6828_v33 = vld [vmem:[%s10303_s0 + $0x5cc] sm:$0xf]  ;;  %v5310_v45 = vor.u32 %v6796_v30, %v5307_v31 }
  0xda   : > { %2461 = vmatpush.bf16.msra.mxu0 %v4782_v58  ;;  %v6712_v58 = vld [vmem:[%s10303_s0 + $0x22c] sm:$0xf]  ;;  %v5435_v39 = vld [vmem:[%s10303_s0 + $0x5d8] sm:$0xf0] }
  0xdb   : > { %2474 = vmatpush.bf16.msra.mxu1 %v4910_v60  ;;  %v8631_v48 = vadd.f32 %v2247_v44, %v2235_v43  ;;  %v6744_v60 = vld [vmem:[%s10303_s0 + $0x32c] sm:$0xf]  ;;  %v4974_v2 = vor.u32 %v6712_v58, %v4971_v59  ;;  %v5563_v42 = vld [vmem:[%s10303_s0 + $0x6d8] sm:$0xf0]  ;;  %v5438_v46 = vor.u32 %v6828_v33, %v5435_v39 }
  0xdc   : > { %2487 = vmatpush.bf16.msra.mxu2 %v5038_v61  ;;  %v5099_v61 = vld [vmem:[%s10303_s0 + $0x338] sm:$0xf0]  ;;  %v6860_v41 = vld [vmem:[%s10303_s0 + $0x6cc] sm:$0xf] }
  0xdd   : > { %2500 = vmatpush.bf16.msra.mxu3 %v5166_v1  ;;  %v4846_v1 = vor.u32 %v6680_v54, %v4843_v57  ;;  %v6892_v43 = vld [vmem:[%s10303_s0 + $0x7cc] sm:$0xf]  ;;  %v5691_v44 = vld [vmem:[%s10303_s0 + $0x7d8] sm:$0xf0] }
  0xde   : > { %2462 = vmatpush.bf16.msra.mxu0 %v4766_v7  ;;  %v5102_v7 = vor.u32 %v6744_v60, %v5099_v61  ;;  %v6792_v49 = vld [vmem:[%s10303_s0 + $0x4ac] sm:$0xf]  ;;  %v5694_v52 = vor.u32 %v6892_v43, %v5691_v44  ;;  %v5547_v55 = vld [vmem:[%s10303_s0 + $0x6b8] sm:$0xf0] }
  0xdf   : > { %2475 = vmatpush.bf16.msra.mxu1 %v4894_v9  ;;  %v6740_v9 = vld [vmem:[%s10303_s0 + $0x30c] sm:$0xf]  ;;  %v5675_v57 = vld [vmem:[%s10303_s0 + $0x7b8] sm:$0xf0] }
  0xe0   : > { %2488 = vmatpush.bf16.msra.mxu2 %v5022_v10  ;;  %v2236_v6 = vpop.f32.mrf.mxu2  ;;  %v5083_v10 = vld [vmem:[%s10303_s0 + $0x318] sm:$0xf0]  ;;  %v6856_v54 = vld [vmem:[%s10303_s0 + $0x6ac] sm:$0xf] }
  0xe1   : > { %2501 = vmatpush.bf16.msra.mxu3 %v5150_v16  ;;  %v2249_v11 = vpop.f32.mrf.mxu3  ;;  %v5451_v16 = vld [vmem:[%s10303_s0 + $0x5f8] sm:$0xf0]  ;;  %v6788_v59 = vld [vmem:[%s10303_s0 + $0x48c] sm:$0xf]  ;;  %v5550_v61 = vor.u32 %v6856_v54, %v5547_v55 }
  0xe2   : > { %2463 = vmatpush.bf16.msra.mxu0 %v4750_v23  ;;  %v5086_v23 = vor.u32 %v6740_v9, %v5083_v10  ;;  %v5531_v4 = vld [vmem:[%s10303_s0 + $0x698] sm:$0xf0]  ;;  %v6884_v5 = vld [vmem:[%s10303_s0 + $0x78c] sm:$0xf] }
  0xe3   : > { %2476 = vmatpush.bf16.msra.mxu1 %v4878_v24  ;;  %v5326_v24 = vor.u32 %v6800_v12, %v5323_v13  ;;  %v5659_v6 = vld [vmem:[%s10303_s0 + $0x798] sm:$0xf0]  ;;  %v5534_v10 = vor.u32 %v6852_v3, %v5531_v4  ;;  %v6784_v11 = vld [vmem:[%s10303_s0 + $0x46c] sm:$0xf] }
  0xe4   : > { %2489 = vmatpush.bf16.msra.mxu2 %v5006_v25  ;;  %v5454_v25 = vor.u32 %v6832_v14, %v5451_v16  ;;  %v5259_v12 = vld [vmem:[%s10303_s0 + $0x478] sm:$0xf0]  ;;  %v6816_v13 = vld [vmem:[%s10303_s0 + $0x56c] sm:$0xf]  ;;  %v5662_v16 = vor.u32 %v6884_v5, %v5659_v6 }
  0xe5   : > { %2502 = vmatpush.bf16.msra.mxu3 %v5134_v36  ;;  %v5710_v36 = vor.u32 %v6896_v21, %v5707_v22  ;;  %v5387_v17 = vld [vmem:[%s10303_s0 + $0x578] sm:$0xf0]  ;;  %v6848_v18 = vld [vmem:[%s10303_s0 + $0x66c] sm:$0xf] }
  0xe6   : > { %2464 = vmatpush.bf16.msra.mxu0 %v4734_v47  ;;  %v5566_v47 = vor.u32 %v6860_v41, %v5563_v42  ;;  %v5643_v21 = vld [vmem:[%s10303_s0 + $0x778] sm:$0xf0]  ;;  %v6812_v31 = vld [vmem:[%s10303_s0 + $0x54c] sm:$0xf] }
  0xe7   : > { %2477 = vmatpush.bf16.msra.mxu1 %v4862_v50  ;;  %v5291_v50 = vld [vmem:[%s10303_s0 + $0x4b8] sm:$0xf0]  ;;  %v6844_v41 = vld [vmem:[%s10303_s0 + $0x64c] sm:$0xf] }
  0xe8   : > { %2490 = vmatpush.bf16.msra.mxu2 %v4990_v51  ;;  %v6824_v51 = vld [vmem:[%s10303_s0 + $0x5ac] sm:$0xf]  ;;  %v5294_v58 = vor.u32 %v6792_v49, %v5291_v50  ;;  %v5243_v30 = vld [vmem:[%s10303_s0 + $0x458] sm:$0xf0] }
  0xe9   : > { %2503 = vmatpush.bf16.msra.mxu3 %v5118_v56  ;;  %v6888_v56 = vld [vmem:[%s10303_s0 + $0x7ac] sm:$0xf]  ;;  %v5422_v60 = vor.u32 %v6824_v51, %v5419_v53  ;;  %v5371_v39 = vld [vmem:[%s10303_s0 + $0x558] sm:$0xf0] }
  0xea   : > { %2465 = vmatpush.bf16.msra.mxu0 %v4718_v62  ;;  %v5275_v62 = vld [vmem:[%s10303_s0 + $0x498] sm:$0xf0]  ;;  %v5374_v51 = vor.u32 %v6812_v31, %v5371_v39  ;;  %v6776_v53 = vld [vmem:[%s10303_s0 + $0x42c] sm:$0xf] }
  0xeb   : > { %2478 = vmatpush.bf16.msra.mxu1 %v4846_v1  ;;  %v5678_v1 = vor.u32 %v6888_v56, %v5675_v57  ;;  %v5499_v42 = vld [vmem:[%s10303_s0 + $0x658] sm:$0xf0]  ;;  %v6808_v55 = vld [vmem:[%s10303_s0 + $0x52c] sm:$0xf] }
  0xec   : > { %2491 = vmatpush.bf16.msra.mxu2 %v4974_v2  ;;  %v5403_v2 = vld [vmem:[%s10303_s0 + $0x598] sm:$0xf0]  ;;  %v6804_v4 = vld [vmem:[%s10303_s0 + $0x50c] sm:$0xf] }
  0xed   : > { %2504 = vmatpush.bf16.msra.mxu3 %v5102_v7  ;;  %v5278_v7 = vor.u32 %v6788_v59, %v5275_v62  ;;  %v5406_v9 = vor.u32 %v6820_v63, %v5403_v2  ;;  %v5227_v54 = vld [vmem:[%s10303_s0 + $0x438] sm:$0xf0]  ;;  %v6840_v59 = vld [vmem:[%s10303_s0 + $0x62c] sm:$0xf] }
  0xee   : > { %2466 = vmatpush.bf16.msra.mxu0 %v4702_v15  ;;  %v2260_v8 = vpop.f32.mrf.mxu0  ;;  %v5611_v62 = vld [vmem:[%s10303_s0 + $0x738] sm:$0xf0]  ;;  %v5230_v63 = vor.u32 %v6776_v53, %v5227_v54  ;;  %v6772_v2 = vld [vmem:[%s10303_s0 + $0x40c] sm:$0xf] }
  0xef   : > { %2479 = vmatpush.bf16.msra.mxu1 %v4830_v19  ;;  %v2261_v14 = vadd.f32 %v2260_v8, %v860_v0  ;;  %v2273_v15 = vpop.f32.mrf.mxu1  ;;  %v5515_v19 = vld [vmem:[%s10303_s0 + $0x678] sm:$0xf0]  ;;  %v6836_v8 = vld [vmem:[%s10303_s0 + $0x60c] sm:$0xf] }
  0xf0   : > { %2492 = vmatpush.bf16.msra.mxu2 %v4958_v20  ;;  %v6880_v20 = vld [vmem:[%s10303_s0 + $0x76c] sm:$0xf]  ;;  %v5211_v3 = vld [vmem:[%s10303_s0 + $0x418] sm:$0xf0] }
  0xf1   : > { %2505 = vmatpush.bf16.msra.mxu3 %v5086_v23  ;;  %2467 = vmatmul.bf16.vlgmr.msra.gmra.mxu0 %v7598_v28  ;;  %v2274_v22 = vadd.f32 %v2273_v15, %v2261_v14  ;;  %v5262_v23 = vor.u32 %v6784_v11, %v5259_v12  ;;  %v6868_v11 = vld [vmem:[%s10303_s0 + $0x70c] sm:$0xf]  ;;  %v5595_v12 = vld [vmem:[%s10303_s0 + $0x718] sm:$0xf0] }
  0xf2   : > { %2511 = vmatpush.bf16.msrb.mxu0 %v5326_v24  ;;  %2480 = vmatmul.bf16.vlgmr.msra.gmra.mxu1 %v7603_v32  ;;  %v5390_v24 = vor.u32 %v6816_v13, %v5387_v17  ;;  %v5214_v13 = vor.u32 %v6772_v2, %v5211_v3  ;;  %v862_v2 = vperm.slane %v8426_v35, 3 }
  0xf3   : > { %2524 = vmatpush.bf16.msrb.mxu1 %v5454_v25  ;;  %2493 = vmatmul.bf16.vlgmr.msra.gmra.mxu2 %v7596_v27  ;;  %v5518_v25 = vor.u32 %v6848_v18, %v5515_v19 }
  0xf4   : > { %2537 = vmatpush.bf16.msrb.mxu2 %v5582_v26  ;;  %2506 = vmatmul.bf16.vlgmr.msra.gmra.mxu3 %v7600_v29  ;;  %v6780_v26 = vld [vmem:[%s10303_s0 + $0x44c] sm:$0xf] }
  0xf5   : > { %2550 = vmatpush.bf16.msrb.mxu3 %v5710_v36  ;;  %v5646_v36 = vor.u32 %v6880_v20, %v5643_v21 }
  0xf6   : > { %2512 = vmatpush.bf16.msrb.mxu0 %v5310_v45  ;;  %v2286_v33 = vpop.f32.mrf.mxu2  ;;  %v6876_v45 = vld [vmem:[%s10303_s0 + $0x74c] sm:$0xf]  ;;  %v2262_v50 = vpop.f32.mrf.mxu0 }
  0xf7   : > { %2525 = vmatpush.bf16.msrb.mxu1 %v5438_v46  ;;  %v2287_v43 = vadd.f32 %v2286_v33, %v2274_v22  ;;  %v2299_v44 = vpop.f32.mrf.mxu3  ;;  %v5627_v46 = vld [vmem:[%s10303_s0 + $0x758] sm:$0xf0]  ;;  %v2275_v56 = vpop.f32.mrf.mxu1  ;;  %v861_v33 = vperm.slane %v8426_v35, 2 }
  0xf8   : > { %2538 = vmatpush.bf16.msrb.mxu2 %v5566_v47  ;;  %v5246_v47 = vor.u32 %v6780_v26, %v5243_v30  ;;  %v5630_v57 = vor.u32 %v6876_v45, %v5627_v46 }
  0xf9   : > { %2551 = vmatpush.bf16.msrb.mxu3 %v5694_v52  ;;  %v2300_v49 = vadd.f32 %v2299_v44, %v2287_v43  ;;  %v5502_v52 = vor.u32 %v6844_v41, %v5499_v42 }
  0xfa   : > { %2513 = vmatpush.bf16.msrb.mxu0 %v5294_v58  ;;  %v5355_v58 = vld [vmem:[%s10303_s0 + $0x538] sm:$0xf0] }
  0xfb   : > { %2526 = vmatpush.bf16.msrb.mxu1 %v5422_v60  ;;  %v5483_v60 = vld [vmem:[%s10303_s0 + $0x638] sm:$0xf0]  ;;  %v5358_v0 = vor.u32 %v6808_v55, %v5355_v58 }
  0xfc   : > { %2539 = vmatpush.bf16.msrb.mxu2 %v5550_v61  ;;  %v6872_v61 = vld [vmem:[%s10303_s0 + $0x72c] sm:$0xf] }
  0xfd   : > { %2552 = vmatpush.bf16.msrb.mxu3 %v5678_v1  ;;  %v5486_v1 = vor.u32 %v6840_v59, %v5483_v60  ;;  %v5614_v6 = vor.u32 %v6872_v61, %v5611_v62 }
  0xfe   : > { %2514 = vmatpush.bf16.msrb.mxu0 %v5278_v7  ;;  %v2288_v5 = vpop.f32.mrf.mxu2  ;;  %v5339_v7 = vld [vmem:[%s10303_s0 + $0x518] sm:$0xf0] }
  0xff   : > { %2527 = vmatpush.bf16.msrb.mxu1 %v5406_v9  ;;  %v5467_v9 = vld [vmem:[%s10303_s0 + $0x618] sm:$0xf0]  ;;  %v5342_v14 = vor.u32 %v6804_v4, %v5339_v7 }
 0x100   : > { %2540 = vmatpush.bf16.msrb.mxu2 %v5534_v10  ;;  %v2301_v10 = vpop.f32.mrf.mxu3  ;;  %v5470_v15 = vor.u32 %v6836_v8, %v5467_v9 }
 0x101   : > { %2553 = vmatpush.bf16.msrb.mxu3 %v5662_v16  ;;  %v5598_v16 = vor.u32 %v6868_v11, %v5595_v12 }
 0x102   : > { %2515 = vmatpush.bf16.msrb.mxu0 %v5262_v23 }
 0x103   : > { %2528 = vmatpush.bf16.msrb.mxu1 %v5390_v24 }
 0x104   : > { %2541 = vmatpush.bf16.msrb.mxu2 %v5518_v25 }
 0x105   : > { %2554 = vmatpush.bf16.msrb.mxu3 %v5646_v36 }
 0x106   : > { %2516 = vmatpush.bf16.msrb.mxu0 %v5246_v47 }
 0x107   : > { %2529 = vmatpush.bf16.msrb.mxu1 %v5374_v51 }
 0x108   : > { %2542 = vmatpush.bf16.msrb.mxu2 %v5502_v52 }
 0x109   : > { %2555 = vmatpush.bf16.msrb.mxu3 %v5630_v57 }
 0x10a   : > { %2517 = vmatpush.bf16.msrb.mxu0 %v5230_v63 }
 0x10b   : > { %2530 = vmatpush.bf16.msrb.mxu1 %v5358_v0 }
 0x10c   : > { %2543 = vmatpush.bf16.msrb.mxu2 %v5486_v1 }
 0x10d   : > { %2556 = vmatpush.bf16.msrb.mxu3 %v5614_v6 }
 0x10e   : > { %2518 = vmatpush.bf16.msrb.mxu0 %v5214_v13  ;;  %v2312_v17 = vpop.f32.mrf.mxu0 }
 0x10f   : > { %2531 = vmatpush.bf16.msrb.mxu1 %v5342_v14  ;;  %v2313_v18 = vadd.f32 %v2312_v17, %v2300_v49  ;;  %v2325_v19 = vpop.f32.mrf.mxu1 }
 0x110   : > { %2544 = vmatpush.bf16.msrb.mxu2 %v5470_v15 }
 0x111   : > { %2557 = vmatpush.bf16.msrb.mxu3 %v5598_v16  ;;  %2519 = vmatmul.bf16.vlgmr.msrb.gmra.mxu0 %v7735_v37  ;;  %v2326_v20 = vadd.f32 %v2325_v19, %v2313_v18 }
 0x112   : > { %2532 = vmatmul.bf16.vlgmr.msrb.gmra.mxu1 %v7739_v40 }
 0x113   : > { %2545 = vmatmul.bf16.vlgmr.msrb.gmra.mxu2 %v7727_v34 }
 0x114   : > { %2558 = vmatmul.bf16.vlgmr.msrb.gmra.mxu3 %v7737_v38 }
 0x116   : > { %v2338_v21 = vpop.f32.mrf.mxu2  ;;  %v2314_v25 = vpop.f32.mrf.mxu0 }
 0x117   : > { %v2339_v22 = vadd.f32 %v2338_v21, %v2326_v20  ;;  %v2351_v23 = vpop.f32.mrf.mxu3  ;;  %v2327_v26 = vpop.f32.mrf.mxu1 }
 0x119   : > { %v8882_v24 = vadd.f32 %v2351_v23, %v2339_v22 }
 0x11b   : > { %v2565_v18 = vadd.f32 %v8882_v24, %v8631_v48 }
 0x11e   : > { %v2340_v30 = vpop.f32.mrf.mxu2 }
 0x11f   : > { %v2353_v31 = vpop.f32.mrf.mxu3 }
 0x120   : > { %v7164_v31 = vmov 512.0  }
 0x121   : > { %7144 = vrcp.f32 %v7164_v31 }
 0x12e   : > { %v2364_v36 = vpop.f32.mrf.mxu0 }
 0x12f   : > { %v2365_v39 = vadd.f32 %v2364_v36, %v861_v33  ;;  %v2377_v41 = vpop.f32.mrf.mxu1  ;;  %v7145_v33 = vpop.eup %7144 }
 0x130   : > { %v2571_v36 = vmul.f32 512.0, %v7145_v33  ;;  %vm2575_vm0 = vweird.f32 %v7145_v33 }
 0x131   : > { %v2378_v42 = vadd.f32 %v2377_v41, %v2365_v39  ;;  %v5769_v41 = vld [vmem:[%s10285_s5 + $0x70] sm:$0xf] }
 0x132   : > { %v2572_v39 = vsub.f32 1.0, %v2571_v36  ;;  %v5809_v36 = vld [vmem:[%s10285_s5 + $0xc0] sm:$0xf] }
 0x136   : > { %v2390_v43 = vpop.f32.mrf.mxu2  ;;  %v2366_v47 = vpop.f32.mrf.mxu0 }
 0x137   : > { %v2391_v44 = vadd.f32 %v2390_v43, %v2378_v42  ;;  %v2403_v45 = vpop.f32.mrf.mxu3  ;;  %v2379_v49 = vpop.f32.mrf.mxu1  ;;  %v6914_v42 = vld [vmem:[%s10285_s5 + $0x74] sm:$0xf0]  ;;  %v5833_v43 = vld [vmem:[%s10285_s5 + $0xf0] sm:$0xf] }
 0x138   : > { %v6946_v47 = vld [vmem:[%s10285_s5 + $0x174] sm:$0xf0] }
 0x139   : > { %v2404_v46 = vadd.f32 %v2403_v45, %v2391_v44  ;;  %v5770_v44 = vor.u32 %v6914_v42, %v5769_v41  ;;  %v6930_v45 = vld [vmem:[%s10285_s5 + $0xf4] sm:$0xf0]  ;;  %v6924_v41 = vld [vmem:[%s10285_s5 + $0xc4] sm:$0xf0]  ;;  %v5873_v42 = vld [vmem:[%s10285_s5 + $0x140] sm:$0xf] }
 0x13a   : > { %v5834_v49 = vor.u32 %v6930_v45, %v5833_v43  ;;  %v6940_v43 = vld [vmem:[%s10285_s5 + $0x144] sm:$0xf0] }
 0x13b   : > { %3031 = vmatpush.bf16.msra.mxu0 %v5770_v44  ;;  %v5810_v44 = vor.u32 %v6924_v41, %v5809_v36  ;;  %v5874_v45 = vor.u32 %v6940_v43, %v5873_v42  ;;  %v5841_v36 = vld [vmem:[%s10285_s5 + $0x100] sm:$0xf] }
 0x13c   : > { %3044 = vmatpush.bf16.msra.mxu1 %v5834_v49  ;;  %v5905_v43 = vld [vmem:[%s10285_s5 + $0x180] sm:$0xf] }
 0x13e   : > { %v2392_v50 = vpop.f32.mrf.mxu2 }
 0x13f   : > { %v2405_v51 = vpop.f32.mrf.mxu3 }
 0x140   : > { %v5961_v51 = vld [vmem:[%s10285_s5 + $0x1f0] sm:$0xf] }
 0x14e   : > { %v2416_v52 = vpop.f32.mrf.mxu0 }
 0x14f   : > { %v2429_v53 = vpop.f32.mrf.mxu1  ;;  %v2417_v7 = vadd.f32 %v2416_v52, %v2404_v46  ;;  %v5897_v46 = vld [vmem:[%s10285_s5 + $0x170] sm:$0xf]  ;;  %v6962_v52 = vld [vmem:[%s10285_s5 + $0x1f4] sm:$0xf0] }
 0x150   : > { %v5898_v50 = vor.u32 %v6946_v47, %v5897_v46  ;;  %v5937_v46 = vld [vmem:[%s10285_s5 + $0x1c0] sm:$0xf]  ;;  %v6956_v47 = vld [vmem:[%s10285_s5 + $0x1c4] sm:$0xf0] }
 0x151   : > { %v2430_v9 = vadd.f32 %v2429_v53, %v2417_v7  ;;  %v5761_v53 = vld [vmem:[%s10285_s5 + $0x60] sm:$0xf]  ;;  %v5938_v49 = vor.u32 %v6956_v47, %v5937_v46  ;;  %v5771_v47 = vld [vmem:[%s10285_s5 + $0x78] sm:$0xf0] }
 0x152   : > { %3057 = vmatpush.bf16.msra.mxu2 %v5898_v50  ;;  %v5737_v50 = vld [vmem:[%s10285_s5 + $0x30] sm:$0xf] }
 0x156   : > { %v2442_v54 = vpop.f32.mrf.mxu2  ;;  %v2418_v56 = vpop.f32.mrf.mxu0 }
 0x157   : > { %v2455_v55 = vpop.f32.mrf.mxu3  ;;  %v2431_v57 = vpop.f32.mrf.mxu1  ;;  %v2443_v13 = vadd.f32 %v2442_v54, %v2430_v9  ;;  %v5962_v54 = vor.u32 %v6962_v52, %v5961_v51  ;;  %v5825_v56 = vld [vmem:[%s10285_s5 + $0xe0] sm:$0xf]  ;;  %v5945_v9 = vld [vmem:[%s10285_s5 + $0x1d0] sm:$0xf]  ;;  %v6906_v51 = vld [vmem:[%s10285_s5 + $0x34] sm:$0xf0] }
 0x158   : > { %v6928_v57 = vld [vmem:[%s10285_s5 + $0xe4] sm:$0xf0]  ;;  %v5801_v52 = vld [vmem:[%s10285_s5 + $0xb0] sm:$0xf] }
 0x159   : > { %v8886_v15 = vadd.f32 %v2455_v55, %v2443_v13  ;;  %v6912_v55 = vld [vmem:[%s10285_s5 + $0x64] sm:$0xf0]  ;;  %3070 = vmatpush.bf16.msra.mxu3 %v5962_v54  ;;  %v2573_v13 = vmul.f32 %v7145_v33, %v2572_v39  ;;  %v6922_v54 = vld [vmem:[%s10285_s5 + $0xb4] sm:$0xf0] }
 0x15b   : > { %v2566_v23 = vadd.f32 %v2565_v18, %v8886_v15 }
 0x15e   : > { %v2444_v58 = vpop.f32.mrf.mxu2 }
 0x15f   : > { %v2457_v59 = vpop.f32.mrf.mxu3  ;;  %v5762_v58 = vor.u32 %v6912_v55, %v5761_v53  ;;  %v5738_v53 = vor.u32 %v6906_v51, %v5737_v50  ;;  %v5865_v55 = vld [vmem:[%s10285_s5 + $0x130] sm:$0xf]  ;;  %v5835_v50 = vld [vmem:[%s10285_s5 + $0xf8] sm:$0xf0] }
 0x160   : > { %v5826_v59 = vor.u32 %v6928_v57, %v5825_v56  ;;  %v6938_v56 = vld [vmem:[%s10285_s5 + $0x134] sm:$0xf0]  ;;  %v5802_v57 = vor.u32 %v6922_v54, %v5801_v52  ;;  %v5899_v54 = vld [vmem:[%s10285_s5 + $0x178] sm:$0xf0] }
 0x161   : > { %3032 = vmatpush.bf16.msra.mxu0 %v5762_v58  ;;  %v5866_v58 = vor.u32 %v6938_v56, %v5865_v55  ;;  %v6961_v55 = vld [vmem:[%s10285_s5 + $0x1f4] sm:$0xf] }
 0x162   : > { %3045 = vmatpush.bf16.msra.mxu1 %v5826_v59  ;;  %v5929_v59 = vld [vmem:[%s10285_s5 + $0x1b0] sm:$0xf] }
 0x16e   : > { %v2468_v60 = vpop.f32.mrf.mxu0 }
 0x16f   : > { %v2481_v61 = vpop.f32.mrf.mxu1  ;;  %v2469_v5 = vadd.f32 %v2468_v60, %v862_v2  ;;  %v5889_v60 = vld [vmem:[%s10285_s5 + $0x160] sm:$0xf]  ;;  %v6910_v2 = vld [vmem:[%s10285_s5 + $0x54] sm:$0xf0] }
 0x171   : > { %v2482_v6 = vadd.f32 %v2481_v61, %v2469_v5  ;;  %v6944_v61 = vld [vmem:[%s10285_s5 + $0x164] sm:$0xf0]  ;;  %v6926_v5 = vld [vmem:[%s10285_s5 + $0xd4] sm:$0xf0] }
 0x176   : > { %v2494_v62 = vpop.f32.mrf.mxu2  ;;  %v2470_v0 = vpop.f32.mrf.mxu0 }
 0x177   : > { %v2507_v63 = vpop.f32.mrf.mxu3  ;;  %v2483_v1 = vpop.f32.mrf.mxu1  ;;  %v2495_v8 = vadd.f32 %v2494_v62, %v2482_v6  ;;  %v5953_v62 = vld [vmem:[%s10285_s5 + $0x1e0] sm:$0xf]  ;;  %v6960_v0 = vld [vmem:[%s10285_s5 + $0x1e4] sm:$0xf0]  ;;  %v5881_v6 = vld [vmem:[%s10285_s5 + $0x150] sm:$0xf] }
 0x178   : > { %v5753_v1 = vld [vmem:[%s10285_s5 + $0x50] sm:$0xf] }
 0x179   : > { %v2508_v10 = vadd.f32 %v2507_v63, %v2495_v8  ;;  %v5890_v63 = vor.u32 %v6944_v61, %v5889_v60  ;;  %v5754_v7 = vor.u32 %v6910_v2, %v5753_v1  ;;  %v6942_v8 = vld [vmem:[%s10285_s5 + $0x154] sm:$0xf0]  ;;  %v6920_v2 = vld [vmem:[%s10285_s5 + $0xa4] sm:$0xf0] }
 0x17a   : > { %v6954_v60 = vld [vmem:[%s10285_s5 + $0x1b4] sm:$0xf0] }
 0x17b   : > { %3058 = vmatpush.bf16.msra.mxu2 %v5890_v63  ;;  %3033 = vmatpush.bf16.msra.mxu0 %v5754_v7  ;;  %v5930_v61 = vor.u32 %v6954_v60, %v5929_v59  ;;  %v6904_v63 = vld [vmem:[%s10285_s5 + $0x24] sm:$0xf0]  ;;  %v5921_v7 = vld [vmem:[%s10285_s5 + $0x1a0] sm:$0xf]  ;;  %v5763_v59 = vld [vmem:[%s10285_s5 + $0x68] sm:$0xf0] }
 0x17e   : > { %v2496_v3 = vpop.f32.mrf.mxu2 }
 0x17f   : > { %v2509_v4 = vpop.f32.mrf.mxu3  ;;  %v5954_v3 = vor.u32 %v6960_v0, %v5953_v62  ;;  %v5729_v62 = vld [vmem:[%s10285_s5 + $0x20] sm:$0xf] }
 0x180   : > { %v5817_v4 = vld [vmem:[%s10285_s5 + $0xd0] sm:$0xf]  ;;  %v5793_v0 = vld [vmem:[%s10285_s5 + $0xa0] sm:$0xf]  ;;  %v5730_v1 = vor.u32 %v6904_v63, %v5729_v62  ;;  %v6927_v62 = vld [vmem:[%s10285_s5 + $0xe4] sm:$0xf] }
 0x181   : > { %3071 = vmatpush.bf16.msra.mxu3 %v5954_v3  ;;  %v5857_v3 = vld [vmem:[%s10285_s5 + $0x120] sm:$0xf]  ;;  %v5827_v63 = vld [vmem:[%s10285_s5 + $0xe8] sm:$0xf0] }
 0x18e   : > { %v2520_v11 = vpop.f32.mrf.mxu0 }
 0x18f   : > { %v2533_v12 = vpop.f32.mrf.mxu1  ;;  %v2521_v14 = vadd.f32 %v2520_v11, %v2508_v10  ;;  %v6958_v10 = vld [vmem:[%s10285_s5 + $0x1d4] sm:$0xf0]  ;;  %v5818_v11 = vor.u32 %v6926_v5, %v5817_v4  ;;  %v6936_v4 = vld [vmem:[%s10285_s5 + $0x124] sm:$0xf0]  ;;  %v5794_v5 = vor.u32 %v6920_v2, %v5793_v0  ;;  %v6943_v0 = vld [vmem:[%s10285_s5 + $0x164] sm:$0xf] }
 0x190   : > { %v5891_v2 = vld [vmem:[%s10285_s5 + $0x168] sm:$0xf0] }
 0x191   : > { %v2534_v16 = vadd.f32 %v2533_v12, %v2521_v14  ;;  %v5882_v12 = vor.u32 %v6942_v8, %v5881_v6  ;;  %v5946_v14 = vor.u32 %v6958_v10, %v5945_v9  ;;  %3046 = vmatpush.bf16.msra.mxu1 %v5818_v11  ;;  %v5858_v6 = vor.u32 %v6936_v4, %v5857_v3  ;;  %v6952_v8 = vld [vmem:[%s10285_s5 + $0x1a4] sm:$0xf0]  ;;  %v5721_v10 = vld [vmem:[%s10285_s5 + $0x10] sm:$0xf]  ;;  %v6902_v11 = vld [vmem:[%s10285_s5 + $0x14] sm:$0xf0] }
 0x192   : > { %v5922_v9 = vor.u32 %v6952_v8, %v5921_v7  ;;  %v6959_v3 = vld [vmem:[%s10285_s5 + $0x1e4] sm:$0xf]  ;;  %v5955_v4 = vld [vmem:[%s10285_s5 + $0x1e8] sm:$0xf0]  ;;  %v6909_v7 = vld [vmem:[%s10285_s5 + $0x54] sm:$0xf] }
 0x193   : > { %3059 = vmatpush.bf16.msra.mxu2 %v5882_v12  ;;  %3072 = vmatpush.bf16.msra.mxu3 %v5946_v14  ;;  %v5785_v12 = vld [vmem:[%s10285_s5 + $0x90] sm:$0xf]  ;;  %v6918_v14 = vld [vmem:[%s10285_s5 + $0x94] sm:$0xf0]  ;;  %v5755_v8 = vld [vmem:[%s10285_s5 + $0x58] sm:$0xf0] }
 0x195   : > { %3047 = vmatpush.bf16.msra.mxu1 %v5810_v44  ;;  %v6948_v44 = vld [vmem:[%s10285_s5 + $0x184] sm:$0xf0] }
 0x196   : > { %v2546_v17 = vpop.f32.mrf.mxu2  ;;  %v2522_v20 = vpop.f32.mrf.mxu0  ;;  %v5906_v46 = vor.u32 %v6948_v44, %v5905_v43  ;;  %v6905_v44 = vld [vmem:[%s10285_s5 + $0x34] sm:$0xf] }
 0x197   : > { %v2547_v35 = vadd.f32 %v2546_v17, %v2534_v16  ;;  %v2559_v19 = vpop.f32.mrf.mxu3  ;;  %v2535_v21 = vpop.f32.mrf.mxu1  ;;  %v2574_v16 = vadd.f32 %v7145_v33, %v2573_v13  ;;  %3060 = vmatpush.bf16.msra.mxu2 %v5874_v45  ;;  %3073 = vmatpush.bf16.msra.mxu3 %v5938_v49  ;;  %v5722_v13 = vor.u32 %v6902_v11, %v5721_v10  ;;  %v6913_v45 = vld [vmem:[%s10285_s5 + $0x74] sm:$0xf]  ;;  %v5819_v10 = vld [vmem:[%s10285_s5 + $0xd8] sm:$0xf0] }
 0x198   : > { %v6929_v49 = vld [vmem:[%s10285_s5 + $0xf4] sm:$0xf]  ;;  %v5774_v51 = vor.u32 %v6913_v45, %v5771_v47  ;;  %v5739_v45 = vld [vmem:[%s10285_s5 + $0x38] sm:$0xf0] }
 0x199   : > { %v8890_v22 = vadd.f32 %v2559_v19, %v2547_v35  ;;  %v8966_v17 = vsel %vm2575_vm0, %v7145_v33, %v2574_v16  ;;  %3048 = vmatpush.bf16.msra.mxu1 %v5802_v57  ;;  %v5849_v16 = vld [vmem:[%s10285_s5 + $0x110] sm:$0xf]  ;;  %v5838_v52 = vor.u32 %v6929_v49, %v5835_v50  ;;  %v5963_v57 = vld [vmem:[%s10285_s5 + $0x1f8] sm:$0xf0]  ;;  %v6941_v11 = vld [vmem:[%s10285_s5 + $0x154] sm:$0xf]  ;;  %v5742_v49 = vor.u32 %v6905_v44, %v5739_v45 }
 0x19a   : > { %v5966_v60 = vor.u32 %v6961_v55, %v5963_v57  ;;  %v5803_v50 = vld [vmem:[%s10285_s5 + $0xb8] sm:$0xf0] }
 0x19b   : > { %v2567_v25 = vadd.f32 %v2566_v23, %v8890_v22  ;;  %3061 = vmatpush.bf16.msra.mxu2 %v5866_v58  ;;  %3074 = vmatpush.bf16.msra.mxu3 %v5930_v61  ;;  %v6911_v58 = vld [vmem:[%s10285_s5 + $0x64] sm:$0xf]  ;;  %v5931_v55 = vld [vmem:[%s10285_s5 + $0x1b8] sm:$0xf0] }
 0x19c   : > { %v5766_v61 = vor.u32 %v6911_v58, %v5763_v59  ;;  %v5731_v59 = vld [vmem:[%s10285_s5 + $0x28] sm:$0xf0] }
 0x19d   : > { %2568 = vadd.xlane.f32.xlu0 %v2567_v25  ;;  %3049 = vmatpush.bf16.msra.mxu1 %v5794_v5  ;;  %v5894_v5 = vor.u32 %v6943_v0, %v5891_v2  ;;  %v6951_v2 = vld [vmem:[%s10285_s5 + $0x1a4] sm:$0xf] }
 0x19e   : > { %v2548_v26 = vpop.f32.mrf.mxu2 }
 0x19f   : > { %v2561_v30 = vpop.f32.mrf.mxu3  ;;  %3062 = vmatpush.bf16.msra.mxu2 %v5858_v6  ;;  %3075 = vmatpush.bf16.msra.mxu3 %v5922_v9  ;;  %v5958_v6 = vor.u32 %v6959_v3, %v5955_v4  ;;  %v6925_v9 = vld [vmem:[%s10285_s5 + $0xd4] sm:$0xf]  ;;  %v5923_v3 = vld [vmem:[%s10285_s5 + $0x1a8] sm:$0xf0] }
 0x1a0   : > { %v6901_v4 = vld [vmem:[%s10285_s5 + $0x14] sm:$0xf] }
 0x210   : > { %v2569_v18 = vpop.xlane.xlu0 %2568 }
 0x211   : > { %v2577_v35 = vmul.f32 %v8966_v17, %v2569_v18  ;;  %v6934_v18 = vld [vmem:[%s10285_s5 + $0x114] sm:$0xf0] }
 0x213   : > { %v8970_v19 = vsub.f32 %v8631_v48, %v2577_v35  ;;  %v8973_v20 = vsub.f32 %v8882_v24, %v2577_v35  ;;  %v8976_v21 = vsub.f32 %v8886_v15, %v2577_v35  ;;  %v8979_v23 = vsub.f32 %v8890_v22, %v2577_v35  ;;  %v5745_v15 = vld [vmem:[%s10285_s5 + $0x40] sm:$0xf]  ;;  %v6908_v22 = vld [vmem:[%s10285_s5 + $0x44] sm:$0xf0] }
 0x214   : > { %v5746_v39 = vor.u32 %v6908_v22, %v5745_v15  ;;  %v5786_v35 = vor.u32 %v6918_v14, %v5785_v12  ;;  %v6916_v22 = vld [vmem:[%s10285_s5 + $0x84] sm:$0xf0]  ;;  %v5883_v12 = vld [vmem:[%s10285_s5 + $0x158] sm:$0xf0]  ;;  %v5822_v14 = vor.u32 %v6925_v9, %v5819_v10  ;;  %v5926_v9 = vor.u32 %v6951_v2, %v5923_v3  ;;  %v6933_v10 = vld [vmem:[%s10285_s5 + $0x114] sm:$0xf] }
 0x215   : > { %v2582_v25 = vmul.f32 %v8970_v19, %v8970_v19  ;;  %v2583_v26 = vmul.f32 %v8973_v20, %v8973_v20  ;;  %v2584_v30 = vmul.f32 %v8976_v21, %v8976_v21  ;;  %v2585_v24 = vmul.f32 %v8979_v23, %v8979_v23 }
 0x216   : > { %3034 = vmatpush.bf16.msra.mxu0 %v5746_v39  ;;  %3050 = vmatpush.bf16.msra.mxu1 %v5786_v35  ;;  %v6932_v39 = vld [vmem:[%s10285_s5 + $0x104] sm:$0xf0]  ;;  %v6907_v35 = vld [vmem:[%s10285_s5 + $0x44] sm:$0xf] }
 0x217   : > { %v2586_v48 = vadd.f32 %v2583_v26, %v2582_v25  ;;  %v5850_v25 = vor.u32 %v6934_v18, %v5849_v16  ;;  %v5913_v26 = vld [vmem:[%s10285_s5 + $0x190] sm:$0xf]  ;;  %v5842_v42 = vor.u32 %v6932_v39, %v5841_v36  ;;  %v6957_v16 = vld [vmem:[%s10285_s5 + $0x1d4] sm:$0xf]  ;;  %v5947_v18 = vld [vmem:[%s10285_s5 + $0x1d8] sm:$0xf0] }
 0x219   : > { %v2587_v31 = vadd.f32 %v2586_v48, %v2584_v30  ;;  %v6950_v30 = vld [vmem:[%s10285_s5 + $0x194] sm:$0xf0]  ;;  %3063 = vmatpush.bf16.msra.mxu2 %v5850_v25  ;;  %v5886_v25 = vor.u32 %v6941_v11, %v5883_v12  ;;  %v5851_v11 = vld [vmem:[%s10285_s5 + $0x118] sm:$0xf0]  ;;  %v6949_v12 = vld [vmem:[%s10285_s5 + $0x194] sm:$0xf] }
 0x21a   : > { %3035 = vmatpush.bf16.msra.mxu0 %v5738_v53  ;;  %v5914_v48 = vor.u32 %v6950_v30, %v5913_v26  ;;  %v6945_v53 = vld [vmem:[%s10285_s5 + $0x174] sm:$0xf]  ;;  %v5747_v26 = vld [vmem:[%s10285_s5 + $0x48] sm:$0xf0]  ;;  %v6923_v30 = vld [vmem:[%s10285_s5 + $0xc4] sm:$0xf] }
 0x21b   : > { %v2588_v33 = vadd.f32 %v2587_v31, %v2585_v24  ;;  %v5713_v24 = vld [vmem:[%s10285_s5] sm:$0xf]  ;;  %v6900_v31 = vld [vmem:[%s10285_s5 + $0x4] sm:$0xf0]  ;;  %v5902_v56 = vor.u32 %v6945_v53, %v5899_v54  ;;  %v5750_v36 = vor.u32 %v6907_v35, %v5747_v26  ;;  %v5854_v35 = vor.u32 %v6933_v10, %v5851_v11  ;;  %v6915_v26 = vld [vmem:[%s10285_s5 + $0x84] sm:$0xf] }
 0x21c   : > { %3076 = vmatpush.bf16.msra.mxu3 %v5914_v48  ;;  %v5714_v15 = vor.u32 %v6900_v31, %v5713_v24  ;;  %v5811_v48 = vld [vmem:[%s10285_s5 + $0xc8] sm:$0xf0]  ;;  %v5950_v24 = vor.u32 %v6957_v16, %v5947_v18  ;;  %v6939_v31 = vld [vmem:[%s10285_s5 + $0x144] sm:$0xf] }
 0x21d   : > { %2589 = vadd.xlane.f32.xlu0 %v2588_v33  ;;  %v5777_v33 = vld [vmem:[%s10285_s5 + $0x80] sm:$0xf]  ;;  %3064 = vmatpush.bf16.msra.mxu2 %v5842_v42  ;;  %v5814_v39 = vor.u32 %v6923_v30, %v5811_v48  ;;  %v6899_v18 = vld [vmem:[%s10285_s5 + $0x4] sm:$0xf]  ;;  %v5779_v30 = vld [vmem:[%s10285_s5 + $0x88] sm:$0xf0] }
 0x21e   : > { %3036 = vmatpush.bf16.msra.mxu0 %v5730_v1  ;;  %v5778_v41 = vor.u32 %v6916_v22, %v5777_v33  ;;  %v5830_v1 = vor.u32 %v6927_v62, %v5827_v63  ;;  %v5875_v33 = vld [vmem:[%s10285_s5 + $0x148] sm:$0xf0]  ;;  %v6935_v62 = vld [vmem:[%s10285_s5 + $0x124] sm:$0xf] }
 0x21f   : > { %v5939_v22 = vld [vmem:[%s10285_s5 + $0x1c8] sm:$0xf0] }
 0x220   : > { %3051 = vmatpush.bf16.msra.mxu1 %v5778_v41  ;;  %3077 = vmatpush.bf16.msra.mxu3 %v5906_v46  ;;  %v5878_v41 = vor.u32 %v6939_v31, %v5875_v33  ;;  %v6921_v46 = vld [vmem:[%s10285_s5 + $0xb4] sm:$0xf]  ;;  %v5859_v63 = vld [vmem:[%s10285_s5 + $0x128] sm:$0xf0]  ;;  %v6931_v31 = vld [vmem:[%s10285_s5 + $0x104] sm:$0xf] }
 0x221   : > { %3109 = vmatpush.bf16.msrb.mxu2 %v5902_v56  ;;  %v5806_v53 = vor.u32 %v6921_v46, %v5803_v50  ;;  %v6903_v56 = vld [vmem:[%s10285_s5 + $0x24] sm:$0xf]  ;;  %v5843_v33 = vld [vmem:[%s10285_s5 + $0x108] sm:$0xf0]  ;;  %v2563_v46 = vld [vmem:[%s10283_s3] sm:$0xf] }
 0x222   : > { %3037 = vmatpush.bf16.msra.mxu0 %v5722_v13  ;;  %v5758_v13 = vor.u32 %v6909_v7, %v5755_v8  ;;  %v5734_v0 = vor.u32 %v6903_v56, %v5731_v59  ;;  %v6917_v7 = vld [vmem:[%s10285_s5 + $0x94] sm:$0xf]  ;;  %v5787_v8 = vld [vmem:[%s10285_s5 + $0x98] sm:$0xf0] }
 0x223   : > { %v5790_v16 = vor.u32 %v6917_v7, %v5787_v8 }
 0x224   : > { %3096 = vmatpush.bf16.msrb.mxu1 %v5838_v52  ;;  %3122 = vmatpush.bf16.msrb.mxu3 %v5966_v60  ;;  %v5867_v52 = vld [vmem:[%s10285_s5 + $0x138] sm:$0xf0]  ;;  %v6919_v60 = vld [vmem:[%s10285_s5 + $0xa4] sm:$0xf] }
 0x225   : > { %3110 = vmatpush.bf16.msrb.mxu2 %v5894_v5  ;;  %v5862_v5 = vor.u32 %v6935_v62, %v5859_v63 }
 0x226   : > { %3038 = vmatpush.bf16.msra.mxu0 %v5714_v15  ;;  %v6955_v15 = vld [vmem:[%s10285_s5 + $0x1c4] sm:$0xf] }
 0x227   : > { %v5942_v42 = vor.u32 %v6955_v15, %v5939_v22  ;;  %v6947_v22 = vld [vmem:[%s10285_s5 + $0x184] sm:$0xf] }
 0x228   : > { %3097 = vmatpush.bf16.msrb.mxu1 %v5830_v1  ;;  %3123 = vmatpush.bf16.msrb.mxu3 %v5958_v6  ;;  %v5723_v6 = vld [vmem:[%s10285_s5 + $0x18] sm:$0xf0] }
 0x229   : > { %3111 = vmatpush.bf16.msrb.mxu2 %v5886_v25  ;;  %v5715_v25 = vld [vmem:[%s10285_s5 + $0x8] sm:$0xf0] }
 0x22a   : > { %3083 = vmatpush.bf16.msrb.mxu0 %v5774_v51  ;;  %v6937_v51 = vld [vmem:[%s10285_s5 + $0x134] sm:$0xf] }
 0x22b   : > { %v5870_v54 = vor.u32 %v6937_v51, %v5867_v52  ;;  %v2608_v51 = vperm.slane %v2563_v46, 0 }
 0x22c   : > { %3098 = vmatpush.bf16.msrb.mxu1 %v5822_v14  ;;  %3124 = vmatpush.bf16.msrb.mxu3 %v5950_v24  ;;  %v5726_v14 = vor.u32 %v6901_v4, %v5723_v6 }
 0x22d   : > { %3112 = vmatpush.bf16.msrb.mxu2 %v5878_v41  ;;  %v5782_v41 = vor.u32 %v6915_v26, %v5779_v30 }
 0x22e   : > { %3084 = vmatpush.bf16.msrb.mxu0 %v5766_v61  ;;  %v5795_v61 = vld [vmem:[%s10285_s5 + $0xa8] sm:$0xf0] }
 0x22f   : > { %v5798_v1 = vor.u32 %v6919_v60, %v5795_v61 }
 0x230   : > { %3099 = vmatpush.bf16.msrb.mxu1 %v5814_v39  ;;  %3125 = vmatpush.bf16.msrb.mxu3 %v5942_v42  ;;  %v5718_v39 = vor.u32 %v6899_v18, %v5715_v25 }
 0x231   : > { %3113 = vmatpush.bf16.msrb.mxu2 %v5870_v54  ;;  %v2610_v54 = vperm.slane %v2563_v46, 2 }
 0x232   : > { %3085 = vmatpush.bf16.msrb.mxu0 %v5758_v13  ;;  %v5915_v13 = vld [vmem:[%s10285_s5 + $0x198] sm:$0xf0] }
 0x233   : > { %v5918_v24 = vor.u32 %v6949_v12, %v5915_v13 }
 0x234   : > { %3100 = vmatpush.bf16.msrb.mxu1 %v5806_v53  ;;  %v2609_v53 = vperm.slane %v2563_v46, 1 }
 0x235   : > { %3114 = vmatpush.bf16.msrb.mxu2 %v5862_v5 }
 0x236   : > { %3086 = vmatpush.bf16.msrb.mxu0 %v5750_v36  ;;  %v5907_v36 = vld [vmem:[%s10285_s5 + $0x188] sm:$0xf0] }
 0x237   : > { %v5910_v44 = vor.u32 %v6947_v22, %v5907_v36 }
 0x238   : > { %3101 = vmatpush.bf16.msrb.mxu1 %v5798_v1 }
 0x239   : > { %3115 = vmatpush.bf16.msrb.mxu2 %v5854_v35  ;;  %v2705_v35 = vld [vmem:[%s10286_s6] sm:$0x3] }
 0x23a   : > { %3087 = vmatpush.bf16.msrb.mxu0 %v5742_v49  ;;  %v2564_v49 = vld [vmem:[%s10284_s4] sm:$0xf]  ;;  %v2707_v25 = vperm.slane %v2705_v35, 0  ;;  %v2708_v26 = vperm.slane %v2705_v35, 1 }
 0x23b   : > { %v2621_v52 = vperm.slane %v2564_v49, 0  ;;  %v2622_v56 = vperm.slane %v2564_v49, 1  ;;  %v2624_v59 = vperm.slane %v2564_v49, 3 }
 0x23c   : > { %3102 = vmatpush.bf16.msrb.mxu1 %v5790_v16 }
 0x23e   : > { %3088 = vmatpush.bf16.msrb.mxu0 %v5734_v0 }
 0x240   : > { %3103 = vmatpush.bf16.msrb.mxu1 %v5782_v41 }
 0x242   : > { %3089 = vmatpush.bf16.msrb.mxu0 %v5726_v14 }
 0x246   : > { %3090 = vmatpush.bf16.msrb.mxu0 %v5718_v39 }
 0x290   : > { %v2590_v43 = vpop.xlane.xlu0 %2589 }
 0x291   : > { %v2591_v47 = vmul.f32 %v2590_v43, %v8966_v17  ;;  %v6953_v17 = vld [vmem:[%s10285_s5 + $0x1b4] sm:$0xf]  ;;  %v5846_v43 = vor.u32 %v6931_v31, %v5843_v33 }
 0x292   : > { %v5934_v58 = vor.u32 %v6953_v17, %v5931_v55  ;;  %v2611_v17 = vperm.slane %v2563_v46, 3 }
 0x293   : > { %v9233_v57 = vadd.f32 1e-05, %v2591_v47  ;;  %3116 = vmatpush.bf16.msrb.mxu2 %v5846_v43 }
 0x294   : > { %3126 = vmatpush.bf16.msrb.mxu3 %v5934_v58  ;;  %v2623_v58 = vperm.slane %v2564_v49, 2 }
 0x295   : > { %7146 = vrsqrt.f32 %v9233_v57  ;;  %vm2599_vm2 = vweird.f32 %v9233_v57 }
 0x298   : > { %3127 = vmatpush.bf16.msrb.mxu3 %v5926_v9 }
 0x29b   : > { %v7147_v48 = vpop.eup %7146 }
 0x29c   : > { %v2594_v15 = vmul.f32 %v7147_v48, %v9233_v57  ;;  %3128 = vmatpush.bf16.msrb.mxu3 %v5918_v24  ;;  %vm2600_vm1 = vweird.f32 %v7147_v48 }
 0x29d   : > { %vm2601_vm3 = vmor %vm2599_vm2, %vm2600_vm1 }
 0x29e   : > { %v2595_v42 = vmul.f32 %v7147_v48, %v2594_v15 }
 0x2a0   : > { %v2596_v45 = vmul.f32 0.5, %v2595_v42  ;;  %3129 = vmatpush.bf16.msrb.mxu3 %v5910_v44 }
 0x2a2   : > { %v2597_v47 = vsub.f32 1.5, %v2596_v45 }
 0x2a4   : > { %v2598_v50 = vmul.f32 %v7147_v48, %v2597_v47 }
 0x2a6   : > { %v2602_v55 = vsel %vm2601_vm3, %v7147_v48, %v2598_v50 }
 0x2a7   : > { %v2603_v60 = vmul.f32 %v2602_v55, %v8970_v19  ;;  %v2604_v61 = vmul.f32 %v2602_v55, %v8973_v20  ;;  %v2605_v62 = vmul.f32 %v2602_v55, %v8976_v21  ;;  %v2606_v63 = vmul.f32 %v2602_v55, %v8979_v23 }
 0x2a9   : > { %v2616_v0 = vmul.f32 %v2608_v51, %v2603_v60  ;;  %v2617_v57 = vmul.f32 %v2609_v53, %v2604_v61  ;;  %v2618_v1 = vmul.f32 %v2610_v54, %v2605_v62  ;;  %v2619_v2 = vmul.f32 %v2611_v17, %v2606_v63  ;;  %v6970_v53 = vld [vmem:[%s10289_s9 + $0x38] sm:$0xff]  ;;  %v6969_v17 = vld [vmem:[%s10289_s9 + $0x30] sm:$0xff] }
 0x2aa   : > { %v6978_v54 = vld [vmem:[%s10289_s9 + $0x78] sm:$0xff]  ;;  %v6153_v61 = vld [vmem:[%s10291_s11 + $0xf0] sm:$0xf] }
 0x2ab   : > { %v2629_v3 = vadd.f32 %v2621_v52, %v2616_v0  ;;  %v2630_v4 = vadd.f32 %v2622_v56, %v2617_v57  ;;  %v2631_v5 = vadd.f32 %v2623_v58, %v2618_v1  ;;  %v2632_v6 = vadd.f32 %v2624_v59, %v2619_v2  ;;  %v6977_v56 = vld [vmem:[%s10289_s9 + $0x70] sm:$0xff]  ;;  %v6994_v59 = vld [vmem:[%s10291_s11 + $0x74] sm:$0xf0]  ;;  %v6081_v0 = vld [vmem:[%s10291_s11 + $0x60] sm:$0xf] }
 0x2ac   : > { %v7165_v52 = vmov 256.0   ;;  %v6089_v58 = vld [vmem:[%s10291_s11 + $0x70] sm:$0xf]  ;;  %v7010_v62 = vld [vmem:[%s10291_s11 + $0xf4] sm:$0xf0]  ;;  %v6968_v2 = vld [vmem:[%s10289_s9 + $0x28] sm:$0xff] }
 0x2ad   : > { %v2633_v7 = vmax.f32 %v2629_v3, 0.0  ;;  %v2634_v8 = vmax.f32 %v2630_v4, 0.0  ;;  %v2635_v9 = vmax.f32 %v2631_v5, 0.0  ;;  %v2636_v10 = vmax.f32 %v2632_v6, 0.0  ;;  %v6992_v57 = vld [vmem:[%s10291_s11 + $0x64] sm:$0xf0] }
 0x2ae   : > { %7148 = vrcp.f32 %v7165_v52  ;;  %v6090_v60 = vor.u32 %v6994_v59, %v6089_v58  ;;  %v6154_v63 = vor.u32 %v7010_v62, %v6153_v61  ;;  %v6082_v3 = vor.u32 %v6992_v57, %v6081_v0  ;;  %v6145_v4 = vld [vmem:[%s10291_s11 + $0xe0] sm:$0xf]  ;;  %v7008_v5 = vld [vmem:[%s10291_s11 + $0xe4] sm:$0xf0]  ;;  %v6281_v59 = vld [vmem:[%s10291_s11 + $0x1f0] sm:$0xf] }
 0x2af   : > { %v2637_v11 = vpack.c.bf16 %v2633_v7, %v2633_v7  ;;  %v2638_v19 = vpack.c.bf16 %v2634_v8, %v2634_v8  ;;  %v2639_v12 = vpack.c.bf16 %v2635_v9, %v2635_v9  ;;  %v2640_v20 = vpack.c.bf16 %v2636_v10, %v2636_v10  ;;  %v6976_v6 = vld [vmem:[%s10289_s9 + $0x68] sm:$0xff]  ;;  %v6073_v7 = vld [vmem:[%s10291_s11 + $0x50] sm:$0xf]  ;;  %v6990_v8 = vld [vmem:[%s10291_s11 + $0x54] sm:$0xf0] }
 0x2b0   : > { %v6146_v9 = vor.u32 %v7008_v5, %v6145_v4  ;;  %v6137_v10 = vld [vmem:[%s10291_s11 + $0xd0] sm:$0xf]  ;;  %v6971_v52 = vld [vmem:[%s10289_s9 + $0x40] sm:$0xff]  ;;  %v7024_v4 = vld [vmem:[%s10291_s11 + $0x164] sm:$0xf0] }
 0x2b1   : > { %3039 = vmatmul.bf16.vlgmr.msra.gmra.mxu0 %v2637_v11  ;;  %3052 = vmatmul.bf16.vlgmr.msra.gmra.mxu1 %v2638_v19  ;;  %v6049_v61 = vld [vmem:[%s10291_s11 + $0x20] sm:$0xf] }
 0x2b2   : > { %3065 = vmatmul.bf16.vlgmr.msra.gmra.mxu2 %v2639_v12  ;;  %3078 = vmatmul.bf16.vlgmr.msra.gmra.mxu3 %v2640_v20  ;;  %v6113_v57 = vld [vmem:[%s10291_s11 + $0xa0] sm:$0xf] }
 0x2b3   : > { %3319 = vmatpush.bf16.msra.mxu0 %v6970_v53  ;;  %3332 = vmatpush.bf16.msra.mxu1 %v6978_v54  ;;  %v6121_v53 = vld [vmem:[%s10291_s11 + $0xb0] sm:$0xf]  ;;  %v7002_v54 = vld [vmem:[%s10291_s11 + $0xb4] sm:$0xf0]  ;;  %v6273_v5 = vld [vmem:[%s10291_s11 + $0x1e0] sm:$0xf] }
 0x2b4   : > { %v7149_v55 = vpop.eup %7148  ;;  %4121 = vmatpush.bf16.msra.mxu2 %v6090_v60  ;;  %4134 = vmatpush.bf16.msra.mxu3 %v6154_v63  ;;  %v7042_v60 = vld [vmem:[%s10291_s11 + $0x1f4] sm:$0xf0]  ;;  %v6984_v63 = vld [vmem:[%s10291_s11 + $0x24] sm:$0xf0] }
 0x2b5   : > { %v3141_v1 = vmul.f32 256.0, %v7149_v55  ;;  %vm3145_vm4 = vweird.f32 %v7149_v55  ;;  %v6282_v62 = vor.u32 %v7042_v60, %v6281_v59  ;;  %v6050_v0 = vor.u32 %v6984_v63, %v6049_v61  ;;  %v6401_v59 = vld [vmem:[%s10291_s11 + $0x2e0] sm:$0xf]  ;;  %v7072_v60 = vld [vmem:[%s10291_s11 + $0x2e4] sm:$0xf0] }
 0x2b6   : > { %v6329_v63 = vld [vmem:[%s10291_s11 + $0x250] sm:$0xf] }
 0x2b7   : > { %3320 = vmatpush.bf16.msra.mxu0 %v6969_v17  ;;  %3333 = vmatpush.bf16.msra.mxu1 %v6977_v56  ;;  %v6217_v17 = vld [vmem:[%s10291_s11 + $0x170] sm:$0xf]  ;;  %v6122_v56 = vor.u32 %v7002_v54, %v6121_v53 }
 0x2b8   : > { %4122 = vmatpush.bf16.msra.mxu2 %v6082_v3  ;;  %4135 = vmatpush.bf16.msra.mxu3 %v6146_v9  ;;  %v6041_v9 = vld [vmem:[%s10291_s11 + $0x10] sm:$0xf] }
 0x2b9   : > { %v6185_v54 = vld [vmem:[%s10291_s11 + $0x130] sm:$0xf] }
 0x2bb   : > { %3321 = vmatpush.bf16.msra.mxu0 %v6968_v2  ;;  %3334 = vmatpush.bf16.msra.mxu1 %v6976_v6  ;;  %v6209_v2 = vld [vmem:[%s10291_s11 + $0x160] sm:$0xf]  ;;  %v7040_v6 = vld [vmem:[%s10291_s11 + $0x1e4] sm:$0xf0] }
 0x2c1   : > { %3091 = vmatmul.bf16.vlgmr.msrb.gmra.mxu0 %v2637_v11  ;;  %3104 = vmatmul.bf16.vlgmr.msrb.gmra.mxu1 %v2638_v19  ;;  %v7006_v11 = vld [vmem:[%s10291_s11 + $0xd4] sm:$0xf0]  ;;  %v3142_v19 = vsub.f32 1.0, %v3141_v1  ;;  %v7000_v1 = vld [vmem:[%s10291_s11 + $0xa4] sm:$0xf0] }
 0x2c2   : > { %3117 = vmatmul.bf16.vlgmr.msrb.gmra.mxu2 %v2639_v12  ;;  %3130 = vmatmul.bf16.vlgmr.msrb.gmra.mxu3 %v2640_v20  ;;  %v6967_v12 = vld [vmem:[%s10289_s9 + $0x20] sm:$0xff]  ;;  %v6074_v20 = vor.u32 %v6990_v8, %v6073_v7  ;;  %v6114_v3 = vor.u32 %v7000_v1, %v6113_v57  ;;  %v6210_v7 = vor.u32 %v7024_v4, %v6209_v2  ;;  %v7016_v2 = vld [vmem:[%s10291_s11 + $0x124] sm:$0xf0] }
 0x2c3   : > { %v3143_v35 = vmul.f32 %v7149_v55, %v3142_v19  ;;  %3322 = vmatpush.bf16.msra.mxu0 %v6967_v12  ;;  %v6274_v8 = vor.u32 %v7040_v6, %v6273_v5  ;;  %v6105_v19 = vld [vmem:[%s10291_s11 + $0x90] sm:$0xf]  ;;  %v6998_v12 = vld [vmem:[%s10291_s11 + $0x94] sm:$0xf0]  ;;  %v6177_v1 = vld [vmem:[%s10291_s11 + $0x120] sm:$0xf] }
 0x2c4   : > { %4123 = vmatpush.bf16.msra.mxu2 %v6074_v20  ;;  %v6201_v20 = vld [vmem:[%s10291_s11 + $0x150] sm:$0xf]  ;;  %v6178_v4 = vor.u32 %v7016_v2, %v6177_v1  ;;  %v7032_v5 = vld [vmem:[%s10291_s11 + $0x1a4] sm:$0xf0] }
 0x2c5   : > { %v6393_v6 = vld [vmem:[%s10291_s11 + $0x2d0] sm:$0xf] }
 0x32e   : > { %v3040_v21 = vpop.f32.mrf.mxu0  ;;  %v3053_v23 = vpop.f32.mrf.mxu1 }
 0x32f   : > { %v3041_v24 = vadd.f32 %v3040_v21, %v2707_v25  ;;  %v6975_v21 = vld [vmem:[%s10289_s9 + $0x60] sm:$0xff] }
 0x330   : > { %3335 = vmatpush.bf16.msra.mxu1 %v6975_v21  ;;  %v6106_v21 = vor.u32 %v6998_v12, %v6105_v19  ;;  %v6169_v19 = vld [vmem:[%s10291_s11 + $0x110] sm:$0xf] }
 0x331   : > { %v3054_v22 = vadd.f32 %v3053_v23, %v3041_v24  ;;  %v6065_v23 = vld [vmem:[%s10291_s11 + $0x40] sm:$0xf]  ;;  %v3144_v24 = vadd.f32 %v7149_v55, %v3143_v35 }
 0x332   : > { %v6033_v35 = vld [vmem:[%s10291_s11] sm:$0xf] }
 0x335   : > { %v3066_v13 = vpop.f32.mrf.mxu2  ;;  %v3079_v14 = vpop.f32.mrf.mxu3 }
 0x336   : > { %v3042_v16 = vpop.f32.mrf.mxu0  ;;  %v3055_v18 = vpop.f32.mrf.mxu1  ;;  %v3067_v36 = vadd.f32 %v3066_v13, %v3054_v22  ;;  %v6988_v13 = vld [vmem:[%s10291_s11 + $0x44] sm:$0xf0] }
 0x337   : > { %v6129_v16 = vld [vmem:[%s10291_s11 + $0xc0] sm:$0xf]  ;;  %v7004_v18 = vld [vmem:[%s10291_s11 + $0xc4] sm:$0xf0]  ;;  %v6066_v25 = vor.u32 %v6988_v13, %v6065_v23  ;;  %v7022_v23 = vld [vmem:[%s10291_s11 + $0x154] sm:$0xf0] }
 0x338   : > { %v9320_v46 = vadd.f32 %v3079_v14, %v3067_v36  ;;  %v6138_v14 = vor.u32 %v7006_v11, %v6137_v10  ;;  %v6964_v22 = vld [vmem:[%s10289_s9 + $0x8] sm:$0xff]  ;;  %v6982_v10 = vld [vmem:[%s10291_s11 + $0x14] sm:$0xf0]  ;;  %v6265_v13 = vld [vmem:[%s10291_s11 + $0x1d0] sm:$0xf] }
 0x339   : > { %4124 = vmatpush.bf16.msra.mxu2 %v6066_v25  ;;  %v6972_v36 = vld [vmem:[%s10289_s9 + $0x48] sm:$0xff]  ;;  %v6042_v11 = vor.u32 %v6982_v10, %v6041_v9  ;;  %v6321_v10 = vld [vmem:[%s10291_s11 + $0x240] sm:$0xf] }
 0x33a   : > { %4136 = vmatpush.bf16.msra.mxu3 %v6138_v14  ;;  %v7038_v14 = vld [vmem:[%s10291_s11 + $0x1d4] sm:$0xf0]  ;;  %v6980_v25 = vld [vmem:[%s10291_s11 + $0x4] sm:$0xf0] }
 0x33d   : > { %v3068_v30 = vpop.f32.mrf.mxu2  ;;  %v3081_v48 = vpop.f32.mrf.mxu3 }
 0x33e   : > { %v3092_v31 = vpop.f32.mrf.mxu0  ;;  %v3105_v33 = vpop.f32.mrf.mxu1  ;;  %v6974_v30 = vld [vmem:[%s10289_s9 + $0x58] sm:$0xff]  ;;  %v6130_v48 = vor.u32 %v7004_v18, %v6129_v16  ;;  %v6202_v16 = vor.u32 %v7022_v23, %v6201_v20  ;;  %v6266_v18 = vor.u32 %v7038_v14, %v6265_v13  ;;  %v6385_v14 = vld [vmem:[%s10291_s11 + $0x2c0] sm:$0xf] }
 0x33f   : > { %v3093_v15 = vadd.f32 %v3092_v31, %v2708_v26  ;;  %v6966_v26 = vld [vmem:[%s10289_s9 + $0x18] sm:$0xff]  ;;  %3336 = vmatpush.bf16.msra.mxu1 %v6974_v30  ;;  %v6965_v31 = vld [vmem:[%s10289_s9 + $0x10] sm:$0xff] }
 0x340   : > { %3323 = vmatpush.bf16.msra.mxu0 %v6966_v26  ;;  %4137 = vmatpush.bf16.msra.mxu3 %v6130_v48  ;;  %v6034_v26 = vor.u32 %v6980_v25, %v6033_v35  ;;  %v6345_v30 = vld [vmem:[%s10291_s11 + $0x270] sm:$0xf]  ;;  %v7058_v48 = vld [vmem:[%s10291_s11 + $0x274] sm:$0xf0] }
 0x341   : > { %v3106_v39 = vadd.f32 %v3105_v33, %v3093_v15  ;;  %v6973_v33 = vld [vmem:[%s10289_s9 + $0x50] sm:$0xff]  ;;  %v9410_v15 = vsel %vm3145_vm4, %v7149_v55, %v3144_v24  ;;  %v7026_v55 = vld [vmem:[%s10291_s11 + $0x174] sm:$0xf0]  ;;  %v6346_v24 = vor.u32 %v7058_v48, %v6345_v30  ;;  %v6161_v30 = vld [vmem:[%s10291_s11 + $0x100] sm:$0xf] }
 0x342   : > { %v6218_v58 = vor.u32 %v7026_v55, %v6217_v17  ;;  %v7018_v17 = vld [vmem:[%s10291_s11 + $0x134] sm:$0xf0]  ;;  %v6249_v55 = vld [vmem:[%s10291_s11 + $0x1b0] sm:$0xf]  ;;  %v7012_v48 = vld [vmem:[%s10291_s11 + $0x104] sm:$0xf0] }
 0x343   : > { %3337 = vmatpush.bf16.msra.mxu1 %v6973_v33  ;;  %v6996_v33 = vld [vmem:[%s10291_s11 + $0x84] sm:$0xf0]  ;;  %v7014_v20 = vld [vmem:[%s10291_s11 + $0x114] sm:$0xf0] }
 0x344   : > { %3324 = vmatpush.bf16.msra.mxu0 %v6965_v31  ;;  %4138 = vmatpush.bf16.msra.mxu3 %v6122_v56  ;;  %v6097_v31 = vld [vmem:[%s10291_s11 + $0x80] sm:$0xf]  ;;  %v6186_v56 = vor.u32 %v7018_v17, %v6185_v54  ;;  %v7030_v23 = vld [vmem:[%s10291_s11 + $0x194] sm:$0xf0]  ;;  %v6170_v13 = vor.u32 %v7014_v20, %v6169_v19  ;;  %v6297_v54 = vld [vmem:[%s10291_s11 + $0x210] sm:$0xf] }
 0x345   : > { %v3118_v41 = vpop.f32.mrf.mxu2  ;;  %v3131_v42 = vpop.f32.mrf.mxu3  ;;  %v7046_v17 = vld [vmem:[%s10291_s11 + $0x214] sm:$0xf0]  ;;  %v7007_v20 = vld [vmem:[%s10291_s11 + $0xe4] sm:$0xf] }
 0x346   : > { %v3119_v43 = vadd.f32 %v3118_v41, %v3106_v39  ;;  %v3094_v44 = vpop.f32.mrf.mxu0  ;;  %v3107_v45 = vpop.f32.mrf.mxu1 }
 0x347   : > { %3338 = vmatpush.bf16.msra.mxu1 %v6972_v36  ;;  %v6098_v36 = vor.u32 %v6996_v33, %v6097_v31  ;;  %v7028_v31 = vld [vmem:[%s10291_s11 + $0x184] sm:$0xf0] }
 0x348   : > { %v9322_v47 = vadd.f32 %v3131_v42, %v3119_v43  ;;  %3325 = vmatpush.bf16.msra.mxu0 %v6964_v22  ;;  %4139 = vmatpush.bf16.msra.mxu3 %v6114_v3  ;;  %v6193_v22 = vld [vmem:[%s10291_s11 + $0x140] sm:$0xf] }
 0x349   : > { %v6241_v3 = vld [vmem:[%s10291_s11 + $0x1a0] sm:$0xf] }
 0x34a   : > { %v3137_v49 = vadd.f32 %v9322_v47, %v9320_v46 }
 0x34b   : > { %3339 = vmatpush.bf16.msra.mxu1 %v6971_v52  ;;  %v7056_v52 = vld [vmem:[%s10291_s11 + $0x264] sm:$0xf0] }
 0x34c   : > { %3138 = vadd.xlane.f32.xlu1 %v3137_v49  ;;  %4140 = vmatpush.bf16.msra.mxu3 %v6106_v21  ;;  %v6233_v21 = vld [vmem:[%s10291_s11 + $0x190] sm:$0xf] }
 0x34d   : > { %v3120_v50 = vpop.f32.mrf.mxu2  ;;  %v3133_v51 = vpop.f32.mrf.mxu3  ;;  %v6234_v35 = vor.u32 %v7030_v23, %v6233_v21  ;;  %v3135_v21 = vld [vmem:[%s10287_s7] sm:$0x3]  ;;  %v6147_v23 = vld [vmem:[%s10291_s11 + $0xe8] sm:$0xf0] }
 0x34e   : > { %v6057_v50 = vld [vmem:[%s10291_s11 + $0x30] sm:$0xf]  ;;  %v6963_v51 = vld [vmem:[%s10289_s9] sm:$0xff] }
 0x34f   : > { %3326 = vmatpush.bf16.msra.mxu0 %v6963_v51  ;;  %4160 = vmatpush.bf16.msrb.mxu1 %v6282_v62  ;;  %v6337_v51 = vld [vmem:[%s10291_s11 + $0x260] sm:$0xf]  ;;  %v6402_v62 = vor.u32 %v7072_v60, %v6401_v59 }
 0x350   : > { %4141 = vmatpush.bf16.msra.mxu3 %v6098_v36  ;;  %v6338_v53 = vor.u32 %v7056_v52, %v6337_v51  ;;  %v6369_v51 = vld [vmem:[%s10291_s11 + $0x2a0] sm:$0xf] }
 0x351   : > { %v6289_v60 = vld [vmem:[%s10291_s11 + $0x200] sm:$0xf] }
 0x353   : > { %4147 = vmatpush.bf16.msrb.mxu0 %v6218_v58  ;;  %4161 = vmatpush.bf16.msrb.mxu1 %v6274_v8  ;;  %v7034_v58 = vld [vmem:[%s10291_s11 + $0x1b4] sm:$0xf0]  ;;  %v6242_v8 = vor.u32 %v7032_v5, %v6241_v3  ;;  %v7060_v3 = vld [vmem:[%s10291_s11 + $0x284] sm:$0xf0] }
 0x354   : > { %v6250_v61 = vor.u32 %v7034_v58, %v6249_v55  ;;  %4142 = vmatmul.bf16.vlgmr.msra.gmra.mxu3 %v7603_v32  ;;  %v6298_v55 = vor.u32 %v7046_v17, %v6297_v54  ;;  %v7062_v58 = vld [vmem:[%s10291_s11 + $0x294] sm:$0xf0] }
 0x357   : > { %4148 = vmatpush.bf16.msrb.mxu0 %v6210_v7  ;;  %4162 = vmatpush.bf16.msrb.mxu1 %v6266_v18  ;;  %v7070_v7 = vld [vmem:[%s10291_s11 + $0x2d4] sm:$0xf0]  ;;  %v6313_v18 = vld [vmem:[%s10291_s11 + $0x230] sm:$0xf] }
 0x358   : > { %v6394_v9 = vor.u32 %v7070_v7, %v6393_v6  ;;  %v7009_v6 = vld [vmem:[%s10291_s11 + $0xf4] sm:$0xf]  ;;  %v6155_v7 = vld [vmem:[%s10291_s11 + $0xf8] sm:$0xf0] }
 0x35b   : > { %4149 = vmatpush.bf16.msrb.mxu0 %v6202_v16  ;;  %v7068_v16 = vld [vmem:[%s10291_s11 + $0x2c4] sm:$0xf0] }
 0x35c   : > { %v6386_v25 = vor.u32 %v7068_v16, %v6385_v14  ;;  %v6150_v14 = vor.u32 %v7007_v20, %v6147_v23  ;;  %v6989_v16 = vld [vmem:[%s10291_s11 + $0x54] sm:$0xf]  ;;  %v7086_v20 = vld [vmem:[%s10291_s11 + $0x354] sm:$0xf0] }
 0x3bf   : > { %v3139_v39 = vpop.xlane.xlu1 %3138 }
 0x3c0   : > { %v3147_v41 = vmul.f32 %v9410_v15, %v3139_v39  ;;  %v7020_v39 = vld [vmem:[%s10291_s11 + $0x144] sm:$0xf0] }
 0x3c2   : > { %v9420_v42 = vsub.f32 %v9320_v46, %v3147_v41  ;;  %v9423_v43 = vsub.f32 %v9322_v47, %v3147_v41  ;;  %v6986_v46 = vld [vmem:[%s10291_s11 + $0x34] sm:$0xf0]  ;;  %v6257_v41 = vld [vmem:[%s10291_s11 + $0x1c0] sm:$0xf] }
 0x3c3   : > { %v6058_v47 = vor.u32 %v6986_v46, %v6057_v50  ;;  %v6409_v50 = vld [vmem:[%s10291_s11 + $0x2f0] sm:$0xf]  ;;  %v7074_v46 = vld [vmem:[%s10291_s11 + $0x2f4] sm:$0xf0] }
 0x3c4   : > { %v3150_v44 = vmul.f32 %v9420_v42, %v9420_v42  ;;  %v3151_v45 = vmul.f32 %v9423_v43, %v9423_v43 }
 0x3c5   : > { %4125 = vmatpush.bf16.msra.mxu2 %v6058_v47  ;;  %v6410_v47 = vor.u32 %v7074_v46, %v6409_v50  ;;  %v6305_v50 = vld [vmem:[%s10291_s11 + $0x220] sm:$0xf]  ;;  %v7048_v46 = vld [vmem:[%s10291_s11 + $0x224] sm:$0xf0] }
 0x3c6   : > { %v3152_v49 = vadd.f32 %v3151_v45, %v3150_v44  ;;  %v7036_v44 = vld [vmem:[%s10291_s11 + $0x1c4] sm:$0xf0]  ;;  %v6194_v45 = vor.u32 %v7020_v39, %v6193_v22  ;;  %v6162_v22 = vor.u32 %v7012_v48, %v6161_v30  ;;  %v6377_v39 = vld [vmem:[%s10291_s11 + $0x2b0] sm:$0xf]  ;;  %v7005_v30 = vld [vmem:[%s10291_s11 + $0xd4] sm:$0xf] }
 0x3c7   : > { %4186 = vmatpush.bf16.msrb.mxu3 %v6410_v47  ;;  %v6306_v47 = vor.u32 %v7048_v46, %v6305_v50  ;;  %v6139_v48 = vld [vmem:[%s10291_s11 + $0xd8] sm:$0xf0]  ;;  %v7003_v46 = vld [vmem:[%s10291_s11 + $0xc4] sm:$0xf] }
 0x3c8   : > { %3153 = vadd.xlane.f32.xlu1 %v3152_v49  ;;  %v6258_v49 = vor.u32 %v7036_v44, %v6257_v41  ;;  %4150 = vmatpush.bf16.msrb.mxu0 %v6194_v45  ;;  %v7066_v41 = vld [vmem:[%s10291_s11 + $0x2b4] sm:$0xf0] }
 0x3c9   : > { %4126 = vmatpush.bf16.msra.mxu2 %v6050_v0  ;;  %v7054_v0 = vld [vmem:[%s10291_s11 + $0x254] sm:$0xf0]  ;;  %v6378_v44 = vor.u32 %v7066_v41, %v6377_v39  ;;  %v6987_v39 = vld [vmem:[%s10291_s11 + $0x44] sm:$0xf]  ;;  %v6067_v41 = vld [vmem:[%s10291_s11 + $0x48] sm:$0xf0] }
 0x3ca   : > { %4163 = vmatpush.bf16.msrb.mxu1 %v6258_v49  ;;  %v6330_v57 = vor.u32 %v7054_v0, %v6329_v63  ;;  %v6993_v63 = vld [vmem:[%s10291_s11 + $0x74] sm:$0xf]  ;;  %v6091_v0 = vld [vmem:[%s10291_s11 + $0x78] sm:$0xf0]  ;;  %v6070_v50 = vor.u32 %v6987_v39, %v6067_v41  ;;  %v7100_v39 = vld [vmem:[%s10291_s11 + $0x3c4] sm:$0xf0] }
 0x3cb   : > { %4187 = vmatpush.bf16.msrb.mxu3 %v6402_v62  ;;  %v6094_v2 = vor.u32 %v6993_v63, %v6091_v0  ;;  %v6979_v41 = vld [vmem:[%s10291_s11 + $0x4] sm:$0xf] }
 0x3cc   : > { %4151 = vmatpush.bf16.msrb.mxu0 %v6186_v56  ;;  %v6361_v56 = vld [vmem:[%s10291_s11 + $0x290] sm:$0xf] }
 0x3cd   : > { %4127 = vmatpush.bf16.msra.mxu2 %v6042_v11  ;;  %v7052_v11 = vld [vmem:[%s10291_s11 + $0x244] sm:$0xf0]  ;;  %v6362_v59 = vor.u32 %v7062_v58, %v6361_v56  ;;  %v6537_v56 = vld [vmem:[%s10291_s11 + $0x3f0] sm:$0xf]  ;;  %v7106_v58 = vld [vmem:[%s10291_s11 + $0x3f4] sm:$0xf0] }
 0x3ce   : > { %4164 = vmatpush.bf16.msrb.mxu1 %v6250_v61  ;;  %v6322_v12 = vor.u32 %v7052_v11, %v6321_v10  ;;  %v7044_v61 = vld [vmem:[%s10291_s11 + $0x204] sm:$0xf0]  ;;  %v6991_v10 = vld [vmem:[%s10291_s11 + $0x64] sm:$0xf]  ;;  %v6083_v11 = vld [vmem:[%s10291_s11 + $0x68] sm:$0xf0] }
 0x3cf   : > { %4188 = vmatpush.bf16.msrb.mxu3 %v6394_v9  ;;  %v6290_v62 = vor.u32 %v7044_v61, %v6289_v60  ;;  %v6158_v9 = vor.u32 %v7009_v6, %v6155_v7  ;;  %v6086_v19 = vor.u32 %v6991_v10, %v6083_v11  ;;  %v7001_v60 = vld [vmem:[%s10291_s11 + $0xb4] sm:$0xf]  ;;  %v6123_v61 = vld [vmem:[%s10291_s11 + $0xb8] sm:$0xf0]  ;;  %v7088_v7 = vld [vmem:[%s10291_s11 + $0x364] sm:$0xf0] }
 0x3d0   : > { %4152 = vmatpush.bf16.msrb.mxu0 %v6178_v4  ;;  %v6126_v0 = vor.u32 %v7001_v60, %v6123_v61  ;;  %v6999_v11 = vld [vmem:[%s10291_s11 + $0xa4] sm:$0xf]  ;;  %v6339_v60 = vld [vmem:[%s10291_s11 + $0x268] sm:$0xf0] }
 0x3d1   : > { %4128 = vmatpush.bf16.msra.mxu2 %v6034_v26  ;;  %v7050_v26 = vld [vmem:[%s10291_s11 + $0x234] sm:$0xf0] }
 0x3d2   : > { %4165 = vmatpush.bf16.msrb.mxu1 %v6242_v8  ;;  %v6314_v33 = vor.u32 %v7050_v26, %v6313_v18  ;;  %v6075_v18 = vld [vmem:[%s10291_s11 + $0x58] sm:$0xf0] }
 0x3d3   : > { %4189 = vmatpush.bf16.msrb.mxu3 %v6386_v25  ;;  %v6078_v25 = vor.u32 %v6989_v16, %v6075_v18  ;;  %v6981_v16 = vld [vmem:[%s10291_s11 + $0x14] sm:$0xf]  ;;  %v6043_v18 = vld [vmem:[%s10291_s11 + $0x18] sm:$0xf0] }
 0x3d4   : > { %4129 = vmatmul.bf16.vlgmr.msra.gmra.mxu2 %v7598_v28  ;;  %4153 = vmatpush.bf16.msrb.mxu0 %v6170_v13 }
 0x3d5   : > { %4173 = vmatpush.bf16.msrb.mxu2 %v6346_v24  ;;  %v6225_v24 = vld [vmem:[%s10291_s11 + $0x180] sm:$0xf] }
 0x3d6   : > { %4166 = vmatpush.bf16.msrb.mxu1 %v6234_v35  ;;  %v6226_v36 = vor.u32 %v7028_v31, %v6225_v24  ;;  %v3136_v35 = vld [vmem:[%s10288_s8] sm:$0x3]  ;;  %v3170_v24 = vperm.slane %v3135_v21, 0  ;;  %v3171_v31 = vperm.slane %v3135_v21, 1 }
 0x3d7   : > { %4190 = vmatpush.bf16.msrb.mxu3 %v6378_v44 }
 0x3d8   : > { %4154 = vmatpush.bf16.msrb.mxu0 %v6162_v22 }
 0x3d9   : > { %4174 = vmatpush.bf16.msrb.mxu2 %v6338_v53 }
 0x3da   : > { %4167 = vmatpush.bf16.msrb.mxu1 %v6226_v36  ;;  %v3177_v36 = vperm.slane %v3136_v35, 0 }
 0x3dd   : > { %4175 = vmatpush.bf16.msrb.mxu2 %v6330_v57  ;;  %v6353_v57 = vld [vmem:[%s10291_s11 + $0x280] sm:$0xf] }
 0x3de   : > { %v6354_v5 = vor.u32 %v7060_v3, %v6353_v57  ;;  %v6983_v3 = vld [vmem:[%s10291_s11 + $0x24] sm:$0xf] }
 0x3e1   : > { %4176 = vmatpush.bf16.msrb.mxu2 %v6322_v12 }
 0x3e5   : > { %4177 = vmatpush.bf16.msrb.mxu2 %v6314_v33  ;;  %v6142_v33 = vor.u32 %v7005_v30, %v6139_v48  ;;  %v6107_v30 = vld [vmem:[%s10291_s11 + $0x98] sm:$0xf0] }
 0x3e9   : > { %4178 = vmatpush.bf16.msrb.mxu2 %v6306_v47  ;;  %v6131_v47 = vld [vmem:[%s10291_s11 + $0xc8] sm:$0xf0] }
 0x3ed   : > { %4179 = vmatpush.bf16.msrb.mxu2 %v6298_v55  ;;  %v7090_v55 = vld [vmem:[%s10291_s11 + $0x374] sm:$0xf0] }
 0x3f1   : > { %4180 = vmatpush.bf16.msrb.mxu2 %v6290_v62 }
 0x3f4   : > { %4181 = vmatmul.bf16.vlgmr.msrb.gmra.mxu2 %v7735_v37 }
 0x3f5   : > { %4225 = vmatpush.bf16.msra.mxu2 %v6094_v2  ;;  %v6465_v2 = vld [vmem:[%s10291_s11 + $0x360] sm:$0xf] }
 0x3f6   : > { %v6466_v23 = vor.u32 %v7088_v7, %v6465_v2  ;;  %v7080_v2 = vld [vmem:[%s10291_s11 + $0x324] sm:$0xf0]  ;;  %v6331_v7 = vld [vmem:[%s10291_s11 + $0x258] sm:$0xf0] }
 0x3f9   : > { %4226 = vmatpush.bf16.msra.mxu2 %v6086_v19  ;;  %v6115_v19 = vld [vmem:[%s10291_s11 + $0xa8] sm:$0xf0] }
 0x3fa   : > { %v6118_v21 = vor.u32 %v6999_v11, %v6115_v19  ;;  %v7078_v19 = vld [vmem:[%s10291_s11 + $0x314] sm:$0xf0] }
 0x3fd   : > { %4227 = vmatpush.bf16.msra.mxu2 %v6078_v25  ;;  %v6046_v25 = vor.u32 %v6981_v16, %v6043_v18  ;;  %v6417_v16 = vld [vmem:[%s10291_s11 + $0x300] sm:$0xf]  ;;  %v7067_v18 = vld [vmem:[%s10291_s11 + $0x2c4] sm:$0xf] }
 0x401   : > { %4228 = vmatpush.bf16.msra.mxu2 %v6070_v50  ;;  %v6347_v50 = vld [vmem:[%s10291_s11 + $0x278] sm:$0xf0] }
 0x43b   : > { %v3154_v45 = vpop.xlane.xlu1 %3153 }
 0x43c   : > { %v3155_v49 = vmul.f32 %v3154_v45, %v9410_v15  ;;  %v7064_v15 = vld [vmem:[%s10291_s11 + $0x2a4] sm:$0xf0] }
 0x43d   : > { %v6370_v53 = vor.u32 %v7064_v15, %v6369_v51 }
 0x43e   : > { %v3156_v52 = vadd.f32 1e-05, %v3155_v49  ;;  %v3178_v49 = vperm.slane %v3136_v35, 1  ;;  %v7102_v35 = vld [vmem:[%s10291_s11 + $0x3d4] sm:$0xf0] }
 0x43f   : > { %4191 = vmatpush.bf16.msrb.mxu3 %v6370_v53  ;;  %v6059_v53 = vld [vmem:[%s10291_s11 + $0x38] sm:$0xf0] }
 0x440   : > { %7150 = vrsqrt.f32 %v3156_v52  ;;  %vm3163_vm6 = vweird.f32 %v3156_v52 }
 0x443   : > { %4192 = vmatpush.bf16.msrb.mxu3 %v6362_v59 }
 0x446   : > { %v7151_v1 = vpop.eup %7150 }
 0x447   : > { %v3158_v4 = vmul.f32 %v7151_v1, %v3156_v52  ;;  %4193 = vmatpush.bf16.msrb.mxu3 %v6354_v5  ;;  %vm3164_vm5 = vweird.f32 %v7151_v1  ;;  %v6134_v52 = vor.u32 %v7003_v46, %v6131_v47  ;;  %v6995_v46 = vld [vmem:[%s10291_s11 + $0x84] sm:$0xf] }
 0x448   : > { %vm3165_vm7 = vmor %vm3163_vm6, %vm3164_vm5 }
 0x449   : > { %v3159_v8 = vmul.f32 %v7151_v1, %v3158_v4  ;;  %v6051_v4 = vld [vmem:[%s10291_s11 + $0x28] sm:$0xf0] }
 0x44a   : > { %4194 = vmatmul.bf16.vlgmr.msrb.gmra.mxu3 %v7739_v40  ;;  %v6054_v10 = vor.u32 %v6983_v3, %v6051_v4  ;;  %v6497_v3 = vld [vmem:[%s10291_s11 + $0x3a0] sm:$0xf]  ;;  %v7096_v4 = vld [vmem:[%s10291_s11 + $0x3a4] sm:$0xf0] }
 0x44b   : > { %v3160_v12 = vmul.f32 0.5, %v3159_v8  ;;  %4238 = vmatpush.bf16.msra.mxu3 %v6158_v9  ;;  %v6529_v8 = vld [vmem:[%s10291_s11 + $0x3e0] sm:$0xf]  ;;  %v7104_v9 = vld [vmem:[%s10291_s11 + $0x3e4] sm:$0xf0] }
 0x44d   : > { %v3161_v13 = vsub.f32 1.5, %v3160_v12  ;;  %v6457_v12 = vld [vmem:[%s10291_s11 + $0x350] sm:$0xf] }
 0x44f   : > { %v3162_v26 = vmul.f32 %v7151_v1, %v3161_v13  ;;  %4239 = vmatpush.bf16.msra.mxu3 %v6150_v14  ;;  %v6530_v13 = vor.u32 %v7104_v9, %v6529_v8  ;;  %v6521_v14 = vld [vmem:[%s10291_s11 + $0x3d0] sm:$0xf]  ;;  %v7069_v9 = vld [vmem:[%s10291_s11 + $0x2d4] sm:$0xf] }
 0x451   : > { %v3166_v22 = vsel %vm3165_vm7, %v7151_v1, %v3162_v26  ;;  %v6538_v1 = vor.u32 %v7106_v58, %v6537_v56  ;;  %v6997_v26 = vld [vmem:[%s10291_s11 + $0x94] sm:$0xf]  ;;  %v7098_v56 = vld [vmem:[%s10291_s11 + $0x3b4] sm:$0xf0] }
 0x452   : > { %v3167_v44 = vmul.f32 %v3166_v22, %v9420_v42  ;;  %v3168_v45 = vmul.f32 %v3166_v22, %v9423_v43  ;;  %v6473_v42 = vld [vmem:[%s10291_s11 + $0x370] sm:$0xf]  ;;  %v6985_v43 = vld [vmem:[%s10291_s11 + $0x34] sm:$0xf]  ;;  %v6110_v48 = vor.u32 %v6997_v26, %v6107_v30  ;;  %v6458_v22 = vor.u32 %v7086_v20, %v6457_v12  ;;  %v7094_v20 = vld [vmem:[%s10291_s11 + $0x394] sm:$0xf0] }
 0x453   : > { %4240 = vmatpush.bf16.msra.mxu3 %v6142_v33  ;;  %v6062_v59 = vor.u32 %v6985_v43, %v6059_v53  ;;  %v6474_v57 = vor.u32 %v7090_v55, %v6473_v42  ;;  %v6513_v33 = vld [vmem:[%s10291_s11 + $0x3c0] sm:$0xf]  ;;  %v7073_v42 = vld [vmem:[%s10291_s11 + $0x2f4] sm:$0xf]  ;;  %v6411_v55 = vld [vmem:[%s10291_s11 + $0x2f8] sm:$0xf0] }
 0x454   : > { %v3174_v51 = vmul.f32 %v3170_v24, %v3167_v44  ;;  %v3175_v15 = vmul.f32 %v3171_v31, %v3168_v45  ;;  %v6449_v24 = vld [vmem:[%s10291_s11 + $0x340] sm:$0xf]  ;;  %v7084_v31 = vld [vmem:[%s10291_s11 + $0x344] sm:$0xf0]  ;;  %v6035_v44 = vld [vmem:[%s10291_s11 + $0x8] sm:$0xf0]  ;;  %v6514_v53 = vor.u32 %v7100_v39, %v6513_v33  ;;  %v6414_v58 = vor.u32 %v7073_v42, %v6411_v55 }
 0x455   : > { %4229 = vmatpush.bf16.msra.mxu2 %v6062_v59  ;;  %v6038_v45 = vor.u32 %v6979_v41, %v6035_v44  ;;  %v6450_v43 = vor.u32 %v7084_v31, %v6449_v24  ;;  %v7055_v59 = vld [vmem:[%s10291_s11 + $0x264] sm:$0xf]  ;;  %v6489_v12 = vld [vmem:[%s10291_s11 + $0x390] sm:$0xf]  ;;  %v7076_v30 = vld [vmem:[%s10291_s11 + $0x304] sm:$0xf0] }
 0x456   : > { %v3181_v54 = vadd.f32 %v3177_v36, %v3174_v51  ;;  %v3182_v17 = vadd.f32 %v3178_v49, %v3175_v15  ;;  %v6522_v36 = vor.u32 %v7102_v35, %v6521_v14  ;;  %v7057_v49 = vld [vmem:[%s10291_s11 + $0x274] sm:$0xf]  ;;  %v6099_v51 = vld [vmem:[%s10291_s11 + $0x88] sm:$0xf0]  ;;  %v6441_v15 = vld [vmem:[%s10291_s11 + $0x330] sm:$0xf]  ;;  %v6342_v61 = vor.u32 %v7055_v59, %v6339_v60 }
 0x457   : > { %4241 = vmatpush.bf16.msra.mxu3 %v6134_v52  ;;  %v6350_v47 = vor.u32 %v7057_v49, %v6347_v50  ;;  %v6102_v52 = vor.u32 %v6995_v46, %v6099_v51  ;;  %v6387_v35 = vld [vmem:[%s10291_s11 + $0x2c8] sm:$0xf0]  ;;  %v6490_v26 = vor.u32 %v7094_v20, %v6489_v12  ;;  %v7092_v24 = vld [vmem:[%s10291_s11 + $0x384] sm:$0xf0]  ;;  %v7025_v31 = vld [vmem:[%s10291_s11 + $0x174] sm:$0xf]  ;;  %v6418_v46 = vor.u32 %v7076_v30, %v6417_v16 }
 0x458   : > { %v3183_v62 = vmax.f32 %v3181_v54, 0.0  ;;  %v3184_v63 = vmax.f32 %v3182_v17, 0.0  ;;  %v7082_v54 = vld [vmem:[%s10291_s11 + $0x334] sm:$0xf0]  ;;  %v6505_v17 = vld [vmem:[%s10291_s11 + $0x3b0] sm:$0xf]  ;;  %v6390_v33 = vor.u32 %v7067_v18, %v6387_v35 }
 0x459   : > { %4230 = vmatpush.bf16.msra.mxu2 %v6054_v10  ;;  %v6395_v10 = vld [vmem:[%s10291_s11 + $0x2d8] sm:$0xf0]  ;;  %v7041_v41 = vld [vmem:[%s10291_s11 + $0x1f4] sm:$0xf]  ;;  %v7047_v42 = vld [vmem:[%s10291_s11 + $0x224] sm:$0xf] }
 0x45a   : > { %v3185_v5 = vpack.c.bf16 %v3183_v62, %v3183_v62  ;;  %v3186_v6 = vpack.c.bf16 %v3184_v63, %v3184_v63  ;;  %v7071_v62 = vld [vmem:[%s10291_s11 + $0x2e4] sm:$0xf]  ;;  %v6403_v63 = vld [vmem:[%s10291_s11 + $0x2e8] sm:$0xf0]  ;;  %v6219_v39 = vld [vmem:[%s10291_s11 + $0x178] sm:$0xf0] }
 0x45b   : > { %4242 = vmatpush.bf16.msra.mxu3 %v6126_v0  ;;  %v6442_v0 = vor.u32 %v7082_v54, %v6441_v15  ;;  %v6283_v44 = vld [vmem:[%s10291_s11 + $0x1f8] sm:$0xf0]  ;;  %v7065_v49 = vld [vmem:[%s10291_s11 + $0x2b4] sm:$0xf]  ;;  %v6222_v51 = vor.u32 %v7025_v31, %v6219_v39  ;;  %v7039_v54 = vld [vmem:[%s10291_s11 + $0x1e4] sm:$0xf] }
 0x45c   : > { %3327 = vmatmul.bf16.vlgmr.msra.gmra.mxu0 %v3185_v5  ;;  %3340 = vmatmul.bf16.vlgmr.msra.gmra.mxu1 %v3186_v6  ;;  %v6406_v5 = vor.u32 %v7071_v62, %v6403_v63  ;;  %v7053_v6 = vld [vmem:[%s10291_s11 + $0x254] sm:$0xf]  ;;  %v6379_v50 = vld [vmem:[%s10291_s11 + $0x2b8] sm:$0xf0]  ;;  %v6286_v15 = vor.u32 %v7041_v41, %v6283_v44  ;;  %v6371_v59 = vld [vmem:[%s10291_s11 + $0x2a8] sm:$0xf0] }
 0x45d   : > { %4199 = vmatpush.bf16.msra.mxu0 %v6474_v57  ;;  %4212 = vmatpush.bf16.msra.mxu1 %v6538_v1  ;;  %v6506_v57 = vor.u32 %v7098_v56, %v6505_v17  ;;  %v6433_v1 = vld [vmem:[%s10291_s11 + $0x320] sm:$0xf]  ;;  %v6334_v8 = vor.u32 %v7053_v6, %v6331_v7  ;;  %v6275_v17 = vld [vmem:[%s10291_s11 + $0x1e8] sm:$0xf0]  ;;  %v6382_v55 = vor.u32 %v7065_v49, %v6379_v50  ;;  %v7021_v62 = vld [vmem:[%s10291_s11 + $0x154] sm:$0xf] }
 0x45e   : > { %4231 = vmatpush.bf16.msra.mxu2 %v6046_v25  ;;  %v6434_v11 = vor.u32 %v7080_v2, %v6433_v1  ;;  %v7045_v63 = vld [vmem:[%s10291_s11 + $0x214] sm:$0xf]  ;;  %v6267_v2 = vld [vmem:[%s10291_s11 + $0x1d8] sm:$0xf0]  ;;  %v6179_v31 = vld [vmem:[%s10291_s11 + $0x128] sm:$0xf0] }
 0x45f   : > { %4243 = vmatpush.bf16.msra.mxu3 %v6118_v21  ;;  %v6398_v21 = vor.u32 %v7069_v9, %v6395_v10  ;;  %v7037_v1 = vld [vmem:[%s10291_s11 + $0x1d4] sm:$0xf]  ;;  %v6363_v6 = vld [vmem:[%s10291_s11 + $0x298] sm:$0xf0]  ;;  %v7019_v9 = vld [vmem:[%s10291_s11 + $0x144] sm:$0xf] }
 0x460   : > { %v7043_v10 = vld [vmem:[%s10291_s11 + $0x204] sm:$0xf]  ;;  %v7017_v16 = vld [vmem:[%s10291_s11 + $0x134] sm:$0xf]  ;;  %v6187_v18 = vld [vmem:[%s10291_s11 + $0x138] sm:$0xf0] }
 0x461   : > { %4200 = vmatpush.bf16.msra.mxu0 %v6466_v23  ;;  %4213 = vmatpush.bf16.msra.mxu1 %v6530_v13  ;;  %v7051_v23 = vld [vmem:[%s10291_s11 + $0x244] sm:$0xf]  ;;  %v6323_v13 = vld [vmem:[%s10291_s11 + $0x248] sm:$0xf0]  ;;  %v7033_v35 = vld [vmem:[%s10291_s11 + $0x1b4] sm:$0xf]  ;;  %v6190_v30 = vor.u32 %v7017_v16, %v6187_v18 }
 0x462   : > { %4232 = vmatpush.bf16.msra.mxu2 %v6038_v45  ;;  %v6326_v14 = vor.u32 %v7051_v23, %v6323_v13  ;;  %v6355_v23 = vld [vmem:[%s10291_s11 + $0x288] sm:$0xf0]  ;;  %v7013_v41 = vld [vmem:[%s10291_s11 + $0x114] sm:$0xf]  ;;  %v6171_v44 = vld [vmem:[%s10291_s11 + $0x118] sm:$0xf0] }
 0x463   : > { %4244 = vmatpush.bf16.msra.mxu3 %v6110_v48  ;;  %v6481_v48 = vld [vmem:[%s10291_s11 + $0x380] sm:$0xf]  ;;  %v6174_v49 = vor.u32 %v7013_v41, %v6171_v44  ;;  %v6427_v16 = vld [vmem:[%s10291_s11 + $0x318] sm:$0xf0]  ;;  %v7093_v18 = vld [vmem:[%s10291_s11 + $0x394] sm:$0xf]  ;;  %v4143_v41 = vpop.f32.mrf.mxu3 }
 0x464   : > { %v7113_v44 = vld [vmem:[%s10293_s13 + $0x30] sm:$0xff] }
 0x465   : > { %4201 = vmatpush.bf16.msra.mxu0 %v6458_v22  ;;  %4214 = vmatpush.bf16.msra.mxu1 %v6522_v36  ;;  %v7049_v22 = vld [vmem:[%s10291_s11 + $0x234] sm:$0xf]  ;;  %v6315_v36 = vld [vmem:[%s10291_s11 + $0x238] sm:$0xf0] }
 0x466   : > { %4277 = vmatpush.bf16.msrb.mxu2 %v6350_v47  ;;  %v6318_v45 = vor.u32 %v7049_v22, %v6315_v36  ;;  %v6482_v47 = vor.u32 %v7092_v24, %v6481_v48  ;;  %v7015_v24 = vld [vmem:[%s10291_s11 + $0x124] sm:$0xf]  ;;  %v6243_v22 = vld [vmem:[%s10291_s11 + $0x1a8] sm:$0xf0] }
 0x467   : > { %4245 = vmatpush.bf16.msra.mxu3 %v6102_v52  ;;  %4233 = vmatmul.bf16.vlgmr.msra.gmra.mxu2 %v7598_v28  ;;  %v6498_v28 = vor.u32 %v7096_v4, %v6497_v3  ;;  %v7023_v52 = vld [vmem:[%s10291_s11 + $0x164] sm:$0xf]  ;;  %v6182_v36 = vor.u32 %v7015_v24, %v6179_v31  ;;  %v6483_v31 = vld [vmem:[%s10291_s11 + $0x388] sm:$0xf0] }
 0x468   : > { %v7091_v24 = vld [vmem:[%s10291_s11 + $0x384] sm:$0xf] }
 0x469   : > { %4202 = vmatpush.bf16.msra.mxu0 %v6450_v43  ;;  %4215 = vmatpush.bf16.msra.mxu1 %v6514_v53  ;;  %v6307_v43 = vld [vmem:[%s10291_s11 + $0x228] sm:$0xf0] }
 0x46a   : > { %4246 = vmatmul.bf16.vlgmr.msra.gmra.mxu3 %v7603_v32  ;;  %4278 = vmatpush.bf16.msrb.mxu2 %v6342_v61  ;;  %v6425_v32 = vld [vmem:[%s10291_s11 + $0x310] sm:$0xf]  ;;  %v6211_v53 = vld [vmem:[%s10291_s11 + $0x168] sm:$0xf0]  ;;  %v6310_v56 = vor.u32 %v7047_v42, %v6307_v43  ;;  %v6278_v61 = vor.u32 %v7039_v54, %v6275_v17  ;;  %v7105_v42 = vld [vmem:[%s10291_s11 + $0x3f4] sm:$0xf] }
 0x46b   : > { %4290 = vmatpush.bf16.msrb.mxu3 %v6414_v58  ;;  %v6426_v25 = vor.u32 %v7078_v19, %v6425_v32  ;;  %v7063_v58 = vld [vmem:[%s10291_s11 + $0x2a4] sm:$0xf]  ;;  %v6214_v60 = vor.u32 %v7023_v52, %v6211_v53  ;;  %v6259_v19 = vld [vmem:[%s10291_s11 + $0x1c8] sm:$0xf0]  ;;  %v6475_v52 = vld [vmem:[%s10291_s11 + $0x378] sm:$0xf0] }
 0x46c   : > { %4155 = vmatmul.bf16.vlgmr.msrb.gmra.mxu0 %v7596_v27  ;;  %4168 = vmatmul.bf16.vlgmr.msrb.gmra.mxu1 %v7600_v29  ;;  %v6374_v3 = vor.u32 %v7063_v58, %v6371_v59  ;;  %v7035_v32 = vld [vmem:[%s10291_s11 + $0x1c4] sm:$0xf]  ;;  %v6539_v43 = vld [vmem:[%s10291_s11 + $0x3f8] sm:$0xf0]  ;;  %v6467_v58 = vld [vmem:[%s10291_s11 + $0x368] sm:$0xf0] }
 0x46d   : > { %4203 = vmatpush.bf16.msra.mxu0 %v6442_v0  ;;  %4216 = vmatpush.bf16.msra.mxu1 %v6506_v57  ;;  %v6299_v0 = vld [vmem:[%s10291_s11 + $0x218] sm:$0xf0]  ;;  %v7103_v59 = vld [vmem:[%s10291_s11 + $0x3e4] sm:$0xf] }
 0x46e   : > { %4279 = vmatpush.bf16.msrb.mxu2 %v6334_v8  ;;  %v6203_v57 = vld [vmem:[%s10291_s11 + $0x158] sm:$0xf0]  ;;  %v6302_v4 = vor.u32 %v7045_v63, %v6299_v0  ;;  %v6270_v8 = vor.u32 %v7037_v1, %v6267_v2  ;;  %v7085_v63 = vld [vmem:[%s10291_s11 + $0x354] sm:$0xf] }
 0x46f   : > { %4291 = vmatpush.bf16.msrb.mxu3 %v6406_v5  ;;  %v7061_v5 = vld [vmem:[%s10291_s11 + $0x294] sm:$0xf]  ;;  %v6206_v7 = vor.u32 %v7021_v62, %v6203_v57  ;;  %v6459_v0 = vld [vmem:[%s10291_s11 + $0x358] sm:$0xf0] }
 0x470   : > { %v6366_v12 = vor.u32 %v7061_v5, %v6363_v6  ;;  %v7101_v57 = vld [vmem:[%s10291_s11 + $0x3d4] sm:$0xf]  ;;  %v6523_v1 = vld [vmem:[%s10291_s11 + $0x3d8] sm:$0xf0]  ;;  %v6462_v2 = vor.u32 %v7085_v63, %v6459_v0  ;;  %v6451_v5 = vld [vmem:[%s10291_s11 + $0x348] sm:$0xf0] }
 0x471   : > { %4204 = vmatpush.bf16.msra.mxu0 %v6434_v11  ;;  %4217 = vmatpush.bf16.msra.mxu1 %v6498_v28  ;;  %v6291_v11 = vld [vmem:[%s10291_s11 + $0x208] sm:$0xf0]  ;;  %v7099_v6 = vld [vmem:[%s10291_s11 + $0x3c4] sm:$0xf] }
 0x472   : > { %4280 = vmatpush.bf16.msrb.mxu2 %v6326_v14  ;;  %v6195_v28 = vld [vmem:[%s10291_s11 + $0x148] sm:$0xf0]  ;;  %v6294_v20 = vor.u32 %v7043_v10, %v6291_v11  ;;  %v6262_v14 = vor.u32 %v7035_v32, %v6259_v19  ;;  %v7097_v10 = vld [vmem:[%s10291_s11 + $0x3b4] sm:$0xf]  ;;  %v6507_v11 = vld [vmem:[%s10291_s11 + $0x3b8] sm:$0xf0] }
 0x473   : > { %4292 = vmatpush.bf16.msrb.mxu3 %v6398_v21  ;;  %v7059_v21 = vld [vmem:[%s10291_s11 + $0x284] sm:$0xf]  ;;  %v6198_v13 = vor.u32 %v7019_v9, %v6195_v28  ;;  %v6443_v9 = vld [vmem:[%s10291_s11 + $0x338] sm:$0xf0]  ;;  %v6510_v32 = vor.u32 %v7097_v10, %v6507_v11  ;;  %v7121_v11 = vld [vmem:[%s10293_s13 + $0x70] sm:$0xff] }
 0x474   : > { %v7079_v19 = vld [vmem:[%s10291_s11 + $0x324] sm:$0xf] }
 0x475   : > { %4205 = vmatpush.bf16.msra.mxu0 %v6426_v25  ;;  %4218 = vmatpush.bf16.msra.mxu1 %v6490_v26  ;;  %v6251_v25 = vld [vmem:[%s10291_s11 + $0x1b8] sm:$0xf0]  ;;  %v6358_v26 = vor.u32 %v7059_v21, %v6355_v23  ;;  %v6499_v21 = vld [vmem:[%s10291_s11 + $0x3a8] sm:$0xf0] }
 0x476   : > { %4281 = vmatpush.bf16.msrb.mxu2 %v6318_v45  ;;  %v6254_v48 = vor.u32 %v7033_v35, %v6251_v25  ;;  %v7029_v45 = vld [vmem:[%s10291_s11 + $0x194] sm:$0xf]  ;;  %v6491_v35 = vld [vmem:[%s10291_s11 + $0x398] sm:$0xf0] }
 0x477   : > { %4293 = vmatpush.bf16.msrb.mxu3 %v6390_v33  ;;  %v7031_v33 = vld [vmem:[%s10291_s11 + $0x1a4] sm:$0xf] }
 0x478   : > { %v6246_v39 = vor.u32 %v7031_v33, %v6243_v22  ;;  %v6486_v22 = vor.u32 %v7091_v24, %v6483_v31  ;;  %v7115_v24 = vld [vmem:[%s10293_s13 + $0x40] sm:$0xff] }
 0x479   : > { %4206 = vmatpush.bf16.msra.mxu0 %v6418_v46  ;;  %4219 = vmatpush.bf16.msra.mxu1 %v6482_v47  ;;  %v7011_v46 = vld [vmem:[%s10291_s11 + $0x104] sm:$0xf]  ;;  %v6163_v47 = vld [vmem:[%s10291_s11 + $0x108] sm:$0xf0] }
 0x47a   : > { %4282 = vmatpush.bf16.msrb.mxu2 %v6310_v56  ;;  %v6166_v53 = vor.u32 %v7011_v46, %v6163_v47  ;;  %v7087_v56 = vld [vmem:[%s10291_s11 + $0x364] sm:$0xf]  ;;  %v7109_v47 = vld [vmem:[%s10293_s13 + $0x10] sm:$0xff] }
 0x47b   : > { %4294 = vmatpush.bf16.msrb.mxu3 %v6382_v55  ;;  %v6542_v55 = vor.u32 %v7105_v42, %v6539_v43  ;;  %v7108_v42 = vld [vmem:[%s10293_s13 + $0x8] sm:$0xff] }
 0x47c   : > { %4207 = vmatmul.bf16.vlgmr.msra.gmra.mxu0 %v7727_v34  ;;  %4220 = vmatmul.bf16.vlgmr.msra.gmra.mxu1 %v7737_v38 }
 0x47d   : > { %4251 = vmatpush.bf16.msrb.mxu0 %v6222_v51  ;;  %4264 = vmatpush.bf16.msrb.mxu1 %v6286_v15  ;;  %v7027_v51 = vld [vmem:[%s10291_s11 + $0x184] sm:$0xf]  ;;  %v7089_v15 = vld [vmem:[%s10291_s11 + $0x374] sm:$0xf] }
 0x47e   : > { %4283 = vmatpush.bf16.msrb.mxu2 %v6302_v4  ;;  %v6478_v17 = vor.u32 %v7089_v15, %v6475_v52  ;;  %v7083_v4 = vld [vmem:[%s10291_s11 + $0x344] sm:$0xf] }
 0x47f   : > { %4295 = vmatpush.bf16.msrb.mxu3 %v6374_v3  ;;  %v6526_v3 = vor.u32 %v7101_v57, %v6523_v1 }
 0x481   : > { %4252 = vmatpush.bf16.msrb.mxu0 %v6214_v60  ;;  %4265 = vmatpush.bf16.msrb.mxu1 %v6278_v61  ;;  %v6531_v60 = vld [vmem:[%s10291_s11 + $0x3e8] sm:$0xf0]  ;;  %v6470_v61 = vor.u32 %v7087_v56, %v6467_v58  ;;  %v7107_v56 = vld [vmem:[%s10293_s13] sm:$0xff] }
 0x482   : > { %4284 = vmatpush.bf16.msrb.mxu2 %v6294_v20  ;;  %v6534_v62 = vor.u32 %v7103_v59, %v6531_v60  ;;  %v7095_v20 = vld [vmem:[%s10291_s11 + $0x3a4] sm:$0xf] }
 0x483   : > { %4296 = vmatpush.bf16.msrb.mxu3 %v6366_v12  ;;  %v6435_v12 = vld [vmem:[%s10291_s11 + $0x328] sm:$0xf0] }
 0x484   : > { %v6438_v23 = vor.u32 %v7079_v19, %v6435_v12  ;;  %v7120_v19 = vld [vmem:[%s10293_s13 + $0x68] sm:$0xff] }
 0x485   : > { %4253 = vmatpush.bf16.msrb.mxu0 %v6206_v7  ;;  %4266 = vmatpush.bf16.msrb.mxu1 %v6270_v8  ;;  %v7081_v8 = vld [vmem:[%s10291_s11 + $0x334] sm:$0xf] }
 0x486   : > { %4285 = vmatmul.bf16.vlgmr.msrb.gmra.mxu2 %v7735_v37  ;;  %v6235_v37 = vld [vmem:[%s10291_s11 + $0x198] sm:$0xf0]  ;;  %v6446_v28 = vor.u32 %v7081_v8, %v6443_v9 }
 0x487   : > { %4297 = vmatpush.bf16.msrb.mxu3 %v6358_v26  ;;  %v6238_v50 = vor.u32 %v7029_v45, %v6235_v37  ;;  %v6494_v26 = vor.u32 %v7093_v18, %v6491_v35  ;;  %v4145_v37 = vpop.f32.mrf.mxu3  ;;  %v7122_v9 = vld [vmem:[%s10293_s13 + $0x78] sm:$0xff] }
 0x489   : > { %4254 = vmatpush.bf16.msrb.mxu0 %v6198_v13  ;;  %4267 = vmatpush.bf16.msrb.mxu1 %v6262_v14  ;;  %v6502_v13 = vor.u32 %v7095_v20, %v6499_v21  ;;  %v7077_v14 = vld [vmem:[%s10291_s11 + $0x314] sm:$0xf] }
 0x48a   : > { %4298 = vmatmul.bf16.vlgmr.msrb.gmra.mxu3 %v7739_v40  ;;  %v6227_v40 = vld [vmem:[%s10291_s11 + $0x188] sm:$0xf0]  ;;  %v6430_v25 = vor.u32 %v7077_v14, %v6427_v16  ;;  %v7117_v16 = vld [vmem:[%s10293_s13 + $0x50] sm:$0xff] }
 0x48b   : > { %v6230_v54 = vor.u32 %v7027_v51, %v6227_v40  ;;  %v7141_v51 = vld [vmem:[%s10290_s10] ss:$0 sm:$0xff]  ;;  %4478 = vmatpush.bf16.msra.mxu3 %v7122_v9 }
 0x48d   : > { %4255 = vmatpush.bf16.msrb.mxu0 %v6190_v30  ;;  %4268 = vmatpush.bf16.msrb.mxu1 %v6254_v48  ;;  %v7075_v30 = vld [vmem:[%s10291_s11 + $0x304] sm:$0xf]  ;;  %v6419_v48 = vld [vmem:[%s10291_s11 + $0x308] sm:$0xf0] }
 0x48e   : > { %v6422_v33 = vor.u32 %v7075_v30, %v6419_v48 }
 0x48f   : > { %4479 = vmatpush.bf16.msra.mxu3 %v7121_v11 }
 0x491   : > { %4256 = vmatpush.bf16.msrb.mxu0 %v6182_v36  ;;  %4269 = vmatpush.bf16.msrb.mxu1 %v6246_v39  ;;  %v7114_v36 = vld [vmem:[%s10293_s13 + $0x38] sm:$0xff]  ;;  %v4130_v39 = vpop.f32.mrf.mxu2 }
 0x492   : > { %4465 = vmatpush.bf16.msra.mxu2 %v7114_v36 }
 0x493   : > { %4480 = vmatpush.bf16.msra.mxu3 %v7120_v19 }
 0x495   : > { %4257 = vmatpush.bf16.msrb.mxu0 %v6174_v49  ;;  %4270 = vmatpush.bf16.msrb.mxu1 %v6238_v50  ;;  %v7110_v49 = vld [vmem:[%s10293_s13 + $0x18] sm:$0xff] }
 0x496   : > { %4466 = vmatpush.bf16.msra.mxu2 %v7113_v44 }
 0x499   : > { %4258 = vmatpush.bf16.msrb.mxu0 %v6166_v53  ;;  %4271 = vmatpush.bf16.msrb.mxu1 %v6230_v54  ;;  %v4132_v45 = vpop.f32.mrf.mxu2  ;;  %v3475_v54 = vld [vmem:[%s10292_s12] sm:$0x3] }
 0x49a   : > { %v3478_v31 = vperm.slane %v3475_v54, 1 }
 0x49c   : > { %4259 = vmatmul.bf16.vlgmr.msrb.gmra.mxu0 %v7596_v27  ;;  %4272 = vmatmul.bf16.vlgmr.msrb.gmra.mxu1 %v7600_v29  ;;  %v6515_v27 = vld [vmem:[%s10291_s11 + $0x3c8] sm:$0xf0]  ;;  %v6454_v29 = vor.u32 %v7083_v4, %v6451_v5 }
 0x49d   : > { %4303 = vmatpush.bf16.msra.mxu0 %v6478_v17  ;;  %4316 = vmatpush.bf16.msra.mxu1 %v6542_v55  ;;  %v6518_v7 = vor.u32 %v7099_v6, %v6515_v27  ;;  %v3477_v55 = vperm.slane %v3475_v54, 0  ;;  %v7125_v54 = vld [vmem:[%s10295_s15 + $0x10] sm:$0xff] }
 0x49f   : > { %v4131_v60 = vadd.f32 %v4130_v39, %v3477_v55 }
 0x4a1   : > { %4304 = vmatpush.bf16.msra.mxu0 %v6470_v61  ;;  %4317 = vmatpush.bf16.msra.mxu1 %v6534_v62  ;;  %v4182_v50 = vpop.f32.mrf.mxu2  ;;  %v4144_v61 = vadd.f32 %v4143_v41, %v4131_v60 }
 0x4a5   : > { %4305 = vmatpush.bf16.msra.mxu0 %v6462_v2  ;;  %4318 = vmatpush.bf16.msra.mxu1 %v6526_v3 }
 0x4a9   : > { %4306 = vmatpush.bf16.msra.mxu0 %v6454_v29  ;;  %4319 = vmatpush.bf16.msra.mxu1 %v6518_v7  ;;  %v4184_v43 = vpop.f32.mrf.mxu2 }
 0x4aa   : > { %v7127_v43 = vld [vmem:[%s10295_s15 + $0x20] sm:$0xff] }
 0x4ad   : > { %4307 = vmatpush.bf16.msra.mxu0 %v6446_v28  ;;  %4320 = vmatpush.bf16.msra.mxu1 %v6510_v32 }
 0x4b1   : > { %4308 = vmatpush.bf16.msra.mxu0 %v6438_v23  ;;  %4321 = vmatpush.bf16.msra.mxu1 %v6502_v13  ;;  %v7119_v23 = vld [vmem:[%s10293_s13 + $0x60] sm:$0xff]  ;;  %v7118_v13 = vld [vmem:[%s10293_s13 + $0x58] sm:$0xff] }
 0x4b2   : > { %4481 = vmatpush.bf16.msra.mxu3 %v7119_v23 }
 0x4b5   : > { %4309 = vmatpush.bf16.msra.mxu0 %v6430_v25  ;;  %4322 = vmatpush.bf16.msra.mxu1 %v6494_v26  ;;  %v7116_v25 = vld [vmem:[%s10293_s13 + $0x48] sm:$0xff] }
 0x4b6   : > { %4482 = vmatpush.bf16.msra.mxu3 %v7118_v13 }
 0x4b9   : > { %4310 = vmatpush.bf16.msra.mxu0 %v6422_v33  ;;  %4323 = vmatpush.bf16.msra.mxu1 %v6486_v22 }
 0x4ba   : > { %4483 = vmatpush.bf16.msra.mxu3 %v7117_v16 }
 0x4bc   : > { %4311 = vmatmul.bf16.vlgmr.msra.gmra.mxu0 %v7727_v34  ;;  %4324 = vmatmul.bf16.vlgmr.msra.gmra.mxu1 %v7737_v38  ;;  %v7112_v34 = vld [vmem:[%s10293_s13 + $0x28] sm:$0xff]  ;;  %v7111_v38 = vld [vmem:[%s10293_s13 + $0x20] sm:$0xff] }
 0x4bd   : > { %4467 = vmatpush.bf16.msra.mxu2 %v7112_v34 }
 0x4be   : > { %4484 = vmatpush.bf16.msra.mxu3 %v7116_v25 }
 0x4c1   : > { %4468 = vmatpush.bf16.msra.mxu2 %v7111_v38 }
 0x4c2   : > { %4485 = vmatpush.bf16.msra.mxu3 %v7115_v24 }
 0x4c5   : > { %4469 = vmatpush.bf16.msra.mxu2 %v7110_v49 }
 0x4c9   : > { %4470 = vmatpush.bf16.msra.mxu2 %v7109_v47 }
 0x4cd   : > { %v4195_v46 = vpop.f32.mrf.mxu3  ;;  %4471 = vmatpush.bf16.msra.mxu2 %v7108_v42  ;;  %v7128_v42 = vld [vmem:[%s10295_s15 + $0x28] sm:$0xff] }
 0x4d1   : > { %4472 = vmatpush.bf16.msra.mxu2 %v7107_v56  ;;  %v7124_v56 = vld [vmem:[%s10295_s15 + $0x8] sm:$0xff] }
 0x4d5   : > { %v4197_v53 = vpop.f32.mrf.mxu3 }
 0x4d6   : > { %v7126_v53 = vld [vmem:[%s10295_s15 + $0x18] sm:$0xff] }
 0x4d9   : > { %v3328_v40 = vpop.f32.mrf.mxu0  ;;  %v3341_v15 = vpop.f32.mrf.mxu1 }
 0x4da   : > { %v3329_v52 = vadd.f32 %v7141_v51, %v3328_v40 }
 0x4dc   : > { %v3342_v17 = vadd.f32 %v3341_v15, %v3329_v52  ;;  %v7130_v15 = vld [vmem:[%s10295_s15 + $0x38] sm:$0xff]  ;;  %v7129_v52 = vld [vmem:[%s10295_s15 + $0x30] sm:$0xff] }
 0x4dd   : > { %4561 = vmatpush.bf16.msrb.mxu0 %v7130_v15 }
 0x4de   : > { %3346 = vst.msk [vmem:[%s580_s24] sm:$0xff] %vm3345_vm8, %v3342_v17 }
 0x4e1   : > { %v3330_v58 = vpop.f32.mrf.mxu0  ;;  %v3343_v59 = vpop.f32.mrf.mxu1  ;;  %4562 = vmatpush.bf16.msrb.mxu0 %v7129_v52 }
 0x4e2   : > { %v7123_v58 = vld [vmem:[%s10295_s15] sm:$0xff] }
 0x4e3   : > { %v7142_v59 = vld [vmem:[%s10294_s14] ss:$0 sm:$0xff] }
 0x4e5   : > { %4563 = vmatpush.bf16.msrb.mxu0 %v7128_v42 }
 0x4e9   : > { %v4156_v62 = vpop.f32.mrf.mxu0  ;;  %v4169_v63 = vpop.f32.mrf.mxu1  ;;  %4564 = vmatpush.bf16.msrb.mxu0 %v7127_v43 }
 0x4ea   : > { %v4157_v0 = vadd.f32 %v4156_v62, %v4144_v61  ;;  %v4234_v57 = vpop.f32.mrf.mxu2 }
 0x4eb   : > { %v4235_v33 = vadd.f32 %v4234_v57, %v3478_v31 }
 0x4ec   : > { %v4170_v2 = vadd.f32 %v4169_v63, %v4157_v0 }
 0x4ed   : > { %v4247_v1 = vpop.f32.mrf.mxu3  ;;  %4565 = vmatpush.bf16.msrb.mxu0 %v7126_v53 }
 0x4ee   : > { %v4183_v5 = vadd.f32 %v4182_v50, %v4170_v2  ;;  %v4248_v39 = vadd.f32 %v4247_v1, %v4235_v33  ;;  %v7143_v1 = vld [vmem:[%s10296_s16] ss:$0 sm:$0xff] }
 0x4f0   : > { %v4196_v29 = vadd.f32 %v4195_v46, %v4183_v5 }
 0x4f1   : > { %v4158_v3 = vpop.f32.mrf.mxu0  ;;  %v4171_v4 = vpop.f32.mrf.mxu1  ;;  %4566 = vmatpush.bf16.msrb.mxu0 %v7125_v54 }
 0x4f2   : > { %v4236_v6 = vpop.f32.mrf.mxu2 }
 0x4f5   : > { %v4249_v27 = vpop.f32.mrf.mxu3  ;;  %4567 = vmatpush.bf16.msrb.mxu0 %v7124_v56 }
 0x4f9   : > { %v4208_v7 = vpop.f32.mrf.mxu0  ;;  %v4221_v8 = vpop.f32.mrf.mxu1  ;;  %4568 = vmatpush.bf16.msrb.mxu0 %v7123_v58 }
 0x4fa   : > { %v4209_v10 = vadd.f32 %v4208_v7, %v4196_v29 }
 0x4fc   : > { %v4222_v28 = vadd.f32 %v4221_v8, %v4209_v10 }
 0x4fe   : > { %v4329_v32 = vmax.f32 %v4222_v28, 0.0 }
 0x500   : > { %v4331_v12 = vpack.c.bf16 %v4329_v32, %v4329_v32 }
 0x501   : > { %v4210_v20 = vpop.f32.mrf.mxu0  ;;  %v4223_v21 = vpop.f32.mrf.mxu1 }
 0x502   : > { %4473 = vmatmul.bf16.vlgmr.msra.gmra.mxu2 %v4331_v12 }
 0x509   : > { %v4286_v14 = vpop.f32.mrf.mxu2 }
 0x50d   : > { %v4299_v18 = vpop.f32.mrf.mxu3 }
 0x511   : > { %v4288_v35 = vpop.f32.mrf.mxu2 }
 0x515   : > { %v4301_v48 = vpop.f32.mrf.mxu3 }
 0x519   : > { %v4260_v26 = vpop.f32.mrf.mxu0  ;;  %v4273_v30 = vpop.f32.mrf.mxu1 }
 0x51a   : > { %v4261_v41 = vadd.f32 %v4260_v26, %v4248_v39 }
 0x51c   : > { %v4274_v44 = vadd.f32 %v4273_v30, %v4261_v41 }
 0x51e   : > { %v4287_v45 = vadd.f32 %v4286_v14, %v4274_v44 }
 0x520   : > { %v4300_v37 = vadd.f32 %v4299_v18, %v4287_v45 }
 0x521   : > { %v4262_v22 = vpop.f32.mrf.mxu0  ;;  %v4275_v36 = vpop.f32.mrf.mxu1 }
 0x539   : > { %v4312_v34 = vpop.f32.mrf.mxu0  ;;  %v4325_v38 = vpop.f32.mrf.mxu1 }
 0x53a   : > { %v4313_v49 = vadd.f32 %v4312_v34, %v4300_v37 }
 0x53c   : > { %v4326_v50 = vadd.f32 %v4325_v38, %v4313_v49 }
 0x53e   : > { %v4330_v46 = vmax.f32 %v4326_v50, 0.0 }
 0x540   : > { %v4332_v47 = vpack.c.bf16 %v4330_v46, %v4330_v46 }
 0x541   : > { %v4314_v51 = vpop.f32.mrf.mxu0  ;;  %v4327_v40 = vpop.f32.mrf.mxu1 }
 0x542   : > { %4486 = vmatmul.bf16.vlgmr.msra.gmra.mxu3 %v4332_v47 }
 0x585   : > { %v4474_v17 = vpop.f32.mrf.mxu2 }
 0x586   : > { %v4475_v60 = vadd.f32 %v7142_v59, %v4474_v17 }
 0x58d   : > { %v4476_v55 = vpop.f32.mrf.mxu2 }
 0x5c5   : > { %v4487_v61 = vpop.f32.mrf.mxu3 }
 0x5c6   : > { %v4488_v62 = vadd.f32 %v4487_v61, %v4475_v60 }
 0x5c8   : > { %v4491_v63 = vmax.f32 %v4488_v62, 0.0 }
 0x5ca   : > { %v4492_v0 = vpack.c.bf16 %v4491_v63, %v4491_v63 }
 0x5cc   : > { %4569 = vmatmul.bf16.vlgmr.msrb.gmra.mxu0 %v4492_v0 }
 0x5cd   : > { %v4489_v57 = vpop.f32.mrf.mxu3 }
 0x649   : > { %v4570_v2 = vpop.f32.mrf.mxu0 }
 0x64a   : > { %v4571_v3 = vadd.f32 %v7143_v1, %v4570_v2 }
 0x64c   : > { %v6639_v4 = vmul.f32 -1.442695, %v4571_v3 }
 0x64e   : > { %7152 = vpow2.f32 %v6639_v4 }
 0x651   : > { %v4572_v5 = vpop.f32.mrf.mxu0 }
 0x654   : > { %v7153_v6 = vpop.eup %7152 }
 0x655   : > { %v4577_v27 = vadd.f32 1.0, %v7153_v6 }
 0x657   : > { %7154 = vrcp.f32 %v4577_v27  ;;  %v4589_v9 = vand.u32 2147483648, %v4577_v27  ;;  %v4587_v11 = vand.u32 2147483647, %v4577_v27  ;;  %vm4583_vm10 = vweird.f32 %v4577_v27 }
 0x659   : > { %v4590_v32 = vor.u32 1.1754944e-38, %v4589_v9  ;;  %vm4588_vm12 = vcmp.eq.f32.partialorder %v4587_v11, 8.507059e+37 }
 0x65d   : > { %v7155_v29 = vpop.eup %7154 }
 0x65e   : > { %v4579_v7 = vmul.f32 %v7155_v29, %v4577_v27  ;;  %vm4584_vm9 = vweird.f32 %v7155_v29 }
 0x65f   : > { %vm4585_vm11 = vmor %vm4583_vm10, %vm4584_vm9 }
 0x660   : > { %v4580_v8 = vsub.f32 1.0, %v4579_v7 }
 0x662   : > { %v4581_v10 = vmul.f32 %v7155_v29, %v4580_v8 }
 0x664   : > { %v4582_v28 = vadd.f32 %v7155_v29, %v4581_v10 }
 0x666   : > { %v4586_v19 = vsel %vm4585_vm11, %v7155_v29, %v4582_v28 }
 0x667   : > { %v4591_v12 = vsel %vm4588_vm12, %v4590_v32, %v4586_v19 }
 0x668   : > { %4593 = vst.msk [vmem:[%s584_s23] sm:$0xff] %vm3345_vm8, %v4591_v12 }
 0x669 PF: > { %s29_s27 = sadd.s32 1, %s7162_s27  }
 0x66a   : > { %p26_p4 = scmp.ge.s32.totalorder %s29_s27, 4  }
 0x66c   :  { %28 = sbr.rel (!%p26_p4) target bundleno = 4 (0x4), region = 130 }

</bundles_post_ra>
